<compile_context>
chip_gen: v6e
topology: v6e:2x2x1
jax: 0.10.0
libtpu: 0.0.40
codegen_flags: <defaults>
</compile_context>

<pallas_src>
import functools

import jax
import jax.numpy as jnp
from jax.experimental import pallas as pl
from jax.experimental.pallas import tpu as pltpu


def _fused_pool_classify_kernel(ids_ref,    # SMEM  [B*S] int32 (scalar prefetch)
                                emb_ref,    # VMEM  [V, H]  embedding table (resident)
                                w_ref,      # VMEM  [H, Lp] (W^T, lane-padded)
                                b_ref,      # VMEM  [1, Lp]
                                o_ref,      # VMEM  [tb, Lp] output block
                                acc,        # VMEM  [tb, H]  f32 seq-sum accumulator
                                *, tb, ts, S, inv_s):
    bi = pl.program_id(0)          # batch-tile index   ("parallel")
    st = pl.program_id(1)          # seq-tile index     ("arbitrary" / reduction)
    H = emb_ref.shape[1]
    needs_mask = (S % ts) != 0     # static: only the tail tile ever needs masking

    # 1) Zero the seq-sum accumulator on the first seq tile.
    @pl.when(st == 0)
    def _():
        acc[...] = jnp.zeros_like(acc)

    # 2) In-VMEM gather + per-row sequence sum (fully unrolled; no DMA, no waits).
    base = st * ts
    rows = []
    for r in range(tb):
        row_off = (bi * tb + r) * S
        rs = jnp.zeros((1, H), jnp.float32)
        for c in range(ts):
            pos = base + c
            if needs_mask:
                pos_c = jnp.minimum(pos, S - 1)                    # clamp: safe SMEM read
                tok = ids_ref[row_off + pos_c]
                row = emb_ref[pl.ds(tok, 1), :].astype(jnp.float32)
                rs = rs + jnp.where(pos < S, 1.0, 0.0) * row       # mask tail positions
            else:
                tok = ids_ref[row_off + pos]
                rs = rs + emb_ref[pl.ds(tok, 1), :].astype(jnp.float32)
        rows.append(rs)
    acc[...] += jnp.concatenate(rows, axis=0)                      # [tb, H]

    # 3) Finalize on the last seq tile: MXU matmul, scale by 1/S (mean), add bias.
    #    nn.Dropout is the identity at inference time.
    @pl.when(st == pl.num_programs(1) - 1)
    def _():
        logits = jnp.dot(acc[...], w_ref[...],
                         preferred_element_type=jnp.float32)       # [tb, Lp]
        o_ref[...] = logits * inv_s + b_ref[...]


def prepare_head_params(w, b, *, lane=128):
    """One-time parameter prep (hoisted out of the per-call path).

    PyTorch nn.Linear stores W as [num_labels, H]; the kernel wants a lane-dense
    [H, Lp] with Lp padded up to a multiple of 128 so the output store is unmasked.
    """
    L, H = w.shape
    Lp = ((L + lane - 1) // lane) * lane
    w_pad_t = jnp.zeros((H, Lp), w.dtype).at[:, :L].set(jnp.transpose(w))
    b_pad = jnp.zeros((1, Lp), b.dtype).at[0, :L].set(b)
    return w_pad_t, b_pad


def _pick_batch_tile(B, *, max_tile=64):
    """Largest multiple-of-8 divisor of B (capped), preferring >=2 tiles for v7x."""
    if B <= 8:
        return B
    cands = [t for t in range(8, min(B, max_tile) + 1, 8) if B % t == 0]
    if not cands:
        return B                                  # odd batch: single full-batch tile
    two_plus = [t for t in cands if B // t >= 2]  # keep the "parallel" axis >= 2 long
    return max(two_plus) if two_plus else max(cands)


def fused_pool_classify(input_ids, emb_table, w_pad_t, b_pad, *, num_labels, seq_tile=16):
    """Fused embedding-gather + mean-pool(seq) + linear classification head."""
    B, S = input_ids.shape
    V, H = emb_table.shape
    Lp = w_pad_t.shape[1]

    table_bytes = V * H * emb_table.dtype.itemsize
    # TODO(synk): large-vocab path (table > ~24 MiB) needs a double-buffered HBM DMA
    # gather instead of VMEM staging; not implemented here.
    assert table_bytes <= (24 << 20), "embedding table too large to stage in VMEM"

    tb = _pick_batch_tile(B)
    assert B % tb == 0
    ts = min(seq_tile, S)
    grid = (B // tb, pl.cdiv(S, ts))
    inv_s = 1.0 / float(S)

    kernel = functools.partial(_fused_pool_classify_kernel,
                               tb=tb, ts=ts, S=S, inv_s=inv_s)

    # VMEM budget: 2x (double-buffer allowance) for every BlockSpec operand + scratch.
    w_bytes = H * Lp * w_pad_t.dtype.itemsize
    need = 2 * (table_bytes + w_bytes + Lp * 4 + tb * Lp * 4) + tb * H * 4 + (4 << 20)
    vmem_limit = int(min(48 << 20, max(32 << 20, need)))

    cost = pl.CostEstimate(
        flops=2 * B * H * Lp + B * S * H,
        transcendentals=0,
        bytes_accessed=table_bytes + B * S * 4 + w_bytes + B * Lp * 4,
    )

    out_padded = pl.pallas_call(
        kernel,
        out_shape=jax.ShapeDtypeStruct((B, Lp), jnp.float32),
        grid_spec=pltpu.PrefetchScalarGridSpec(
            num_scalar_prefetch=1,                                   # flat input_ids -> SMEM
            grid=grid,
            in_specs=[
                pl.BlockSpec((V, H), lambda bi, st, ids: (0, 0)),    # table staged once in VMEM
                pl.BlockSpec((H, Lp), lambda bi, st, ids: (0, 0)),   # W^T, fetched once
                pl.BlockSpec((1, Lp), lambda bi, st, ids: (0, 0)),   # bias row
            ],
            out_specs=pl.BlockSpec((tb, Lp), lambda bi, st, ids: (bi, 0)),
            scratch_shapes=[
                pltpu.VMEM((tb, H), jnp.float32),                    # f32 seq-sum accumulator
            ],
        ),
        compiler_params=pltpu.CompilerParams(
            dimension_semantics=("parallel", "arbitrary"),           # batch across TCs on v7x
            vmem_limit_bytes=vmem_limit,
        ),
        cost_estimate=cost,
    )(input_ids.reshape(-1).astype(jnp.int32), emb_table, w_pad_t, b_pad)

    return out_padded[:, :num_labels]


def forward(input_ids, attention_mask, emb_table, w_pad_t, b_pad, num_labels, *, seq_tile=16):
    """Mirrors PLMMultiHeadAttentionClassifier.forward(input_ids, attention_mask).

    NOTE: matching the reference module, pooling is a plain mean over ALL S positions
    (padding included); attention_mask is only consumed by the PLM itself.  The
    nn.MultiheadAttention member is never used in forward; nn.Dropout is identity in eval.
    """
    # TODO(synk): AutoModel.from_pretrained (the full pretrained transformer PLM) has no
    # clean Pallas equivalent; a deterministic embedding lookup stands in for it, and that
    # lookup is fused into the kernel (no [B, S, H] hidden state is materialized in HBM).
    del attention_mask
    return fused_pool_classify(input_ids, emb_table, w_pad_t, b_pad,
                               num_labels=num_labels, seq_tile=seq_tile)


if __name__ == "__main__":
    # Small, module-consistent shapes that still exercise both grid axes
    # (2 "parallel" batch tiles x 2 "arbitrary" seq tiles).
    B, S, H, L, V = 16, 32, 128, 3, 64   # batch, seq, hidden_size, num_labels, vocab

    key = jax.random.PRNGKey(0)
    k_emb, k_w, k_b, k_ids = jax.random.split(key, 4)

    # Deterministic synthetic parameters (nn.Linear-style uniform init for the head).
    emb_table = 0.02 * jax.random.normal(k_emb, (V, H), jnp.float32)
    bound = 1.0 / jnp.sqrt(jnp.float32(H))
    w = jax.random.uniform(k_w, (L, H), jnp.float32, -bound, bound)   # PyTorch layout [L, H]
    b = jax.random.uniform(k_b, (L,), jnp.float32, -bound, bound)

    input_ids = jax.random.randint(k_ids, (B, S), 0, V)
    attention_mask = jnp.ones((B, S), jnp.int32)

    # One-time parameter preparation (hoisted out of the per-call path).
    w_pad_t, b_pad = prepare_head_params(w, b)

    logits = forward(input_ids, attention_mask, emb_table, w_pad_t, b_pad, num_labels=L)
    jax.block_until_ready(logits)

    # Pure-JAX reference of the exact post-PLM forward semantics.
    last_hidden_ref = emb_table[input_ids]                            # [B, S, H]
    ref = last_hidden_ref.mean(axis=1) @ w.T + b                      # [B, L]
    assert logits.shape == (B, L) and logits.dtype == jnp.float32
    assert bool(jnp.allclose(logits, ref, atol=1e-5, rtol=1e-4))

    print("KERNEL_OK")
</pallas_src>

<mosaic_0001>
module attributes {stable_mosaic.version = 11 : i64} {
  func.func @_fused_pool_classify_kernel(%arg0: i32, %arg1: i32, %arg2: memref<512xi32, #tpu.memory_space<smem>>, %arg3: memref<64x128xf32, #tpu.memory_space<vmem>>, %arg4: memref<128x128xf32, #tpu.memory_space<vmem>>, %arg5: memref<1x128xf32, #tpu.memory_space<vmem>>, %arg6: memref<8x128xf32, #tpu.memory_space<vmem>>, %arg7: memref<8x128xf32, #tpu.memory_space<vmem>>) attributes {dimension_semantics = [#tpu.dimension_semantics<parallel>, #tpu.dimension_semantics<arbitrary>], iteration_bounds = array<i64: 2, 2>, scalar_prefetch = 1 : i64, scratch_operands = 1 : i64, tpu.core_type = #tpu.core_type<tc>, window_params = [{pipeline_mode = #tpu.pipeline_mode<synchronous>, transform_indices = @transform_0, window_bounds = array<i64: 64, 128>}, {pipeline_mode = #tpu.pipeline_mode<synchronous>, transform_indices = @transform_1, window_bounds = array<i64: 128, 128>}, {pipeline_mode = #tpu.pipeline_mode<synchronous>, transform_indices = @transform_2, window_bounds = array<i64: 1, 128>}, {transform_indices = @transform_3, window_bounds = array<i64: 8, 128>}]} {
    %c0_i32 = arith.constant 0 : i32
    %0 = arith.cmpi eq, %arg1, %c0_i32 : i32
    %1 = arith.extui %0 : i1 to i32
    %c0_i32_0 = arith.constant 0 : i32
    %2 = arith.cmpi ne, %1, %c0_i32_0 : i32
    scf.if %2 {
      %cst_277 = arith.constant 0.000000e+00 : f32
      %939 = vector.broadcast %cst_277 : f32 to vector<8x128xf32>
      %c0_278 = arith.constant 0 : index
      %c0_279 = arith.constant 0 : index
      %940 = vector.load %arg7[%c0_278, %c0_279] : memref<8x128xf32, #tpu.memory_space<vmem>>, vector<8x128xf32>
      tpu.vector_store %arg7[%c0_278, %c0_279], %939 {strides = array<i32>} : memref<8x128xf32, #tpu.memory_space<vmem>>, vector<8x128xf32>,
    } else {
    }
    %c16_i32 = arith.constant 16 : i32
    %3 = arith.muli %arg1, %c16_i32 : i32
    %c8_i32 = arith.constant 8 : i32
    %4 = arith.muli %arg0, %c8_i32 : i32
    %c0_i32_1 = arith.constant 0 : i32
    %5 = arith.addi %4, %c0_i32_1 : i32
    %c32_i32 = arith.constant 32 : i32
    %6 = arith.muli %5, %c32_i32 : i32
    %cst = arith.constant 0.000000e+00 : f32
    %7 = vector.broadcast %cst : f32 to vector<1x128xf32>
    %c0_i32_2 = arith.constant 0 : i32
    %8 = arith.addi %3, %c0_i32_2 : i32
    %9 = arith.addi %6, %8 : i32
    %10 = arith.index_cast %9 : i32 to index
    %11 = memref.load %arg2[%10] : memref<512xi32, #tpu.memory_space<smem>>
    %12 = arith.index_cast %11 : i32 to index
    %c0 = arith.constant 0 : index
    %13 = vector.load %arg3[%12, %c0] : memref<64x128xf32, #tpu.memory_space<vmem>>, vector<1x128xf32>
    %14 = arith.addf %7, %13 : vector<1x128xf32>
    %c1_i32 = arith.constant 1 : i32
    %15 = arith.addi %3, %c1_i32 : i32
    %16 = arith.addi %6, %15 : i32
    %17 = arith.index_cast %16 : i32 to index
    %18 = memref.load %arg2[%17] : memref<512xi32, #tpu.memory_space<smem>>
    %19 = arith.index_cast %18 : i32 to index
    %c0_3 = arith.constant 0 : index
    %20 = vector.load %arg3[%19, %c0_3] : memref<64x128xf32, #tpu.memory_space<vmem>>, vector<1x128xf32>
    %21 = arith.addf %14, %20 : vector<1x128xf32>
    %c2_i32 = arith.constant 2 : i32
    %22 = arith.addi %3, %c2_i32 : i32
    %23 = arith.addi %6, %22 : i32
    %24 = arith.index_cast %23 : i32 to index
    %25 = memref.load %arg2[%24] : memref<512xi32, #tpu.memory_space<smem>>
    %26 = arith.index_cast %25 : i32 to index
    %c0_4 = arith.constant 0 : index
    %27 = vector.load %arg3[%26, %c0_4] : memref<64x128xf32, #tpu.memory_space<vmem>>, vector<1x128xf32>
    %28 = arith.addf %21, %27 : vector<1x128xf32>
    %c3_i32 = arith.constant 3 : i32
    %29 = arith.addi %3, %c3_i32 : i32
    %30 = arith.addi %6, %29 : i32
    %31 = arith.index_cast %30 : i32 to index
    %32 = memref.load %arg2[%31] : memref<512xi32, #tpu.memory_space<smem>>
    %33 = arith.index_cast %32 : i32 to index
    %c0_5 = arith.constant 0 : index
    %34 = vector.load %arg3[%33, %c0_5] : memref<64x128xf32, #tpu.memory_space<vmem>>, vector<1x128xf32>
    %35 = arith.addf %28, %34 : vector<1x128xf32>
    %c4_i32 = arith.constant 4 : i32
    %36 = arith.addi %3, %c4_i32 : i32
    %37 = arith.addi %6, %36 : i32
    %38 = arith.index_cast %37 : i32 to index
    %39 = memref.load %arg2[%38] : memref<512xi32, #tpu.memory_space<smem>>
    %40 = arith.index_cast %39 : i32 to index
    %c0_6 = arith.constant 0 : index
    %41 = vector.load %arg3[%40, %c0_6] : memref<64x128xf32, #tpu.memory_space<vmem>>, vector<1x128xf32>
    %42 = arith.addf %35, %41 : vector<1x128xf32>
    %c5_i32 = arith.constant 5 : i32
    %43 = arith.addi %3, %c5_i32 : i32
    %44 = arith.addi %6, %43 : i32
    %45 = arith.index_cast %44 : i32 to index
    %46 = memref.load %arg2[%45] : memref<512xi32, #tpu.memory_space<smem>>
    %47 = arith.index_cast %46 : i32 to index
    %c0_7 = arith.constant 0 : index
    %48 = vector.load %arg3[%47, %c0_7] : memref<64x128xf32, #tpu.memory_space<vmem>>, vector<1x128xf32>
    %49 = arith.addf %42, %48 : vector<1x128xf32>
    %c6_i32 = arith.constant 6 : i32
    %50 = arith.addi %3, %c6_i32 : i32
    %51 = arith.addi %6, %50 : i32
    %52 = arith.index_cast %51 : i32 to index
    %53 = memref.load %arg2[%52] : memref<512xi32, #tpu.memory_space<smem>>
    %54 = arith.index_cast %53 : i32 to index
    %c0_8 = arith.constant 0 : index
    %55 = vector.load %arg3[%54, %c0_8] : memref<64x128xf32, #tpu.memory_space<vmem>>, vector<1x128xf32>
    %56 = arith.addf %49, %55 : vector<1x128xf32>
    %c7_i32 = arith.constant 7 : i32
    %57 = arith.addi %3, %c7_i32 : i32
    %58 = arith.addi %6, %57 : i32
    %59 = arith.index_cast %58 : i32 to index
    %60 = memref.load %arg2[%59] : memref<512xi32, #tpu.memory_space<smem>>
    %61 = arith.index_cast %60 : i32 to index
    %c0_9 = arith.constant 0 : index
    %62 = vector.load %arg3[%61, %c0_9] : memref<64x128xf32, #tpu.memory_space<vmem>>, vector<1x128xf32>
    %63 = arith.addf %56, %62 : vector<1x128xf32>
    %c8_i32_10 = arith.constant 8 : i32
    %64 = arith.addi %3, %c8_i32_10 : i32
    %65 = arith.addi %6, %64 : i32
    %66 = arith.index_cast %65 : i32 to index
    %67 = memref.load %arg2[%66] : memref<512xi32, #tpu.memory_space<smem>>
    %68 = arith.index_cast %67 : i32 to index
    %c0_11 = arith.constant 0 : index
    %69 = vector.load %arg3[%68, %c0_11] : memref<64x128xf32, #tpu.memory_space<vmem>>, vector<1x128xf32>
    %70 = arith.addf %63, %69 : vector<1x128xf32>
    %c9_i32 = arith.constant 9 : i32
    %71 = arith.addi %3, %c9_i32 : i32
    %72 = arith.addi %6, %71 : i32
    %73 = arith.index_cast %72 : i32 to index
    %74 = memref.load %arg2[%73] : memref<512xi32, #tpu.memory_space<smem>>
    %75 = arith.index_cast %74 : i32 to index
    %c0_12 = arith.constant 0 : index
    %76 = vector.load %arg3[%75, %c0_12] : memref<64x128xf32, #tpu.memory_space<vmem>>, vector<1x128xf32>
    %77 = arith.addf %70, %76 : vector<1x128xf32>
    %c10_i32 = arith.constant 10 : i32
    %78 = arith.addi %3, %c10_i32 : i32
    %79 = arith.addi %6, %78 : i32
    %80 = arith.index_cast %79 : i32 to index
    %81 = memref.load %arg2[%80] : memref<512xi32, #tpu.memory_space<smem>>
    %82 = arith.index_cast %81 : i32 to index
    %c0_13 = arith.constant 0 : index
    %83 = vector.load %arg3[%82, %c0_13] : memref<64x128xf32, #tpu.memory_space<vmem>>, vector<1x128xf32>
    %84 = arith.addf %77, %83 : vector<1x128xf32>
    %c11_i32 = arith.constant 11 : i32
    %85 = arith.addi %3, %c11_i32 : i32
    %86 = arith.addi %6, %85 : i32
    %87 = arith.index_cast %86 : i32 to index
    %88 = memref.load %arg2[%87] : memref<512xi32, #tpu.memory_space<smem>>
    %89 = arith.index_cast %88 : i32 to index
    %c0_14 = arith.constant 0 : index
    %90 = vector.load %arg3[%89, %c0_14] : memref<64x128xf32, #tpu.memory_space<vmem>>, vector<1x128xf32>
    %91 = arith.addf %84, %90 : vector<1x128xf32>
    %c12_i32 = arith.constant 12 : i32
    %92 = arith.addi %3, %c12_i32 : i32
    %93 = arith.addi %6, %92 : i32
    %94 = arith.index_cast %93 : i32 to index
    %95 = memref.load %arg2[%94] : memref<512xi32, #tpu.memory_space<smem>>
    %96 = arith.index_cast %95 : i32 to index
    %c0_15 = arith.constant 0 : index
    %97 = vector.load %arg3[%96, %c0_15] : memref<64x128xf32, #tpu.memory_space<vmem>>, vector<1x128xf32>
    %98 = arith.addf %91, %97 : vector<1x128xf32>
    %c13_i32 = arith.constant 13 : i32
    %99 = arith.addi %3, %c13_i32 : i32
    %100 = arith.addi %6, %99 : i32
    %101 = arith.index_cast %100 : i32 to index
    %102 = memref.load %arg2[%101] : memref<512xi32, #tpu.memory_space<smem>>
    %103 = arith.index_cast %102 : i32 to index
    %c0_16 = arith.constant 0 : index
    %104 = vector.load %arg3[%103, %c0_16] : memref<64x128xf32, #tpu.memory_space<vmem>>, vector<1x128xf32>
    %105 = arith.addf %98, %104 : vector<1x128xf32>
    %c14_i32 = arith.constant 14 : i32
    %106 = arith.addi %3, %c14_i32 : i32
    %107 = arith.addi %6, %106 : i32
    %108 = arith.index_cast %107 : i32 to index
    %109 = memref.load %arg2[%108] : memref<512xi32, #tpu.memory_space<smem>>
    %110 = arith.index_cast %109 : i32 to index
    %c0_17 = arith.constant 0 : index
    %111 = vector.load %arg3[%110, %c0_17] : memref<64x128xf32, #tpu.memory_space<vmem>>, vector<1x128xf32>
    %112 = arith.addf %105, %111 : vector<1x128xf32>
    %c15_i32 = arith.constant 15 : i32
    %113 = arith.addi %3, %c15_i32 : i32
    %114 = arith.addi %6, %113 : i32
    %115 = arith.index_cast %114 : i32 to index
    %116 = memref.load %arg2[%115] : memref<512xi32, #tpu.memory_space<smem>>
    %117 = arith.index_cast %116 : i32 to index
    %c0_18 = arith.constant 0 : index
    %118 = vector.load %arg3[%117, %c0_18] : memref<64x128xf32, #tpu.memory_space<vmem>>, vector<1x128xf32>
    %119 = arith.addf %112, %118 : vector<1x128xf32>
    %c8_i32_19 = arith.constant 8 : i32
    %120 = arith.muli %arg0, %c8_i32_19 : i32
    %c1_i32_20 = arith.constant 1 : i32
    %121 = arith.addi %120, %c1_i32_20 : i32
    %c32_i32_21 = arith.constant 32 : i32
    %122 = arith.muli %121, %c32_i32_21 : i32
    %cst_22 = arith.constant 0.000000e+00 : f32
    %123 = vector.broadcast %cst_22 : f32 to vector<1x128xf32>
    %c0_i32_23 = arith.constant 0 : i32
    %124 = arith.addi %3, %c0_i32_23 : i32
    %125 = arith.addi %122, %124 : i32
    %126 = arith.index_cast %125 : i32 to index
    %127 = memref.load %arg2[%126] : memref<512xi32, #tpu.memory_space<smem>>
    %128 = arith.index_cast %127 : i32 to index
    %c0_24 = arith.constant 0 : index
    %129 = vector.load %arg3[%128, %c0_24] : memref<64x128xf32, #tpu.memory_space<vmem>>, vector<1x128xf32>
    %130 = arith.addf %123, %129 : vector<1x128xf32>
    %c1_i32_25 = arith.constant 1 : i32
    %131 = arith.addi %3, %c1_i32_25 : i32
    %132 = arith.addi %122, %131 : i32
    %133 = arith.index_cast %132 : i32 to index
    %134 = memref.load %arg2[%133] : memref<512xi32, #tpu.memory_space<smem>>
    %135 = arith.index_cast %134 : i32 to index
    %c0_26 = arith.constant 0 : index
    %136 = vector.load %arg3[%135, %c0_26] : memref<64x128xf32, #tpu.memory_space<vmem>>, vector<1x128xf32>
    %137 = arith.addf %130, %136 : vector<1x128xf32>
    %c2_i32_27 = arith.constant 2 : i32
    %138 = arith.addi %3, %c2_i32_27 : i32
    %139 = arith.addi %122, %138 : i32
    %140 = arith.index_cast %139 : i32 to index
    %141 = memref.load %arg2[%140] : memref<512xi32, #tpu.memory_space<smem>>
    %142 = arith.index_cast %141 : i32 to index
    %c0_28 = arith.constant 0 : index
    %143 = vector.load %arg3[%142, %c0_28] : memref<64x128xf32, #tpu.memory_space<vmem>>, vector<1x128xf32>
    %144 = arith.addf %137, %143 : vector<1x128xf32>
    %c3_i32_29 = arith.constant 3 : i32
    %145 = arith.addi %3, %c3_i32_29 : i32
    %146 = arith.addi %122, %145 : i32
    %147 = arith.index_cast %146 : i32 to index
    %148 = memref.load %arg2[%147] : memref<512xi32, #tpu.memory_space<smem>>
    %149 = arith.index_cast %148 : i32 to index
    %c0_30 = arith.constant 0 : index
    %150 = vector.load %arg3[%149, %c0_30] : memref<64x128xf32, #tpu.memory_space<vmem>>, vector<1x128xf32>
    %151 = arith.addf %144, %150 : vector<1x128xf32>
    %c4_i32_31 = arith.constant 4 : i32
    %152 = arith.addi %3, %c4_i32_31 : i32
    %153 = arith.addi %122, %152 : i32
    %154 = arith.index_cast %153 : i32 to index
    %155 = memref.load %arg2[%154] : memref<512xi32, #tpu.memory_space<smem>>
    %156 = arith.index_cast %155 : i32 to index
    %c0_32 = arith.constant 0 : index
    %157 = vector.load %arg3[%156, %c0_32] : memref<64x128xf32, #tpu.memory_space<vmem>>, vector<1x128xf32>
    %158 = arith.addf %151, %157 : vector<1x128xf32>
    %c5_i32_33 = arith.constant 5 : i32
    %159 = arith.addi %3, %c5_i32_33 : i32
    %160 = arith.addi %122, %159 : i32
    %161 = arith.index_cast %160 : i32 to index
    %162 = memref.load %arg2[%161] : memref<512xi32, #tpu.memory_space<smem>>
    %163 = arith.index_cast %162 : i32 to index
    %c0_34 = arith.constant 0 : index
    %164 = vector.load %arg3[%163, %c0_34] : memref<64x128xf32, #tpu.memory_space<vmem>>, vector<1x128xf32>
    %165 = arith.addf %158, %164 : vector<1x128xf32>
    %c6_i32_35 = arith.constant 6 : i32
    %166 = arith.addi %3, %c6_i32_35 : i32
    %167 = arith.addi %122, %166 : i32
    %168 = arith.index_cast %167 : i32 to index
    %169 = memref.load %arg2[%168] : memref<512xi32, #tpu.memory_space<smem>>
    %170 = arith.index_cast %169 : i32 to index
    %c0_36 = arith.constant 0 : index
    %171 = vector.load %arg3[%170, %c0_36] : memref<64x128xf32, #tpu.memory_space<vmem>>, vector<1x128xf32>
    %172 = arith.addf %165, %171 : vector<1x128xf32>
    %c7_i32_37 = arith.constant 7 : i32
    %173 = arith.addi %3, %c7_i32_37 : i32
    %174 = arith.addi %122, %173 : i32
    %175 = arith.index_cast %174 : i32 to index
    %176 = memref.load %arg2[%175] : memref<512xi32, #tpu.memory_space<smem>>
    %177 = arith.index_cast %176 : i32 to index
    %c0_38 = arith.constant 0 : index
    %178 = vector.load %arg3[%177, %c0_38] : memref<64x128xf32, #tpu.memory_space<vmem>>, vector<1x128xf32>
    %179 = arith.addf %172, %178 : vector<1x128xf32>
    %c8_i32_39 = arith.constant 8 : i32
    %180 = arith.addi %3, %c8_i32_39 : i32
    %181 = arith.addi %122, %180 : i32
    %182 = arith.index_cast %181 : i32 to index
    %183 = memref.load %arg2[%182] : memref<512xi32, #tpu.memory_space<smem>>
    %184 = arith.index_cast %183 : i32 to index
    %c0_40 = arith.constant 0 : index
    %185 = vector.load %arg3[%184, %c0_40] : memref<64x128xf32, #tpu.memory_space<vmem>>, vector<1x128xf32>
    %186 = arith.addf %179, %185 : vector<1x128xf32>
    %c9_i32_41 = arith.constant 9 : i32
    %187 = arith.addi %3, %c9_i32_41 : i32
    %188 = arith.addi %122, %187 : i32
    %189 = arith.index_cast %188 : i32 to index
    %190 = memref.load %arg2[%189] : memref<512xi32, #tpu.memory_space<smem>>
    %191 = arith.index_cast %190 : i32 to index
    %c0_42 = arith.constant 0 : index
    %192 = vector.load %arg3[%191, %c0_42] : memref<64x128xf32, #tpu.memory_space<vmem>>, vector<1x128xf32>
    %193 = arith.addf %186, %192 : vector<1x128xf32>
    %c10_i32_43 = arith.constant 10 : i32
    %194 = arith.addi %3, %c10_i32_43 : i32
    %195 = arith.addi %122, %194 : i32
    %196 = arith.index_cast %195 : i32 to index
    %197 = memref.load %arg2[%196] : memref<512xi32, #tpu.memory_space<smem>>
    %198 = arith.index_cast %197 : i32 to index
    %c0_44 = arith.constant 0 : index
    %199 = vector.load %arg3[%198, %c0_44] : memref<64x128xf32, #tpu.memory_space<vmem>>, vector<1x128xf32>
    %200 = arith.addf %193, %199 : vector<1x128xf32>
    %c11_i32_45 = arith.constant 11 : i32
    %201 = arith.addi %3, %c11_i32_45 : i32
    %202 = arith.addi %122, %201 : i32
    %203 = arith.index_cast %202 : i32 to index
    %204 = memref.load %arg2[%203] : memref<512xi32, #tpu.memory_space<smem>>
    %205 = arith.index_cast %204 : i32 to index
    %c0_46 = arith.constant 0 : index
    %206 = vector.load %arg3[%205, %c0_46] : memref<64x128xf32, #tpu.memory_space<vmem>>, vector<1x128xf32>
    %207 = arith.addf %200, %206 : vector<1x128xf32>
    %c12_i32_47 = arith.constant 12 : i32
    %208 = arith.addi %3, %c12_i32_47 : i32
    %209 = arith.addi %122, %208 : i32
    %210 = arith.index_cast %209 : i32 to index
    %211 = memref.load %arg2[%210] : memref<512xi32, #tpu.memory_space<smem>>
    %212 = arith.index_cast %211 : i32 to index
    %c0_48 = arith.constant 0 : index
    %213 = vector.load %arg3[%212, %c0_48] : memref<64x128xf32, #tpu.memory_space<vmem>>, vector<1x128xf32>
    %214 = arith.addf %207, %213 : vector<1x128xf32>
    %c13_i32_49 = arith.constant 13 : i32
    %215 = arith.addi %3, %c13_i32_49 : i32
    %216 = arith.addi %122, %215 : i32
    %217 = arith.index_cast %216 : i32 to index
    %218 = memref.load %arg2[%217] : memref<512xi32, #tpu.memory_space<smem>>
    %219 = arith.index_cast %218 : i32 to index
    %c0_50 = arith.constant 0 : index
    %220 = vector.load %arg3[%219, %c0_50] : memref<64x128xf32, #tpu.memory_space<vmem>>, vector<1x128xf32>
    %221 = arith.addf %214, %220 : vector<1x128xf32>
    %c14_i32_51 = arith.constant 14 : i32
    %222 = arith.addi %3, %c14_i32_51 : i32
    %223 = arith.addi %122, %222 : i32
    %224 = arith.index_cast %223 : i32 to index
    %225 = memref.load %arg2[%224] : memref<512xi32, #tpu.memory_space<smem>>
    %226 = arith.index_cast %225 : i32 to index
    %c0_52 = arith.constant 0 : index
    %227 = vector.load %arg3[%226, %c0_52] : memref<64x128xf32, #tpu.memory_space<vmem>>, vector<1x128xf32>
    %228 = arith.addf %221, %227 : vector<1x128xf32>
    %c15_i32_53 = arith.constant 15 : i32
    %229 = arith.addi %3, %c15_i32_53 : i32
    %230 = arith.addi %122, %229 : i32
    %231 = arith.index_cast %230 : i32 to index
    %232 = memref.load %arg2[%231] : memref<512xi32, #tpu.memory_space<smem>>
    %233 = arith.index_cast %232 : i32 to index
    %c0_54 = arith.constant 0 : index
    %234 = vector.load %arg3[%233, %c0_54] : memref<64x128xf32, #tpu.memory_space<vmem>>, vector<1x128xf32>
    %235 = arith.addf %228, %234 : vector<1x128xf32>
    %c8_i32_55 = arith.constant 8 : i32
    %236 = arith.muli %arg0, %c8_i32_55 : i32
    %c2_i32_56 = arith.constant 2 : i32
    %237 = arith.addi %236, %c2_i32_56 : i32
    %c32_i32_57 = arith.constant 32 : i32
    %238 = arith.muli %237, %c32_i32_57 : i32
    %cst_58 = arith.constant 0.000000e+00 : f32
    %239 = vector.broadcast %cst_58 : f32 to vector<1x128xf32>
    %c0_i32_59 = arith.constant 0 : i32
    %240 = arith.addi %3, %c0_i32_59 : i32
    %241 = arith.addi %238, %240 : i32
    %242 = arith.index_cast %241 : i32 to index
    %243 = memref.load %arg2[%242] : memref<512xi32, #tpu.memory_space<smem>>
    %244 = arith.index_cast %243 : i32 to index
    %c0_60 = arith.constant 0 : index
    %245 = vector.load %arg3[%244, %c0_60] : memref<64x128xf32, #tpu.memory_space<vmem>>, vector<1x128xf32>
    %246 = arith.addf %239, %245 : vector<1x128xf32>
    %c1_i32_61 = arith.constant 1 : i32
    %247 = arith.addi %3, %c1_i32_61 : i32
    %248 = arith.addi %238, %247 : i32
    %249 = arith.index_cast %248 : i32 to index
    %250 = memref.load %arg2[%249] : memref<512xi32, #tpu.memory_space<smem>>
    %251 = arith.index_cast %250 : i32 to index
    %c0_62 = arith.constant 0 : index
    %252 = vector.load %arg3[%251, %c0_62] : memref<64x128xf32, #tpu.memory_space<vmem>>, vector<1x128xf32>
    %253 = arith.addf %246, %252 : vector<1x128xf32>
    %c2_i32_63 = arith.constant 2 : i32
    %254 = arith.addi %3, %c2_i32_63 : i32
    %255 = arith.addi %238, %254 : i32
    %256 = arith.index_cast %255 : i32 to index
    %257 = memref.load %arg2[%256] : memref<512xi32, #tpu.memory_space<smem>>
    %258 = arith.index_cast %257 : i32 to index
    %c0_64 = arith.constant 0 : index
    %259 = vector.load %arg3[%258, %c0_64] : memref<64x128xf32, #tpu.memory_space<vmem>>, vector<1x128xf32>
    %260 = arith.addf %253, %259 : vector<1x128xf32>
    %c3_i32_65 = arith.constant 3 : i32
    %261 = arith.addi %3, %c3_i32_65 : i32
    %262 = arith.addi %238, %261 : i32
    %263 = arith.index_cast %262 : i32 to index
    %264 = memref.load %arg2[%263] : memref<512xi32, #tpu.memory_space<smem>>
    %265 = arith.index_cast %264 : i32 to index
    %c0_66 = arith.constant 0 : index
    %266 = vector.load %arg3[%265, %c0_66] : memref<64x128xf32, #tpu.memory_space<vmem>>, vector<1x128xf32>
    %267 = arith.addf %260, %266 : vector<1x128xf32>
    %c4_i32_67 = arith.constant 4 : i32
    %268 = arith.addi %3, %c4_i32_67 : i32
    %269 = arith.addi %238, %268 : i32
    %270 = arith.index_cast %269 : i32 to index
    %271 = memref.load %arg2[%270] : memref<512xi32, #tpu.memory_space<smem>>
    %272 = arith.index_cast %271 : i32 to index
    %c0_68 = arith.constant 0 : index
    %273 = vector.load %arg3[%272, %c0_68] : memref<64x128xf32, #tpu.memory_space<vmem>>, vector<1x128xf32>
    %274 = arith.addf %267, %273 : vector<1x128xf32>
    %c5_i32_69 = arith.constant 5 : i32
    %275 = arith.addi %3, %c5_i32_69 : i32
    %276 = arith.addi %238, %275 : i32
    %277 = arith.index_cast %276 : i32 to index
    %278 = memref.load %arg2[%277] : memref<512xi32, #tpu.memory_space<smem>>
    %279 = arith.index_cast %278 : i32 to index
    %c0_70 = arith.constant 0 : index
    %280 = vector.load %arg3[%279, %c0_70] : memref<64x128xf32, #tpu.memory_space<vmem>>, vector<1x128xf32>
    %281 = arith.addf %274, %280 : vector<1x128xf32>
    %c6_i32_71 = arith.constant 6 : i32
    %282 = arith.addi %3, %c6_i32_71 : i32
    %283 = arith.addi %238, %282 : i32
    %284 = arith.index_cast %283 : i32 to index
    %285 = memref.load %arg2[%284] : memref<512xi32, #tpu.memory_space<smem>>
    %286 = arith.index_cast %285 : i32 to index
    %c0_72 = arith.constant 0 : index
    %287 = vector.load %arg3[%286, %c0_72] : memref<64x128xf32, #tpu.memory_space<vmem>>, vector<1x128xf32>
    %288 = arith.addf %281, %287 : vector<1x128xf32>
    %c7_i32_73 = arith.constant 7 : i32
    %289 = arith.addi %3, %c7_i32_73 : i32
    %290 = arith.addi %238, %289 : i32
    %291 = arith.index_cast %290 : i32 to index
    %292 = memref.load %arg2[%291] : memref<512xi32, #tpu.memory_space<smem>>
    %293 = arith.index_cast %292 : i32 to index
    %c0_74 = arith.constant 0 : index
    %294 = vector.load %arg3[%293, %c0_74] : memref<64x128xf32, #tpu.memory_space<vmem>>, vector<1x128xf32>
    %295 = arith.addf %288, %294 : vector<1x128xf32>
    %c8_i32_75 = arith.constant 8 : i32
    %296 = arith.addi %3, %c8_i32_75 : i32
    %297 = arith.addi %238, %296 : i32
    %298 = arith.index_cast %297 : i32 to index
    %299 = memref.load %arg2[%298] : memref<512xi32, #tpu.memory_space<smem>>
    %300 = arith.index_cast %299 : i32 to index
    %c0_76 = arith.constant 0 : index
    %301 = vector.load %arg3[%300, %c0_76] : memref<64x128xf32, #tpu.memory_space<vmem>>, vector<1x128xf32>
    %302 = arith.addf %295, %301 : vector<1x128xf32>
    %c9_i32_77 = arith.constant 9 : i32
    %303 = arith.addi %3, %c9_i32_77 : i32
    %304 = arith.addi %238, %303 : i32
    %305 = arith.index_cast %304 : i32 to index
    %306 = memref.load %arg2[%305] : memref<512xi32, #tpu.memory_space<smem>>
    %307 = arith.index_cast %306 : i32 to index
    %c0_78 = arith.constant 0 : index
    %308 = vector.load %arg3[%307, %c0_78] : memref<64x128xf32, #tpu.memory_space<vmem>>, vector<1x128xf32>
    %309 = arith.addf %302, %308 : vector<1x128xf32>
    %c10_i32_79 = arith.constant 10 : i32
    %310 = arith.addi %3, %c10_i32_79 : i32
    %311 = arith.addi %238, %310 : i32
    %312 = arith.index_cast %311 : i32 to index
    %313 = memref.load %arg2[%312] : memref<512xi32, #tpu.memory_space<smem>>
    %314 = arith.index_cast %313 : i32 to index
    %c0_80 = arith.constant 0 : index
    %315 = vector.load %arg3[%314, %c0_80] : memref<64x128xf32, #tpu.memory_space<vmem>>, vector<1x128xf32>
    %316 = arith.addf %309, %315 : vector<1x128xf32>
    %c11_i32_81 = arith.constant 11 : i32
    %317 = arith.addi %3, %c11_i32_81 : i32
    %318 = arith.addi %238, %317 : i32
    %319 = arith.index_cast %318 : i32 to index
    %320 = memref.load %arg2[%319] : memref<512xi32, #tpu.memory_space<smem>>
    %321 = arith.index_cast %320 : i32 to index
    %c0_82 = arith.constant 0 : index
    %322 = vector.load %arg3[%321, %c0_82] : memref<64x128xf32, #tpu.memory_space<vmem>>, vector<1x128xf32>
    %323 = arith.addf %316, %322 : vector<1x128xf32>
    %c12_i32_83 = arith.constant 12 : i32
    %324 = arith.addi %3, %c12_i32_83 : i32
    %325 = arith.addi %238, %324 : i32
    %326 = arith.index_cast %325 : i32 to index
    %327 = memref.load %arg2[%326] : memref<512xi32, #tpu.memory_space<smem>>
    %328 = arith.index_cast %327 : i32 to index
    %c0_84 = arith.constant 0 : index
    %329 = vector.load %arg3[%328, %c0_84] : memref<64x128xf32, #tpu.memory_space<vmem>>, vector<1x128xf32>
    %330 = arith.addf %323, %329 : vector<1x128xf32>
    %c13_i32_85 = arith.constant 13 : i32
    %331 = arith.addi %3, %c13_i32_85 : i32
    %332 = arith.addi %238, %331 : i32
    %333 = arith.index_cast %332 : i32 to index
    %334 = memref.load %arg2[%333] : memref<512xi32, #tpu.memory_space<smem>>
    %335 = arith.index_cast %334 : i32 to index
    %c0_86 = arith.constant 0 : index
    %336 = vector.load %arg3[%335, %c0_86] : memref<64x128xf32, #tpu.memory_space<vmem>>, vector<1x128xf32>
    %337 = arith.addf %330, %336 : vector<1x128xf32>
    %c14_i32_87 = arith.constant 14 : i32
    %338 = arith.addi %3, %c14_i32_87 : i32
    %339 = arith.addi %238, %338 : i32
    %340 = arith.index_cast %339 : i32 to index
    %341 = memref.load %arg2[%340] : memref<512xi32, #tpu.memory_space<smem>>
    %342 = arith.index_cast %341 : i32 to index
    %c0_88 = arith.constant 0 : index
    %343 = vector.load %arg3[%342, %c0_88] : memref<64x128xf32, #tpu.memory_space<vmem>>, vector<1x128xf32>
    %344 = arith.addf %337, %343 : vector<1x128xf32>
    %c15_i32_89 = arith.constant 15 : i32
    %345 = arith.addi %3, %c15_i32_89 : i32
    %346 = arith.addi %238, %345 : i32
    %347 = arith.index_cast %346 : i32 to index
    %348 = memref.load %arg2[%347] : memref<512xi32, #tpu.memory_space<smem>>
    %349 = arith.index_cast %348 : i32 to index
    %c0_90 = arith.constant 0 : index
    %350 = vector.load %arg3[%349, %c0_90] : memref<64x128xf32, #tpu.memory_space<vmem>>, vector<1x128xf32>
    %351 = arith.addf %344, %350 : vector<1x128xf32>
    %c8_i32_91 = arith.constant 8 : i32
    %352 = arith.muli %arg0, %c8_i32_91 : i32
    %c3_i32_92 = arith.constant 3 : i32
    %353 = arith.addi %352, %c3_i32_92 : i32
    %c32_i32_93 = arith.constant 32 : i32
    %354 = arith.muli %353, %c32_i32_93 : i32
    %cst_94 = arith.constant 0.000000e+00 : f32
    %355 = vector.broadcast %cst_94 : f32 to vector<1x128xf32>
    %c0_i32_95 = arith.constant 0 : i32
    %356 = arith.addi %3, %c0_i32_95 : i32
    %357 = arith.addi %354, %356 : i32
    %358 = arith.index_cast %357 : i32 to index
    %359 = memref.load %arg2[%358] : memref<512xi32, #tpu.memory_space<smem>>
    %360 = arith.index_cast %359 : i32 to index
    %c0_96 = arith.constant 0 : index
    %361 = vector.load %arg3[%360, %c0_96] : memref<64x128xf32, #tpu.memory_space<vmem>>, vector<1x128xf32>
    %362 = arith.addf %355, %361 : vector<1x128xf32>
    %c1_i32_97 = arith.constant 1 : i32
    %363 = arith.addi %3, %c1_i32_97 : i32
    %364 = arith.addi %354, %363 : i32
    %365 = arith.index_cast %364 : i32 to index
    %366 = memref.load %arg2[%365] : memref<512xi32, #tpu.memory_space<smem>>
    %367 = arith.index_cast %366 : i32 to index
    %c0_98 = arith.constant 0 : index
    %368 = vector.load %arg3[%367, %c0_98] : memref<64x128xf32, #tpu.memory_space<vmem>>, vector<1x128xf32>
    %369 = arith.addf %362, %368 : vector<1x128xf32>
    %c2_i32_99 = arith.constant 2 : i32
    %370 = arith.addi %3, %c2_i32_99 : i32
    %371 = arith.addi %354, %370 : i32
    %372 = arith.index_cast %371 : i32 to index
    %373 = memref.load %arg2[%372] : memref<512xi32, #tpu.memory_space<smem>>
    %374 = arith.index_cast %373 : i32 to index
    %c0_100 = arith.constant 0 : index
    %375 = vector.load %arg3[%374, %c0_100] : memref<64x128xf32, #tpu.memory_space<vmem>>, vector<1x128xf32>
    %376 = arith.addf %369, %375 : vector<1x128xf32>
    %c3_i32_101 = arith.constant 3 : i32
    %377 = arith.addi %3, %c3_i32_101 : i32
    %378 = arith.addi %354, %377 : i32
    %379 = arith.index_cast %378 : i32 to index
    %380 = memref.load %arg2[%379] : memref<512xi32, #tpu.memory_space<smem>>
    %381 = arith.index_cast %380 : i32 to index
    %c0_102 = arith.constant 0 : index
    %382 = vector.load %arg3[%381, %c0_102] : memref<64x128xf32, #tpu.memory_space<vmem>>, vector<1x128xf32>
    %383 = arith.addf %376, %382 : vector<1x128xf32>
    %c4_i32_103 = arith.constant 4 : i32
    %384 = arith.addi %3, %c4_i32_103 : i32
    %385 = arith.addi %354, %384 : i32
    %386 = arith.index_cast %385 : i32 to index
    %387 = memref.load %arg2[%386] : memref<512xi32, #tpu.memory_space<smem>>
    %388 = arith.index_cast %387 : i32 to index
    %c0_104 = arith.constant 0 : index
    %389 = vector.load %arg3[%388, %c0_104] : memref<64x128xf32, #tpu.memory_space<vmem>>, vector<1x128xf32>
    %390 = arith.addf %383, %389 : vector<1x128xf32>
    %c5_i32_105 = arith.constant 5 : i32
    %391 = arith.addi %3, %c5_i32_105 : i32
    %392 = arith.addi %354, %391 : i32
    %393 = arith.index_cast %392 : i32 to index
    %394 = memref.load %arg2[%393] : memref<512xi32, #tpu.memory_space<smem>>
    %395 = arith.index_cast %394 : i32 to index
    %c0_106 = arith.constant 0 : index
    %396 = vector.load %arg3[%395, %c0_106] : memref<64x128xf32, #tpu.memory_space<vmem>>, vector<1x128xf32>
    %397 = arith.addf %390, %396 : vector<1x128xf32>
    %c6_i32_107 = arith.constant 6 : i32
    %398 = arith.addi %3, %c6_i32_107 : i32
    %399 = arith.addi %354, %398 : i32
    %400 = arith.index_cast %399 : i32 to index
    %401 = memref.load %arg2[%400] : memref<512xi32, #tpu.memory_space<smem>>
    %402 = arith.index_cast %401 : i32 to index
    %c0_108 = arith.constant 0 : index
    %403 = vector.load %arg3[%402, %c0_108] : memref<64x128xf32, #tpu.memory_space<vmem>>, vector<1x128xf32>
    %404 = arith.addf %397, %403 : vector<1x128xf32>
    %c7_i32_109 = arith.constant 7 : i32
    %405 = arith.addi %3, %c7_i32_109 : i32
    %406 = arith.addi %354, %405 : i32
    %407 = arith.index_cast %406 : i32 to index
    %408 = memref.load %arg2[%407] : memref<512xi32, #tpu.memory_space<smem>>
    %409 = arith.index_cast %408 : i32 to index
    %c0_110 = arith.constant 0 : index
    %410 = vector.load %arg3[%409, %c0_110] : memref<64x128xf32, #tpu.memory_space<vmem>>, vector<1x128xf32>
    %411 = arith.addf %404, %410 : vector<1x128xf32>
    %c8_i32_111 = arith.constant 8 : i32
    %412 = arith.addi %3, %c8_i32_111 : i32
    %413 = arith.addi %354, %412 : i32
    %414 = arith.index_cast %413 : i32 to index
    %415 = memref.load %arg2[%414] : memref<512xi32, #tpu.memory_space<smem>>
    %416 = arith.index_cast %415 : i32 to index
    %c0_112 = arith.constant 0 : index
    %417 = vector.load %arg3[%416, %c0_112] : memref<64x128xf32, #tpu.memory_space<vmem>>, vector<1x128xf32>
    %418 = arith.addf %411, %417 : vector<1x128xf32>
    %c9_i32_113 = arith.constant 9 : i32
    %419 = arith.addi %3, %c9_i32_113 : i32
    %420 = arith.addi %354, %419 : i32
    %421 = arith.index_cast %420 : i32 to index
    %422 = memref.load %arg2[%421] : memref<512xi32, #tpu.memory_space<smem>>
    %423 = arith.index_cast %422 : i32 to index
    %c0_114 = arith.constant 0 : index
    %424 = vector.load %arg3[%423, %c0_114] : memref<64x128xf32, #tpu.memory_space<vmem>>, vector<1x128xf32>
    %425 = arith.addf %418, %424 : vector<1x128xf32>
    %c10_i32_115 = arith.constant 10 : i32
    %426 = arith.addi %3, %c10_i32_115 : i32
    %427 = arith.addi %354, %426 : i32
    %428 = arith.index_cast %427 : i32 to index
    %429 = memref.load %arg2[%428] : memref<512xi32, #tpu.memory_space<smem>>
    %430 = arith.index_cast %429 : i32 to index
    %c0_116 = arith.constant 0 : index
    %431 = vector.load %arg3[%430, %c0_116] : memref<64x128xf32, #tpu.memory_space<vmem>>, vector<1x128xf32>
    %432 = arith.addf %425, %431 : vector<1x128xf32>
    %c11_i32_117 = arith.constant 11 : i32
    %433 = arith.addi %3, %c11_i32_117 : i32
    %434 = arith.addi %354, %433 : i32
    %435 = arith.index_cast %434 : i32 to index
    %436 = memref.load %arg2[%435] : memref<512xi32, #tpu.memory_space<smem>>
    %437 = arith.index_cast %436 : i32 to index
    %c0_118 = arith.constant 0 : index
    %438 = vector.load %arg3[%437, %c0_118] : memref<64x128xf32, #tpu.memory_space<vmem>>, vector<1x128xf32>
    %439 = arith.addf %432, %438 : vector<1x128xf32>
    %c12_i32_119 = arith.constant 12 : i32
    %440 = arith.addi %3, %c12_i32_119 : i32
    %441 = arith.addi %354, %440 : i32
    %442 = arith.index_cast %441 : i32 to index
    %443 = memref.load %arg2[%442] : memref<512xi32, #tpu.memory_space<smem>>
    %444 = arith.index_cast %443 : i32 to index
    %c0_120 = arith.constant 0 : index
    %445 = vector.load %arg3[%444, %c0_120] : memref<64x128xf32, #tpu.memory_space<vmem>>, vector<1x128xf32>
    %446 = arith.addf %439, %445 : vector<1x128xf32>
    %c13_i32_121 = arith.constant 13 : i32
    %447 = arith.addi %3, %c13_i32_121 : i32
    %448 = arith.addi %354, %447 : i32
    %449 = arith.index_cast %448 : i32 to index
    %450 = memref.load %arg2[%449] : memref<512xi32, #tpu.memory_space<smem>>
    %451 = arith.index_cast %450 : i32 to index
    %c0_122 = arith.constant 0 : index
    %452 = vector.load %arg3[%451, %c0_122] : memref<64x128xf32, #tpu.memory_space<vmem>>, vector<1x128xf32>
    %453 = arith.addf %446, %452 : vector<1x128xf32>
    %c14_i32_123 = arith.constant 14 : i32
    %454 = arith.addi %3, %c14_i32_123 : i32
    %455 = arith.addi %354, %454 : i32
    %456 = arith.index_cast %455 : i32 to index
    %457 = memref.load %arg2[%456] : memref<512xi32, #tpu.memory_space<smem>>
    %458 = arith.index_cast %457 : i32 to index
    %c0_124 = arith.constant 0 : index
    %459 = vector.load %arg3[%458, %c0_124] : memref<64x128xf32, #tpu.memory_space<vmem>>, vector<1x128xf32>
    %460 = arith.addf %453, %459 : vector<1x128xf32>
    %c15_i32_125 = arith.constant 15 : i32
    %461 = arith.addi %3, %c15_i32_125 : i32
    %462 = arith.addi %354, %461 : i32
    %463 = arith.index_cast %462 : i32 to index
    %464 = memref.load %arg2[%463] : memref<512xi32, #tpu.memory_space<smem>>
    %465 = arith.index_cast %464 : i32 to index
    %c0_126 = arith.constant 0 : index
    %466 = vector.load %arg3[%465, %c0_126] : memref<64x128xf32, #tpu.memory_space<vmem>>, vector<1x128xf32>
    %467 = arith.addf %460, %466 : vector<1x128xf32>
    %c8_i32_127 = arith.constant 8 : i32
    %468 = arith.muli %arg0, %c8_i32_127 : i32
    %c4_i32_128 = arith.constant 4 : i32
    %469 = arith.addi %468, %c4_i32_128 : i32
    %c32_i32_129 = arith.constant 32 : i32
    %470 = arith.muli %469, %c32_i32_129 : i32
    %cst_130 = arith.constant 0.000000e+00 : f32
    %471 = vector.broadcast %cst_130 : f32 to vector<1x128xf32>
    %c0_i32_131 = arith.constant 0 : i32
    %472 = arith.addi %3, %c0_i32_131 : i32
    %473 = arith.addi %470, %472 : i32
    %474 = arith.index_cast %473 : i32 to index
    %475 = memref.load %arg2[%474] : memref<512xi32, #tpu.memory_space<smem>>
    %476 = arith.index_cast %475 : i32 to index
    %c0_132 = arith.constant 0 : index
    %477 = vector.load %arg3[%476, %c0_132] : memref<64x128xf32, #tpu.memory_space<vmem>>, vector<1x128xf32>
    %478 = arith.addf %471, %477 : vector<1x128xf32>
    %c1_i32_133 = arith.constant 1 : i32
    %479 = arith.addi %3, %c1_i32_133 : i32
    %480 = arith.addi %470, %479 : i32
    %481 = arith.index_cast %480 : i32 to index
    %482 = memref.load %arg2[%481] : memref<512xi32, #tpu.memory_space<smem>>
    %483 = arith.index_cast %482 : i32 to index
    %c0_134 = arith.constant 0 : index
    %484 = vector.load %arg3[%483, %c0_134] : memref<64x128xf32, #tpu.memory_space<vmem>>, vector<1x128xf32>
    %485 = arith.addf %478, %484 : vector<1x128xf32>
    %c2_i32_135 = arith.constant 2 : i32
    %486 = arith.addi %3, %c2_i32_135 : i32
    %487 = arith.addi %470, %486 : i32
    %488 = arith.index_cast %487 : i32 to index
    %489 = memref.load %arg2[%488] : memref<512xi32, #tpu.memory_space<smem>>
    %490 = arith.index_cast %489 : i32 to index
    %c0_136 = arith.constant 0 : index
    %491 = vector.load %arg3[%490, %c0_136] : memref<64x128xf32, #tpu.memory_space<vmem>>, vector<1x128xf32>
    %492 = arith.addf %485, %491 : vector<1x128xf32>
    %c3_i32_137 = arith.constant 3 : i32
    %493 = arith.addi %3, %c3_i32_137 : i32
    %494 = arith.addi %470, %493 : i32
    %495 = arith.index_cast %494 : i32 to index
    %496 = memref.load %arg2[%495] : memref<512xi32, #tpu.memory_space<smem>>
    %497 = arith.index_cast %496 : i32 to index
    %c0_138 = arith.constant 0 : index
    %498 = vector.load %arg3[%497, %c0_138] : memref<64x128xf32, #tpu.memory_space<vmem>>, vector<1x128xf32>
    %499 = arith.addf %492, %498 : vector<1x128xf32>
    %c4_i32_139 = arith.constant 4 : i32
    %500 = arith.addi %3, %c4_i32_139 : i32
    %501 = arith.addi %470, %500 : i32
    %502 = arith.index_cast %501 : i32 to index
    %503 = memref.load %arg2[%502] : memref<512xi32, #tpu.memory_space<smem>>
    %504 = arith.index_cast %503 : i32 to index
    %c0_140 = arith.constant 0 : index
    %505 = vector.load %arg3[%504, %c0_140] : memref<64x128xf32, #tpu.memory_space<vmem>>, vector<1x128xf32>
    %506 = arith.addf %499, %505 : vector<1x128xf32>
    %c5_i32_141 = arith.constant 5 : i32
    %507 = arith.addi %3, %c5_i32_141 : i32
    %508 = arith.addi %470, %507 : i32
    %509 = arith.index_cast %508 : i32 to index
    %510 = memref.load %arg2[%509] : memref<512xi32, #tpu.memory_space<smem>>
    %511 = arith.index_cast %510 : i32 to index
    %c0_142 = arith.constant 0 : index
    %512 = vector.load %arg3[%511, %c0_142] : memref<64x128xf32, #tpu.memory_space<vmem>>, vector<1x128xf32>
    %513 = arith.addf %506, %512 : vector<1x128xf32>
    %c6_i32_143 = arith.constant 6 : i32
    %514 = arith.addi %3, %c6_i32_143 : i32
    %515 = arith.addi %470, %514 : i32
    %516 = arith.index_cast %515 : i32 to index
    %517 = memref.load %arg2[%516] : memref<512xi32, #tpu.memory_space<smem>>
    %518 = arith.index_cast %517 : i32 to index
    %c0_144 = arith.constant 0 : index
    %519 = vector.load %arg3[%518, %c0_144] : memref<64x128xf32, #tpu.memory_space<vmem>>, vector<1x128xf32>
    %520 = arith.addf %513, %519 : vector<1x128xf32>
    %c7_i32_145 = arith.constant 7 : i32
    %521 = arith.addi %3, %c7_i32_145 : i32
    %522 = arith.addi %470, %521 : i32
    %523 = arith.index_cast %522 : i32 to index
    %524 = memref.load %arg2[%523] : memref<512xi32, #tpu.memory_space<smem>>
    %525 = arith.index_cast %524 : i32 to index
    %c0_146 = arith.constant 0 : index
    %526 = vector.load %arg3[%525, %c0_146] : memref<64x128xf32, #tpu.memory_space<vmem>>, vector<1x128xf32>
    %527 = arith.addf %520, %526 : vector<1x128xf32>
    %c8_i32_147 = arith.constant 8 : i32
    %528 = arith.addi %3, %c8_i32_147 : i32
    %529 = arith.addi %470, %528 : i32
    %530 = arith.index_cast %529 : i32 to index
    %531 = memref.load %arg2[%530] : memref<512xi32, #tpu.memory_space<smem>>
    %532 = arith.index_cast %531 : i32 to index
    %c0_148 = arith.constant 0 : index
    %533 = vector.load %arg3[%532, %c0_148] : memref<64x128xf32, #tpu.memory_space<vmem>>, vector<1x128xf32>
    %534 = arith.addf %527, %533 : vector<1x128xf32>
    %c9_i32_149 = arith.constant 9 : i32
    %535 = arith.addi %3, %c9_i32_149 : i32
    %536 = arith.addi %470, %535 : i32
    %537 = arith.index_cast %536 : i32 to index
    %538 = memref.load %arg2[%537] : memref<512xi32, #tpu.memory_space<smem>>
    %539 = arith.index_cast %538 : i32 to index
    %c0_150 = arith.constant 0 : index
    %540 = vector.load %arg3[%539, %c0_150] : memref<64x128xf32, #tpu.memory_space<vmem>>, vector<1x128xf32>
    %541 = arith.addf %534, %540 : vector<1x128xf32>
    %c10_i32_151 = arith.constant 10 : i32
    %542 = arith.addi %3, %c10_i32_151 : i32
    %543 = arith.addi %470, %542 : i32
    %544 = arith.index_cast %543 : i32 to index
    %545 = memref.load %arg2[%544] : memref<512xi32, #tpu.memory_space<smem>>
    %546 = arith.index_cast %545 : i32 to index
    %c0_152 = arith.constant 0 : index
    %547 = vector.load %arg3[%546, %c0_152] : memref<64x128xf32, #tpu.memory_space<vmem>>, vector<1x128xf32>
    %548 = arith.addf %541, %547 : vector<1x128xf32>
    %c11_i32_153 = arith.constant 11 : i32
    %549 = arith.addi %3, %c11_i32_153 : i32
    %550 = arith.addi %470, %549 : i32
    %551 = arith.index_cast %550 : i32 to index
    %552 = memref.load %arg2[%551] : memref<512xi32, #tpu.memory_space<smem>>
    %553 = arith.index_cast %552 : i32 to index
    %c0_154 = arith.constant 0 : index
    %554 = vector.load %arg3[%553, %c0_154] : memref<64x128xf32, #tpu.memory_space<vmem>>, vector<1x128xf32>
    %555 = arith.addf %548, %554 : vector<1x128xf32>
    %c12_i32_155 = arith.constant 12 : i32
    %556 = arith.addi %3, %c12_i32_155 : i32
    %557 = arith.addi %470, %556 : i32
    %558 = arith.index_cast %557 : i32 to index
    %559 = memref.load %arg2[%558] : memref<512xi32, #tpu.memory_space<smem>>
    %560 = arith.index_cast %559 : i32 to index
    %c0_156 = arith.constant 0 : index
    %561 = vector.load %arg3[%560, %c0_156] : memref<64x128xf32, #tpu.memory_space<vmem>>, vector<1x128xf32>
    %562 = arith.addf %555, %561 : vector<1x128xf32>
    %c13_i32_157 = arith.constant 13 : i32
    %563 = arith.addi %3, %c13_i32_157 : i32
    %564 = arith.addi %470, %563 : i32
    %565 = arith.index_cast %564 : i32 to index
    %566 = memref.load %arg2[%565] : memref<512xi32, #tpu.memory_space<smem>>
    %567 = arith.index_cast %566 : i32 to index
    %c0_158 = arith.constant 0 : index
    %568 = vector.load %arg3[%567, %c0_158] : memref<64x128xf32, #tpu.memory_space<vmem>>, vector<1x128xf32>
    %569 = arith.addf %562, %568 : vector<1x128xf32>
    %c14_i32_159 = arith.constant 14 : i32
    %570 = arith.addi %3, %c14_i32_159 : i32
    %571 = arith.addi %470, %570 : i32
    %572 = arith.index_cast %571 : i32 to index
    %573 = memref.load %arg2[%572] : memref<512xi32, #tpu.memory_space<smem>>
    %574 = arith.index_cast %573 : i32 to index
    %c0_160 = arith.constant 0 : index
    %575 = vector.load %arg3[%574, %c0_160] : memref<64x128xf32, #tpu.memory_space<vmem>>, vector<1x128xf32>
    %576 = arith.addf %569, %575 : vector<1x128xf32>
    %c15_i32_161 = arith.constant 15 : i32
    %577 = arith.addi %3, %c15_i32_161 : i32
    %578 = arith.addi %470, %577 : i32
    %579 = arith.index_cast %578 : i32 to index
    %580 = memref.load %arg2[%579] : memref<512xi32, #tpu.memory_space<smem>>
    %581 = arith.index_cast %580 : i32 to index
    %c0_162 = arith.constant 0 : index
    %582 = vector.load %arg3[%581, %c0_162] : memref<64x128xf32, #tpu.memory_space<vmem>>, vector<1x128xf32>
    %583 = arith.addf %576, %582 : vector<1x128xf32>
    %c8_i32_163 = arith.constant 8 : i32
    %584 = arith.muli %arg0, %c8_i32_163 : i32
    %c5_i32_164 = arith.constant 5 : i32
    %585 = arith.addi %584, %c5_i32_164 : i32
    %c32_i32_165 = arith.constant 32 : i32
    %586 = arith.muli %585, %c32_i32_165 : i32
    %cst_166 = arith.constant 0.000000e+00 : f32
    %587 = vector.broadcast %cst_166 : f32 to vector<1x128xf32>
    %c0_i32_167 = arith.constant 0 : i32
    %588 = arith.addi %3, %c0_i32_167 : i32
    %589 = arith.addi %586, %588 : i32
    %590 = arith.index_cast %589 : i32 to index
    %591 = memref.load %arg2[%590] : memref<512xi32, #tpu.memory_space<smem>>
    %592 = arith.index_cast %591 : i32 to index
    %c0_168 = arith.constant 0 : index
    %593 = vector.load %arg3[%592, %c0_168] : memref<64x128xf32, #tpu.memory_space<vmem>>, vector<1x128xf32>
    %594 = arith.addf %587, %593 : vector<1x128xf32>
    %c1_i32_169 = arith.constant 1 : i32
    %595 = arith.addi %3, %c1_i32_169 : i32
    %596 = arith.addi %586, %595 : i32
    %597 = arith.index_cast %596 : i32 to index
    %598 = memref.load %arg2[%597] : memref<512xi32, #tpu.memory_space<smem>>
    %599 = arith.index_cast %598 : i32 to index
    %c0_170 = arith.constant 0 : index
    %600 = vector.load %arg3[%599, %c0_170] : memref<64x128xf32, #tpu.memory_space<vmem>>, vector<1x128xf32>
    %601 = arith.addf %594, %600 : vector<1x128xf32>
    %c2_i32_171 = arith.constant 2 : i32
    %602 = arith.addi %3, %c2_i32_171 : i32
    %603 = arith.addi %586, %602 : i32
    %604 = arith.index_cast %603 : i32 to index
    %605 = memref.load %arg2[%604] : memref<512xi32, #tpu.memory_space<smem>>
    %606 = arith.index_cast %605 : i32 to index
    %c0_172 = arith.constant 0 : index
    %607 = vector.load %arg3[%606, %c0_172] : memref<64x128xf32, #tpu.memory_space<vmem>>, vector<1x128xf32>
    %608 = arith.addf %601, %607 : vector<1x128xf32>
    %c3_i32_173 = arith.constant 3 : i32
    %609 = arith.addi %3, %c3_i32_173 : i32
    %610 = arith.addi %586, %609 : i32
    %611 = arith.index_cast %610 : i32 to index
    %612 = memref.load %arg2[%611] : memref<512xi32, #tpu.memory_space<smem>>
    %613 = arith.index_cast %612 : i32 to index
    %c0_174 = arith.constant 0 : index
    %614 = vector.load %arg3[%613, %c0_174] : memref<64x128xf32, #tpu.memory_space<vmem>>, vector<1x128xf32>
    %615 = arith.addf %608, %614 : vector<1x128xf32>
    %c4_i32_175 = arith.constant 4 : i32
    %616 = arith.addi %3, %c4_i32_175 : i32
    %617 = arith.addi %586, %616 : i32
    %618 = arith.index_cast %617 : i32 to index
    %619 = memref.load %arg2[%618] : memref<512xi32, #tpu.memory_space<smem>>
    %620 = arith.index_cast %619 : i32 to index
    %c0_176 = arith.constant 0 : index
    %621 = vector.load %arg3[%620, %c0_176] : memref<64x128xf32, #tpu.memory_space<vmem>>, vector<1x128xf32>
    %622 = arith.addf %615, %621 : vector<1x128xf32>
    %c5_i32_177 = arith.constant 5 : i32
    %623 = arith.addi %3, %c5_i32_177 : i32
    %624 = arith.addi %586, %623 : i32
    %625 = arith.index_cast %624 : i32 to index
    %626 = memref.load %arg2[%625] : memref<512xi32, #tpu.memory_space<smem>>
    %627 = arith.index_cast %626 : i32 to index
    %c0_178 = arith.constant 0 : index
    %628 = vector.load %arg3[%627, %c0_178] : memref<64x128xf32, #tpu.memory_space<vmem>>, vector<1x128xf32>
    %629 = arith.addf %622, %628 : vector<1x128xf32>
    %c6_i32_179 = arith.constant 6 : i32
    %630 = arith.addi %3, %c6_i32_179 : i32
    %631 = arith.addi %586, %630 : i32
    %632 = arith.index_cast %631 : i32 to index
    %633 = memref.load %arg2[%632] : memref<512xi32, #tpu.memory_space<smem>>
    %634 = arith.index_cast %633 : i32 to index
    %c0_180 = arith.constant 0 : index
    %635 = vector.load %arg3[%634, %c0_180] : memref<64x128xf32, #tpu.memory_space<vmem>>, vector<1x128xf32>
    %636 = arith.addf %629, %635 : vector<1x128xf32>
    %c7_i32_181 = arith.constant 7 : i32
    %637 = arith.addi %3, %c7_i32_181 : i32
    %638 = arith.addi %586, %637 : i32
    %639 = arith.index_cast %638 : i32 to index
    %640 = memref.load %arg2[%639] : memref<512xi32, #tpu.memory_space<smem>>
    %641 = arith.index_cast %640 : i32 to index
    %c0_182 = arith.constant 0 : index
    %642 = vector.load %arg3[%641, %c0_182] : memref<64x128xf32, #tpu.memory_space<vmem>>, vector<1x128xf32>
    %643 = arith.addf %636, %642 : vector<1x128xf32>
    %c8_i32_183 = arith.constant 8 : i32
    %644 = arith.addi %3, %c8_i32_183 : i32
    %645 = arith.addi %586, %644 : i32
    %646 = arith.index_cast %645 : i32 to index
    %647 = memref.load %arg2[%646] : memref<512xi32, #tpu.memory_space<smem>>
    %648 = arith.index_cast %647 : i32 to index
    %c0_184 = arith.constant 0 : index
    %649 = vector.load %arg3[%648, %c0_184] : memref<64x128xf32, #tpu.memory_space<vmem>>, vector<1x128xf32>
    %650 = arith.addf %643, %649 : vector<1x128xf32>
    %c9_i32_185 = arith.constant 9 : i32
    %651 = arith.addi %3, %c9_i32_185 : i32
    %652 = arith.addi %586, %651 : i32
    %653 = arith.index_cast %652 : i32 to index
    %654 = memref.load %arg2[%653] : memref<512xi32, #tpu.memory_space<smem>>
    %655 = arith.index_cast %654 : i32 to index
    %c0_186 = arith.constant 0 : index
    %656 = vector.load %arg3[%655, %c0_186] : memref<64x128xf32, #tpu.memory_space<vmem>>, vector<1x128xf32>
    %657 = arith.addf %650, %656 : vector<1x128xf32>
    %c10_i32_187 = arith.constant 10 : i32
    %658 = arith.addi %3, %c10_i32_187 : i32
    %659 = arith.addi %586, %658 : i32
    %660 = arith.index_cast %659 : i32 to index
    %661 = memref.load %arg2[%660] : memref<512xi32, #tpu.memory_space<smem>>
    %662 = arith.index_cast %661 : i32 to index
    %c0_188 = arith.constant 0 : index
    %663 = vector.load %arg3[%662, %c0_188] : memref<64x128xf32, #tpu.memory_space<vmem>>, vector<1x128xf32>
    %664 = arith.addf %657, %663 : vector<1x128xf32>
    %c11_i32_189 = arith.constant 11 : i32
    %665 = arith.addi %3, %c11_i32_189 : i32
    %666 = arith.addi %586, %665 : i32
    %667 = arith.index_cast %666 : i32 to index
    %668 = memref.load %arg2[%667] : memref<512xi32, #tpu.memory_space<smem>>
    %669 = arith.index_cast %668 : i32 to index
    %c0_190 = arith.constant 0 : index
    %670 = vector.load %arg3[%669, %c0_190] : memref<64x128xf32, #tpu.memory_space<vmem>>, vector<1x128xf32>
    %671 = arith.addf %664, %670 : vector<1x128xf32>
    %c12_i32_191 = arith.constant 12 : i32
    %672 = arith.addi %3, %c12_i32_191 : i32
    %673 = arith.addi %586, %672 : i32
    %674 = arith.index_cast %673 : i32 to index
    %675 = memref.load %arg2[%674] : memref<512xi32, #tpu.memory_space<smem>>
    %676 = arith.index_cast %675 : i32 to index
    %c0_192 = arith.constant 0 : index
    %677 = vector.load %arg3[%676, %c0_192] : memref<64x128xf32, #tpu.memory_space<vmem>>, vector<1x128xf32>
    %678 = arith.addf %671, %677 : vector<1x128xf32>
    %c13_i32_193 = arith.constant 13 : i32
    %679 = arith.addi %3, %c13_i32_193 : i32
    %680 = arith.addi %586, %679 : i32
    %681 = arith.index_cast %680 : i32 to index
    %682 = memref.load %arg2[%681] : memref<512xi32, #tpu.memory_space<smem>>
    %683 = arith.index_cast %682 : i32 to index
    %c0_194 = arith.constant 0 : index
    %684 = vector.load %arg3[%683, %c0_194] : memref<64x128xf32, #tpu.memory_space<vmem>>, vector<1x128xf32>
    %685 = arith.addf %678, %684 : vector<1x128xf32>
    %c14_i32_195 = arith.constant 14 : i32
    %686 = arith.addi %3, %c14_i32_195 : i32
    %687 = arith.addi %586, %686 : i32
    %688 = arith.index_cast %687 : i32 to index
    %689 = memref.load %arg2[%688] : memref<512xi32, #tpu.memory_space<smem>>
    %690 = arith.index_cast %689 : i32 to index
    %c0_196 = arith.constant 0 : index
    %691 = vector.load %arg3[%690, %c0_196] : memref<64x128xf32, #tpu.memory_space<vmem>>, vector<1x128xf32>
    %692 = arith.addf %685, %691 : vector<1x128xf32>
    %c15_i32_197 = arith.constant 15 : i32
    %693 = arith.addi %3, %c15_i32_197 : i32
    %694 = arith.addi %586, %693 : i32
    %695 = arith.index_cast %694 : i32 to index
    %696 = memref.load %arg2[%695] : memref<512xi32, #tpu.memory_space<smem>>
    %697 = arith.index_cast %696 : i32 to index
    %c0_198 = arith.constant 0 : index
    %698 = vector.load %arg3[%697, %c0_198] : memref<64x128xf32, #tpu.memory_space<vmem>>, vector<1x128xf32>
    %699 = arith.addf %692, %698 : vector<1x128xf32>
    %c8_i32_199 = arith.constant 8 : i32
    %700 = arith.muli %arg0, %c8_i32_199 : i32
    %c6_i32_200 = arith.constant 6 : i32
    %701 = arith.addi %700, %c6_i32_200 : i32
    %c32_i32_201 = arith.constant 32 : i32
    %702 = arith.muli %701, %c32_i32_201 : i32
    %cst_202 = arith.constant 0.000000e+00 : f32
    %703 = vector.broadcast %cst_202 : f32 to vector<1x128xf32>
    %c0_i32_203 = arith.constant 0 : i32
    %704 = arith.addi %3, %c0_i32_203 : i32
    %705 = arith.addi %702, %704 : i32
    %706 = arith.index_cast %705 : i32 to index
    %707 = memref.load %arg2[%706] : memref<512xi32, #tpu.memory_space<smem>>
    %708 = arith.index_cast %707 : i32 to index
    %c0_204 = arith.constant 0 : index
    %709 = vector.load %arg3[%708, %c0_204] : memref<64x128xf32, #tpu.memory_space<vmem>>, vector<1x128xf32>
    %710 = arith.addf %703, %709 : vector<1x128xf32>
    %c1_i32_205 = arith.constant 1 : i32
    %711 = arith.addi %3, %c1_i32_205 : i32
    %712 = arith.addi %702, %711 : i32
    %713 = arith.index_cast %712 : i32 to index
    %714 = memref.load %arg2[%713] : memref<512xi32, #tpu.memory_space<smem>>
    %715 = arith.index_cast %714 : i32 to index
    %c0_206 = arith.constant 0 : index
    %716 = vector.load %arg3[%715, %c0_206] : memref<64x128xf32, #tpu.memory_space<vmem>>, vector<1x128xf32>
    %717 = arith.addf %710, %716 : vector<1x128xf32>
    %c2_i32_207 = arith.constant 2 : i32
    %718 = arith.addi %3, %c2_i32_207 : i32
    %719 = arith.addi %702, %718 : i32
    %720 = arith.index_cast %719 : i32 to index
    %721 = memref.load %arg2[%720] : memref<512xi32, #tpu.memory_space<smem>>
    %722 = arith.index_cast %721 : i32 to index
    %c0_208 = arith.constant 0 : index
    %723 = vector.load %arg3[%722, %c0_208] : memref<64x128xf32, #tpu.memory_space<vmem>>, vector<1x128xf32>
    %724 = arith.addf %717, %723 : vector<1x128xf32>
    %c3_i32_209 = arith.constant 3 : i32
    %725 = arith.addi %3, %c3_i32_209 : i32
    %726 = arith.addi %702, %725 : i32
    %727 = arith.index_cast %726 : i32 to index
    %728 = memref.load %arg2[%727] : memref<512xi32, #tpu.memory_space<smem>>
    %729 = arith.index_cast %728 : i32 to index
    %c0_210 = arith.constant 0 : index
    %730 = vector.load %arg3[%729, %c0_210] : memref<64x128xf32, #tpu.memory_space<vmem>>, vector<1x128xf32>
    %731 = arith.addf %724, %730 : vector<1x128xf32>
    %c4_i32_211 = arith.constant 4 : i32
    %732 = arith.addi %3, %c4_i32_211 : i32
    %733 = arith.addi %702, %732 : i32
    %734 = arith.index_cast %733 : i32 to index
    %735 = memref.load %arg2[%734] : memref<512xi32, #tpu.memory_space<smem>>
    %736 = arith.index_cast %735 : i32 to index
    %c0_212 = arith.constant 0 : index
    %737 = vector.load %arg3[%736, %c0_212] : memref<64x128xf32, #tpu.memory_space<vmem>>, vector<1x128xf32>
    %738 = arith.addf %731, %737 : vector<1x128xf32>
    %c5_i32_213 = arith.constant 5 : i32
    %739 = arith.addi %3, %c5_i32_213 : i32
    %740 = arith.addi %702, %739 : i32
    %741 = arith.index_cast %740 : i32 to index
    %742 = memref.load %arg2[%741] : memref<512xi32, #tpu.memory_space<smem>>
    %743 = arith.index_cast %742 : i32 to index
    %c0_214 = arith.constant 0 : index
    %744 = vector.load %arg3[%743, %c0_214] : memref<64x128xf32, #tpu.memory_space<vmem>>, vector<1x128xf32>
    %745 = arith.addf %738, %744 : vector<1x128xf32>
    %c6_i32_215 = arith.constant 6 : i32
    %746 = arith.addi %3, %c6_i32_215 : i32
    %747 = arith.addi %702, %746 : i32
    %748 = arith.index_cast %747 : i32 to index
    %749 = memref.load %arg2[%748] : memref<512xi32, #tpu.memory_space<smem>>
    %750 = arith.index_cast %749 : i32 to index
    %c0_216 = arith.constant 0 : index
    %751 = vector.load %arg3[%750, %c0_216] : memref<64x128xf32, #tpu.memory_space<vmem>>, vector<1x128xf32>
    %752 = arith.addf %745, %751 : vector<1x128xf32>
    %c7_i32_217 = arith.constant 7 : i32
    %753 = arith.addi %3, %c7_i32_217 : i32
    %754 = arith.addi %702, %753 : i32
    %755 = arith.index_cast %754 : i32 to index
    %756 = memref.load %arg2[%755] : memref<512xi32, #tpu.memory_space<smem>>
    %757 = arith.index_cast %756 : i32 to index
    %c0_218 = arith.constant 0 : index
    %758 = vector.load %arg3[%757, %c0_218] : memref<64x128xf32, #tpu.memory_space<vmem>>, vector<1x128xf32>
    %759 = arith.addf %752, %758 : vector<1x128xf32>
    %c8_i32_219 = arith.constant 8 : i32
    %760 = arith.addi %3, %c8_i32_219 : i32
    %761 = arith.addi %702, %760 : i32
    %762 = arith.index_cast %761 : i32 to index
    %763 = memref.load %arg2[%762] : memref<512xi32, #tpu.memory_space<smem>>
    %764 = arith.index_cast %763 : i32 to index
    %c0_220 = arith.constant 0 : index
    %765 = vector.load %arg3[%764, %c0_220] : memref<64x128xf32, #tpu.memory_space<vmem>>, vector<1x128xf32>
    %766 = arith.addf %759, %765 : vector<1x128xf32>
    %c9_i32_221 = arith.constant 9 : i32
    %767 = arith.addi %3, %c9_i32_221 : i32
    %768 = arith.addi %702, %767 : i32
    %769 = arith.index_cast %768 : i32 to index
    %770 = memref.load %arg2[%769] : memref<512xi32, #tpu.memory_space<smem>>
    %771 = arith.index_cast %770 : i32 to index
    %c0_222 = arith.constant 0 : index
    %772 = vector.load %arg3[%771, %c0_222] : memref<64x128xf32, #tpu.memory_space<vmem>>, vector<1x128xf32>
    %773 = arith.addf %766, %772 : vector<1x128xf32>
    %c10_i32_223 = arith.constant 10 : i32
    %774 = arith.addi %3, %c10_i32_223 : i32
    %775 = arith.addi %702, %774 : i32
    %776 = arith.index_cast %775 : i32 to index
    %777 = memref.load %arg2[%776] : memref<512xi32, #tpu.memory_space<smem>>
    %778 = arith.index_cast %777 : i32 to index
    %c0_224 = arith.constant 0 : index
    %779 = vector.load %arg3[%778, %c0_224] : memref<64x128xf32, #tpu.memory_space<vmem>>, vector<1x128xf32>
    %780 = arith.addf %773, %779 : vector<1x128xf32>
    %c11_i32_225 = arith.constant 11 : i32
    %781 = arith.addi %3, %c11_i32_225 : i32
    %782 = arith.addi %702, %781 : i32
    %783 = arith.index_cast %782 : i32 to index
    %784 = memref.load %arg2[%783] : memref<512xi32, #tpu.memory_space<smem>>
    %785 = arith.index_cast %784 : i32 to index
    %c0_226 = arith.constant 0 : index
    %786 = vector.load %arg3[%785, %c0_226] : memref<64x128xf32, #tpu.memory_space<vmem>>, vector<1x128xf32>
    %787 = arith.addf %780, %786 : vector<1x128xf32>
    %c12_i32_227 = arith.constant 12 : i32
    %788 = arith.addi %3, %c12_i32_227 : i32
    %789 = arith.addi %702, %788 : i32
    %790 = arith.index_cast %789 : i32 to index
    %791 = memref.load %arg2[%790] : memref<512xi32, #tpu.memory_space<smem>>
    %792 = arith.index_cast %791 : i32 to index
    %c0_228 = arith.constant 0 : index
    %793 = vector.load %arg3[%792, %c0_228] : memref<64x128xf32, #tpu.memory_space<vmem>>, vector<1x128xf32>
    %794 = arith.addf %787, %793 : vector<1x128xf32>
    %c13_i32_229 = arith.constant 13 : i32
    %795 = arith.addi %3, %c13_i32_229 : i32
    %796 = arith.addi %702, %795 : i32
    %797 = arith.index_cast %796 : i32 to index
    %798 = memref.load %arg2[%797] : memref<512xi32, #tpu.memory_space<smem>>
    %799 = arith.index_cast %798 : i32 to index
    %c0_230 = arith.constant 0 : index
    %800 = vector.load %arg3[%799, %c0_230] : memref<64x128xf32, #tpu.memory_space<vmem>>, vector<1x128xf32>
    %801 = arith.addf %794, %800 : vector<1x128xf32>
    %c14_i32_231 = arith.constant 14 : i32
    %802 = arith.addi %3, %c14_i32_231 : i32
    %803 = arith.addi %702, %802 : i32
    %804 = arith.index_cast %803 : i32 to index
    %805 = memref.load %arg2[%804] : memref<512xi32, #tpu.memory_space<smem>>
    %806 = arith.index_cast %805 : i32 to index
    %c0_232 = arith.constant 0 : index
    %807 = vector.load %arg3[%806, %c0_232] : memref<64x128xf32, #tpu.memory_space<vmem>>, vector<1x128xf32>
    %808 = arith.addf %801, %807 : vector<1x128xf32>
    %c15_i32_233 = arith.constant 15 : i32
    %809 = arith.addi %3, %c15_i32_233 : i32
    %810 = arith.addi %702, %809 : i32
    %811 = arith.index_cast %810 : i32 to index
    %812 = memref.load %arg2[%811] : memref<512xi32, #tpu.memory_space<smem>>
    %813 = arith.index_cast %812 : i32 to index
    %c0_234 = arith.constant 0 : index
    %814 = vector.load %arg3[%813, %c0_234] : memref<64x128xf32, #tpu.memory_space<vmem>>, vector<1x128xf32>
    %815 = arith.addf %808, %814 : vector<1x128xf32>
    %c8_i32_235 = arith.constant 8 : i32
    %816 = arith.muli %arg0, %c8_i32_235 : i32
    %c7_i32_236 = arith.constant 7 : i32
    %817 = arith.addi %816, %c7_i32_236 : i32
    %c32_i32_237 = arith.constant 32 : i32
    %818 = arith.muli %817, %c32_i32_237 : i32
    %cst_238 = arith.constant 0.000000e+00 : f32
    %819 = vector.broadcast %cst_238 : f32 to vector<1x128xf32>
    %c0_i32_239 = arith.constant 0 : i32
    %820 = arith.addi %3, %c0_i32_239 : i32
    %821 = arith.addi %818, %820 : i32
    %822 = arith.index_cast %821 : i32 to index
    %823 = memref.load %arg2[%822] : memref<512xi32, #tpu.memory_space<smem>>
    %824 = arith.index_cast %823 : i32 to index
    %c0_240 = arith.constant 0 : index
    %825 = vector.load %arg3[%824, %c0_240] : memref<64x128xf32, #tpu.memory_space<vmem>>, vector<1x128xf32>
    %826 = arith.addf %819, %825 : vector<1x128xf32>
    %c1_i32_241 = arith.constant 1 : i32
    %827 = arith.addi %3, %c1_i32_241 : i32
    %828 = arith.addi %818, %827 : i32
    %829 = arith.index_cast %828 : i32 to index
    %830 = memref.load %arg2[%829] : memref<512xi32, #tpu.memory_space<smem>>
    %831 = arith.index_cast %830 : i32 to index
    %c0_242 = arith.constant 0 : index
    %832 = vector.load %arg3[%831, %c0_242] : memref<64x128xf32, #tpu.memory_space<vmem>>, vector<1x128xf32>
    %833 = arith.addf %826, %832 : vector<1x128xf32>
    %c2_i32_243 = arith.constant 2 : i32
    %834 = arith.addi %3, %c2_i32_243 : i32
    %835 = arith.addi %818, %834 : i32
    %836 = arith.index_cast %835 : i32 to index
    %837 = memref.load %arg2[%836] : memref<512xi32, #tpu.memory_space<smem>>
    %838 = arith.index_cast %837 : i32 to index
    %c0_244 = arith.constant 0 : index
    %839 = vector.load %arg3[%838, %c0_244] : memref<64x128xf32, #tpu.memory_space<vmem>>, vector<1x128xf32>
    %840 = arith.addf %833, %839 : vector<1x128xf32>
    %c3_i32_245 = arith.constant 3 : i32
    %841 = arith.addi %3, %c3_i32_245 : i32
    %842 = arith.addi %818, %841 : i32
    %843 = arith.index_cast %842 : i32 to index
    %844 = memref.load %arg2[%843] : memref<512xi32, #tpu.memory_space<smem>>
    %845 = arith.index_cast %844 : i32 to index
    %c0_246 = arith.constant 0 : index
    %846 = vector.load %arg3[%845, %c0_246] : memref<64x128xf32, #tpu.memory_space<vmem>>, vector<1x128xf32>
    %847 = arith.addf %840, %846 : vector<1x128xf32>
    %c4_i32_247 = arith.constant 4 : i32
    %848 = arith.addi %3, %c4_i32_247 : i32
    %849 = arith.addi %818, %848 : i32
    %850 = arith.index_cast %849 : i32 to index
    %851 = memref.load %arg2[%850] : memref<512xi32, #tpu.memory_space<smem>>
    %852 = arith.index_cast %851 : i32 to index
    %c0_248 = arith.constant 0 : index
    %853 = vector.load %arg3[%852, %c0_248] : memref<64x128xf32, #tpu.memory_space<vmem>>, vector<1x128xf32>
    %854 = arith.addf %847, %853 : vector<1x128xf32>
    %c5_i32_249 = arith.constant 5 : i32
    %855 = arith.addi %3, %c5_i32_249 : i32
    %856 = arith.addi %818, %855 : i32
    %857 = arith.index_cast %856 : i32 to index
    %858 = memref.load %arg2[%857] : memref<512xi32, #tpu.memory_space<smem>>
    %859 = arith.index_cast %858 : i32 to index
    %c0_250 = arith.constant 0 : index
    %860 = vector.load %arg3[%859, %c0_250] : memref<64x128xf32, #tpu.memory_space<vmem>>, vector<1x128xf32>
    %861 = arith.addf %854, %860 : vector<1x128xf32>
    %c6_i32_251 = arith.constant 6 : i32
    %862 = arith.addi %3, %c6_i32_251 : i32
    %863 = arith.addi %818, %862 : i32
    %864 = arith.index_cast %863 : i32 to index
    %865 = memref.load %arg2[%864] : memref<512xi32, #tpu.memory_space<smem>>
    %866 = arith.index_cast %865 : i32 to index
    %c0_252 = arith.constant 0 : index
    %867 = vector.load %arg3[%866, %c0_252] : memref<64x128xf32, #tpu.memory_space<vmem>>, vector<1x128xf32>
    %868 = arith.addf %861, %867 : vector<1x128xf32>
    %c7_i32_253 = arith.constant 7 : i32
    %869 = arith.addi %3, %c7_i32_253 : i32
    %870 = arith.addi %818, %869 : i32
    %871 = arith.index_cast %870 : i32 to index
    %872 = memref.load %arg2[%871] : memref<512xi32, #tpu.memory_space<smem>>
    %873 = arith.index_cast %872 : i32 to index
    %c0_254 = arith.constant 0 : index
    %874 = vector.load %arg3[%873, %c0_254] : memref<64x128xf32, #tpu.memory_space<vmem>>, vector<1x128xf32>
    %875 = arith.addf %868, %874 : vector<1x128xf32>
    %c8_i32_255 = arith.constant 8 : i32
    %876 = arith.addi %3, %c8_i32_255 : i32
    %877 = arith.addi %818, %876 : i32
    %878 = arith.index_cast %877 : i32 to index
    %879 = memref.load %arg2[%878] : memref<512xi32, #tpu.memory_space<smem>>
    %880 = arith.index_cast %879 : i32 to index
    %c0_256 = arith.constant 0 : index
    %881 = vector.load %arg3[%880, %c0_256] : memref<64x128xf32, #tpu.memory_space<vmem>>, vector<1x128xf32>
    %882 = arith.addf %875, %881 : vector<1x128xf32>
    %c9_i32_257 = arith.constant 9 : i32
    %883 = arith.addi %3, %c9_i32_257 : i32
    %884 = arith.addi %818, %883 : i32
    %885 = arith.index_cast %884 : i32 to index
    %886 = memref.load %arg2[%885] : memref<512xi32, #tpu.memory_space<smem>>
    %887 = arith.index_cast %886 : i32 to index
    %c0_258 = arith.constant 0 : index
    %888 = vector.load %arg3[%887, %c0_258] : memref<64x128xf32, #tpu.memory_space<vmem>>, vector<1x128xf32>
    %889 = arith.addf %882, %888 : vector<1x128xf32>
    %c10_i32_259 = arith.constant 10 : i32
    %890 = arith.addi %3, %c10_i32_259 : i32
    %891 = arith.addi %818, %890 : i32
    %892 = arith.index_cast %891 : i32 to index
    %893 = memref.load %arg2[%892] : memref<512xi32, #tpu.memory_space<smem>>
    %894 = arith.index_cast %893 : i32 to index
    %c0_260 = arith.constant 0 : index
    %895 = vector.load %arg3[%894, %c0_260] : memref<64x128xf32, #tpu.memory_space<vmem>>, vector<1x128xf32>
    %896 = arith.addf %889, %895 : vector<1x128xf32>
    %c11_i32_261 = arith.constant 11 : i32
    %897 = arith.addi %3, %c11_i32_261 : i32
    %898 = arith.addi %818, %897 : i32
    %899 = arith.index_cast %898 : i32 to index
    %900 = memref.load %arg2[%899] : memref<512xi32, #tpu.memory_space<smem>>
    %901 = arith.index_cast %900 : i32 to index
    %c0_262 = arith.constant 0 : index
    %902 = vector.load %arg3[%901, %c0_262] : memref<64x128xf32, #tpu.memory_space<vmem>>, vector<1x128xf32>
    %903 = arith.addf %896, %902 : vector<1x128xf32>
    %c12_i32_263 = arith.constant 12 : i32
    %904 = arith.addi %3, %c12_i32_263 : i32
    %905 = arith.addi %818, %904 : i32
    %906 = arith.index_cast %905 : i32 to index
    %907 = memref.load %arg2[%906] : memref<512xi32, #tpu.memory_space<smem>>
    %908 = arith.index_cast %907 : i32 to index
    %c0_264 = arith.constant 0 : index
    %909 = vector.load %arg3[%908, %c0_264] : memref<64x128xf32, #tpu.memory_space<vmem>>, vector<1x128xf32>
    %910 = arith.addf %903, %909 : vector<1x128xf32>
    %c13_i32_265 = arith.constant 13 : i32
    %911 = arith.addi %3, %c13_i32_265 : i32
    %912 = arith.addi %818, %911 : i32
    %913 = arith.index_cast %912 : i32 to index
    %914 = memref.load %arg2[%913] : memref<512xi32, #tpu.memory_space<smem>>
    %915 = arith.index_cast %914 : i32 to index
    %c0_266 = arith.constant 0 : index
    %916 = vector.load %arg3[%915, %c0_266] : memref<64x128xf32, #tpu.memory_space<vmem>>, vector<1x128xf32>
    %917 = arith.addf %910, %916 : vector<1x128xf32>
    %c14_i32_267 = arith.constant 14 : i32
    %918 = arith.addi %3, %c14_i32_267 : i32
    %919 = arith.addi %818, %918 : i32
    %920 = arith.index_cast %919 : i32 to index
    %921 = memref.load %arg2[%920] : memref<512xi32, #tpu.memory_space<smem>>
    %922 = arith.index_cast %921 : i32 to index
    %c0_268 = arith.constant 0 : index
    %923 = vector.load %arg3[%922, %c0_268] : memref<64x128xf32, #tpu.memory_space<vmem>>, vector<1x128xf32>
    %924 = arith.addf %917, %923 : vector<1x128xf32>
    %c15_i32_269 = arith.constant 15 : i32
    %925 = arith.addi %3, %c15_i32_269 : i32
    %926 = arith.addi %818, %925 : i32
    %927 = arith.index_cast %926 : i32 to index
    %928 = memref.load %arg2[%927] : memref<512xi32, #tpu.memory_space<smem>>
    %929 = arith.index_cast %928 : i32 to index
    %c0_270 = arith.constant 0 : index
    %930 = vector.load %arg3[%929, %c0_270] : memref<64x128xf32, #tpu.memory_space<vmem>>, vector<1x128xf32>
    %931 = arith.addf %924, %930 : vector<1x128xf32>
    %c0_271 = arith.constant 0 : index
    %c0_272 = arith.constant 0 : index
    %932 = vector.load %arg7[%c0_271, %c0_272] : memref<8x128xf32, #tpu.memory_space<vmem>>, vector<8x128xf32>
    %933 = tpu.concatenate %119, %235, %351, %467, %583, %699, %815, %931 in 0 : vector<1x128xf32>, vector<1x128xf32>, vector<1x128xf32>, vector<1x128xf32>, vector<1x128xf32>, vector<1x128xf32>, vector<1x128xf32>, vector<1x128xf32> -> vector<8x128xf32>
    %934 = arith.addf %932, %933 : vector<8x128xf32>
    %c0_273 = arith.constant 0 : index
    %c0_274 = arith.constant 0 : index
    %935 = vector.load %arg7[%c0_273, %c0_274] : memref<8x128xf32, #tpu.memory_space<vmem>>, vector<8x128xf32>
    tpu.vector_store %arg7[%c0_273, %c0_274], %934 {strides = array<i32>} : memref<8x128xf32, #tpu.memory_space<vmem>>, vector<8x128xf32>,
    %c1_i32_275 = arith.constant 1 : i32
    %936 = arith.cmpi eq, %arg1, %c1_i32_275 : i32
    %937 = arith.extui %936 : i1 to i32
    %c0_i32_276 = arith.constant 0 : i32
    %938 = arith.cmpi ne, %937, %c0_i32_276 : i32
    scf.if %938 {
      %c0_277 = arith.constant 0 : index
      %c0_278 = arith.constant 0 : index
      %939 = vector.load %arg7[%c0_277, %c0_278] : memref<8x128xf32, #tpu.memory_space<vmem>>, vector<8x128xf32>
      %c0_279 = arith.constant 0 : index
      %c0_280 = arith.constant 0 : index
      %940 = vector.load %arg4[%c0_279, %c0_280] : memref<128x128xf32, #tpu.memory_space<vmem>>, vector<128x128xf32>
      %cst_281 = arith.constant dense<0.000000e+00> : vector<8x128xf32>
      %941 = tpu.matmul %939, %940, %cst_281 {dimension_numbers = #tpu.dot_dimension_numbers<[1], [0], [0], [1], [0, 0, 1, 1], [], []>} : vector<8x128xf32>, vector<128x128xf32>, vector<8x128xf32> -> vector<8x128xf32>
      %cst_282 = arith.constant 3.125000e-02 : f32
      %942 = vector.broadcast %cst_282 : f32 to vector<8x128xf32>
      %943 = arith.mulf %941, %942 : vector<8x128xf32>
      %c0_283 = arith.constant 0 : index
      %c0_284 = arith.constant 0 : index
      %944 = vector.load %arg5[%c0_283, %c0_284] : memref<1x128xf32, #tpu.memory_space<vmem>>, vector<1x128xf32>
      %945 = vector.broadcast %944 : vector<1x128xf32> to vector<8x128xf32>
      %946 = arith.addf %943, %945 : vector<8x128xf32>
      %c0_285 = arith.constant 0 : index
      %c0_286 = arith.constant 0 : index
      %947 = vector.load %arg6[%c0_285, %c0_286] : memref<8x128xf32, #tpu.memory_space<vmem>>, vector<8x128xf32>
      tpu.vector_store %arg6[%c0_285, %c0_286], %946 {strides = array<i32>} : memref<8x128xf32, #tpu.memory_space<vmem>>, vector<8x128xf32>,
    } else {
    }
    return
  }
  func.func @transform_0(%arg0: i32, %arg1: i32, %arg2: memref<512xi32, #tpu.memory_space<smem>>) -> (i32, i32) {
    %c0_i32 = arith.constant 0 : i32
    %c0_i32_0 = arith.constant 0 : i32
    %c0_i32_1 = arith.constant 0 : i32
    return %c0_i32, %c0_i32_0 : i32, i32
  }
  func.func @transform_1(%arg0: i32, %arg1: i32, %arg2: memref<512xi32, #tpu.memory_space<smem>>) -> (i32, i32) {
    %c0_i32 = arith.constant 0 : i32
    %c0_i32_0 = arith.constant 0 : i32
    %c0_i32_1 = arith.constant 0 : i32
    return %c0_i32, %c0_i32_0 : i32, i32
  }
  func.func @transform_2(%arg0: i32, %arg1: i32, %arg2: memref<512xi32, #tpu.memory_space<smem>>) -> (i32, i32) {
    %c0_i32 = arith.constant 0 : i32
    %c0_i32_0 = arith.constant 0 : i32
    %c0_i32_1 = arith.constant 0 : i32
    return %c0_i32, %c0_i32_0 : i32, i32
  }
  func.func @transform_3(%arg0: i32, %arg1: i32, %arg2: memref<512xi32, #tpu.memory_space<smem>>) -> (i32, i32) {
    %c0_i32 = arith.constant 0 : i32
    %c0_i32_0 = arith.constant 0 : i32
    return %arg0, %c0_i32 : i32, i32
  }
}

</mosaic_0001>

<bundles_post_ra>
// kernel: tpu_custom_call.1
= control target key start
LH: loop header
LB: loop body
LE: loop exit
PB: predicated region body
PF: predicated region fallthrough
CT: control target
= control target key end

     0   :  { %s1595_s15 = smov [#allocation4]   ;;  %s2518_s0 = inlined_call_operand.hbm [shape: s32[512], index: 0, kind: input, shape index: {}]   ;;  %s2519_s1 = inlined_call_operand.hbm [shape: f32[64,128], index: 1, kind: input, shape index: {}]   ;;  %s2520_s2 = inlined_call_operand.hbm [shape: f32[128,128], index: 2, kind: input, shape index: {}]   ;;  %s2521_s3 = inlined_call_operand.vmem [shape: f32[1,128], index: 3, kind: input, shape index: {}]   ;;  %s2522_s4 = inlined_call_operand.hbm [shape: f32[16,128], index: 4, kind: output, shape index: {}]  }
   0x1   :  { %2569 = sst [smem:[#allocation121_spill]] %s2519_s1 }
   0x2   :  { %2570 = sst [smem:[#allocation122_spill]] %s2520_s2 }
   0x3   :  { %2571 = sst [smem:[#allocation123_spill]] %s2521_s3 }
   0x4   :  { %2572 = sst [smem:[#allocation124_spill]] %s2522_s4 }
   0x5   :  { %10 = dma.hbm_to_smem %s2518_s0, 64, %s1595_s15, [#allocation3] }
   0x6   :  { %1549 = dma.done.wait [#allocation3], 64 }
   0x7   :  { %1550 = vsyncadd [#allocation3], 4294967232 }
   0x8   :  { %12 = sfence }
   0x9   :  { %13 = vsyncpa [#allocation6], 0 }
   0xa   :  { %14 = vsyncpa [#allocation9], 0 }
   0xb   :  { %15 = vsyncpa [#allocation7], 0 }
   0xc   :  { %17 = vsyncpa [#allocation7 + $0x1], 0  ;;  %s1632_s18 = smov 0   ;;  %s1634_s19 = smov 0  }
   0xd   :  { %s1636_s20 = smov 0   ;;  %s1638_s21 = smov 0  }
   0xe   :  { %s1640_s22 = smov 0   ;;  %s1642_s23 = smov 0  }
   0xf   :  { %s1644_s0 = smov 0   ;;  %s1646_s24 = smov 0  }
  0x10 LB: > { %2573 = sst [smem:[#allocation15_spill]] %s1565_s18  ;;  %s1234_s25 = sadd.s32 4294967295, %s1593_s24   ;;  %s1593_s24 = sphi %s1646_s24, %s23_s24   ;;  %s1589_s0 = sphi %s1644_s0, %s2834_s0   ;;  %s1585_s23 = sphi %s1642_s23, %s2833_s23   ;;  %s1581_s22 = sphi %s1640_s22, %s2832_s22   ;;  %s1577_s21 = sphi %s1638_s21, %s2831_s21   ;;  %s1573_s20 = sphi %s1636_s20, %s2830_s20   ;;  %s1569_s19 = sphi %s1634_s19, %s2829_s19   ;;  %s1565_s18 = sphi %s1632_s18, %s2828_s18  }
  0x11   : > { %2574 = sst [smem:[#allocation16_spill]] %s1569_s19  ;;  %s1235_s26 = sadd.s32 4294967294, %s1593_s24  }
  0x12   : > { %2575 = sst [smem:[#allocation17_spill]] %s1573_s20  ;;  %s32_s27 = sadd.s32 1, %s1585_s23 }
  0x13   : > { %2576 = sst [smem:[#allocation18_spill]] %s1577_s21  ;;  %s35_s28 = sadd.s32 1, %s1589_s0 }
  0x14   : > { %2577 = sst [smem:[#allocation19_spill]] %s1581_s22  ;;  %p33_p0 = scmp.ge.s32.totalorder %s32_s27, 2 }
  0x15   : > { %2578 = sst [smem:[#allocation20_spill]] %s1585_s23  ;;  %s105_s29 = sadd.s32 1, %s1573_s20 }
  0x16   : > { %2579 = sst [smem:[#allocation21_spill]] %s1589_s0  ;;  %p115_p1 = scmp.ne.s32.totalorder %s1573_s20, %s1569_s19 }
  0x17   : > { %2580 = sst [smem:[#allocation22_spill]] %s1593_s24  ;;  %p116_p2 = scmp.eq.s32.totalorder %s1234_s25, 3 }
  0x18   : > { %s2836_s27 = smov (%p33_p0, %s32_s27), 0  ;;  %s2838_s28 = smov (!%p33_p0, %s35_s28), %s1589_s0 }
  0x19   : > { %2581 = sst [smem:[#allocation23_spill]] %s2836_s27  ;;  %p1682_p3 = por %p116_p2, %p115_p1 }
  0x1a   : > { %p121_p4 = scmp.ne.s32.totalorder %s1569_s19, %s1565_s18  ;;  %p37_p5 = scmp.ge.s32.totalorder %s2838_s28, 2 }
  0x1b   : > { %s2582_s30 = scalar_select %p1682_p3, 1, 0 }
  0x1c   : > { %p122_p6 = scmp.eq.s32.totalorder %s1235_s26, 3  ;;  %p1236_p7 = scmp.ge.s32.totalorder %s1593_s24, 1 }
  0x1d   : > { %2583 = sst [smem:[#allocation24_spill]] %s2582_s30  ;;  %p129_p8 = scmp.lt.s32.totalorder %s1593_s24, 5 }
  0x1e   : > { %s2840_s28 = smov (%p37_p5, %s2838_s28), 0  ;;  %p1692_p9 = por %p122_p6, %p121_p4 }
  0x1f   : > { %2584 = sst [smem:[#allocation25_spill]] %s2840_s28  ;;  %p1696_p10 = pnand %p1236_p7, %p129_p8 }
  0x20   : > { %s2585_s5 = scalar_select %p1692_p9, 1, 0 }
  0x21   : > { %s102_s7 = ssub.s32 %s1589_s0, %s2840_s28  ;;  %p1343_p12 = pneg %p1696_p10 }
  0x22   : > { %2586 = sst [smem:[#allocation26_spill]] %s2585_s5  ;;  %p103_p11 = scmp.eq.s32.totalorder %s102_s7, 0 }
  0x23   : > { %p1704_p13 = scmp.eq.s32.totalorder %s1234_s25, 0  ;;  %s1596_s10 = smov [#allocation5]  }
  0x24   : > { %s1709_s9 = scalar_select %p103_p11, %s1573_s20, %s105_s29  }
  0x25   : > { %s141_s11 = sshll.u32 %s1596_s10, 4  ;;  %p1713_p0 = pnand %p1704_p13, %p1343_p12  ;;  %s142_s11 = int_to_ptr.vmem [resolvable:$true] %s141_s11 }
  0x26   : > { %2589 = sst [smem:[#allocation27_spill]] %s1709_s9  ;;  %s1450_s13 = scalar_lea.vmem %s142_s11, 1024 }
  0x27   : > { %p1441_p1 = pneg %p1713_p0  ;;  %p1451_p2 = scmp.ne.s32.totalorder %s142_s11, %s1450_s13 }
  0x28   : > { %p1458_p6 = scmp.lt.s32.totalorder %s142_s11, %s142_s11  ;;  %p1459_p7 = scmp.lt.s32.totalorder %s1450_s13, %s1450_s13 }
  0x29   : > { %p1453_p4 = pnand %p1451_p2, %p1441_p1 }
  0x2a   : > { %p1460_p8 = por %p1459_p7, %p1458_p6 }
  0x2b   : > { %p1454_p5 = pneg %p1453_p4 }
  0x2d   : > { %p1461_p11 = pnand %p1460_p8, %p1454_p5 }
  0x2f   : > { %1464 = shalt.err (!%p1461_p11)
}
  0x30   : > { %s1597_s14 = smov 128   ;;  %s1598_s15 = smov 8  }
  0x31   : > { %s2591_s1 = sld [smem:[#allocation121_spill]]  ;;  %s1599_s25 = smov [#allocation8]  }
  0x32   : > { %s154_s26 = sshll.u32 %s1599_s25, 4  ;;  %s155_s26 = int_to_ptr.vmem [resolvable:$true] %s154_s26 }
  0x33   : > { %s1476_s29 = scalar_lea.vmem %s155_s26, 2048  ;;  %p1484_p5 = scmp.lt.s32.totalorder %s155_s26, %s155_s26 }
  0x34   : > { %p1477_p12 = scmp.ne.s32.totalorder %s155_s26, %s1476_s29  ;;  %p1485_p6 = scmp.lt.s32.totalorder %s1476_s29, %s1476_s29 }
  0x36   : > { %p1479_p2 = pnand %p1477_p12, %p1441_p1  ;;  %p1486_p7 = por %p1485_p6, %p1484_p5 }
  0x37   : > { %1346 = dma.hbm_to_vmem [thread:$0]  (!%p1713_p0), %s2591_s1, 1024, %s142_s11, [#allocation6], %s1597_s14, %s1597_s14, %s1598_s15  }
  0x38   : > { %p1480_p4 = pneg %p1479_p2 }
  0x3a   : > { %p1487_p8 = pnand %p1486_p7, %p1480_p4 }
  0x3c   : > { %1490 = shalt.err (!%p1487_p8)
}
  0x3d   : > { %s2592_s2 = sld [smem:[#allocation122_spill]] }
  0x3f   : > { %173 = sbr.rel (%p1696_p10) target bundleno = 720 (0x2d0), region = 32 }
  0x43   : > { %1349 = dma.hbm_to_vmem [thread:$0]  (!%p1713_p0), %s2592_s2, 2048, %s155_s26, [#allocation9], %s1597_s14, %s1597_s14, %s1598_s15  }
  0x44   : > { %1552 = dma.done.wait (%p1704_p13), [#allocation6], 1024  }
  0x45   : > { %1554 = vsyncadd (%p1704_p13), [#allocation6], 4294966272 }
  0x46   : > { %1556 = dma.done.wait (%p1704_p13), [#allocation9], 2048  }
  0x47   : > { %1558 = vsyncadd (%p1704_p13), [#allocation9], 4294965248  ;;  %s2523_s11 = sand.u32 1, %s1569_s19   ;;  %p1243_p10 = scmp.ne.s32.totalorder %s1577_s21, 0 }
  0x48   : > { %s1748_s12 = sshll.u32 %s2523_s11, 3 }
  0x49   : > { %2593 = sst [smem:[#allocation28_spill]] %s1748_s12  ;;  %199 = sbr.rel (%p1243_p10) target bundleno = 80 (0x50), region = 44 }
  0x4e   : > { %v1600_v0 = vmov 0.0  }
  0x4f   : > { %200 = vst [vmem:[#allocation2] sm:$0xff] %v1600_v0 }
  0x50 PF: > { %s1753_s13 = sshll.u32 %s1577_s21, 4  ;;  %s1756_s8 = sshll.u32 %s1581_s22, 8  ;;  %vm895_vm0 = vcmask 1040384   ;;  %vm897_vm1 = vcmask 1041408   ;;  %vm899_vm2 = vcmask 1042432   ;;  %vm901_vm3 = vcmask 1043456  }
  0x51   : > { %2594 = sst [smem:[#allocation29_spill]] %s1753_s13  ;;  %s203_s14 = sadd.s32 %s1756_s8, %s1753_s13  ;;  %vm903_vm4 = vcmask 1044480   ;;  %vm905_vm5 = vcmask 1045504   ;;  %vm907_vm6 = vcmask 1046528  }
  0x52   : > { %2595 = sst [smem:[#allocation30_spill]] %s1756_s8  ;;  %s1761_s15 = sadd.s32 1, %s1753_s13 }
  0x53   : > { %2596 = sst [smem:[#allocation31_spill]] %s1761_s15  ;;  %s209_s17 = sadd.s32 %s1756_s8, %s1761_s15 }
  0x54   : > { %s1763_s16 = sld [smem:[#allocation4 + %s203_s14]]  ;;  %s1770_s26 = sadd.s32 2, %s1753_s13 }
  0x55   : > { %s1767_s25 = sld [smem:[#allocation4 + %s209_s17]]  ;;  %s215_s29 = sadd.s32 %s1756_s8, %s1770_s26 }
  0x56   : > { %2599 = sst [smem:[#allocation34_spill]] %s1770_s26  ;;  %s1775_s7 = sadd.s32 3, %s1753_s13 }
  0x57   : > { %2600 = sst [smem:[#allocation35_spill]] %s1775_s7  ;;  %s221_s11 = sadd.s32 %s1756_s8, %s1775_s7 }
  0x58   : > { %s1777_s10 = sld [smem:[#allocation4 + %s215_s29]]  ;;  %s1784_s6 = sadd.s32 4, %s1753_s13 }
  0x59   : > { %s1781_s14 = sld [smem:[#allocation4 + %s221_s11]]  ;;  %s227_s17 = sadd.s32 %s1756_s8, %s1784_s6 }
  0x5a   : > { %2597 = sst [smem:[#allocation32_spill]] %s1763_s16  ;;  %s1791_s2 = sadd.s32 5, %s1753_s13 }
  0x5b   : > { %2598 = sst [smem:[#allocation33_spill]] %s1767_s25  ;;  %s233_s28 = sadd.s32 %s1756_s8, %s1791_s2 }
  0x5c   : > { %2603 = sst [smem:[#allocation38_spill]] %s1784_s6  ;;  %s1798_s27 = sadd.s32 6, %s1753_s13 }
  0x5d   : > { %s1788_s1 = sld [smem:[#allocation4 + %s227_s17]]  ;;  %s239_s11 = sadd.s32 %s1756_s8, %s1798_s27 }
  0x5e   : > { %2601 = sst [smem:[#allocation36_spill]] %s1777_s10  ;;  %s1805_s23 = sadd.s32 7, %s1753_s13 }
  0x5f   : > { %2602 = sst [smem:[#allocation37_spill]] %s1781_s14  ;;  %s245_s17 = sadd.s32 %s1756_s8, %s1805_s23 }
  0x60   : > { %2605 = sst [smem:[#allocation40_spill]] %s1791_s2  ;;  %s1810_s9 = sadd.s32 8, %s1753_s13 }
  0x61   : > { %s1795_s29 = sld [smem:[#allocation4 + %s233_s28]]  ;;  %s251_s20 = sadd.s32 %s1756_s8, %s1810_s9 }
  0x62   : > { %2607 = sst [smem:[#allocation42_spill]] %s1798_s27  ;;  %s1819_s18 = sadd.s32 9, %s1753_s13 }
  0x63   : > { %2604 = sst [smem:[#allocation39_spill]] %s1788_s1  ;;  %s1824_s24 = sadd.s32 10, %s1753_s13 }
  0x64   : > { %s1802_s0 = sld [smem:[#allocation4 + %s239_s11]]  ;;  %s257_s11 = sadd.s32 %s1756_s8, %s1819_s18 }
  0x65   : > { %2609 = sst [smem:[#allocation44_spill]] %s1805_s23  ;;  %s263_s30 = sadd.s32 %s1756_s8, %s1824_s24 }
  0x66   : > { %s1812_s28 = sld [smem:[#allocation4 + %s245_s17]]  ;;  %s1833_s17 = sadd.s32 11, %s1753_s13 }
  0x67   : > { %2606 = sst [smem:[#allocation41_spill]] %s1795_s29  ;;  %s1840_s3 = sadd.s32 12, %s1753_s13 }
  0x68   : > { %s1816_s5 = sld [smem:[#allocation4 + %s251_s20]]  ;;  %s269_s20 = sadd.s32 %s1756_s8, %s1833_s17 }
  0x69   : > { %2612 = sst [smem:[#allocation47_spill]] %s1819_s18  ;;  %s1843_s12 = sadd.s32 13, %s1753_s13 }
  0x6a   : > { %2608 = sst [smem:[#allocation43_spill]] %s1802_s0 }
  0x6b   : > { %s1826_s4 = sld [smem:[#allocation4 + %s257_s11]]  ;;  %s275_s11 = sadd.s32 %s1756_s8, %s1840_s3 }
  0x6c   : > { %2610 = sst [smem:[#allocation45_spill]] %s1812_s28 }
  0x6d   : > { %s1830_s19 = sld [smem:[#allocation4 + %s263_s30]]  ;;  %s281_s30 = sadd.s32 %s1756_s8, %s1843_s12 }
  0x6e   : > { %2611 = sst [smem:[#allocation46_spill]] %s1816_s5 }
  0x6f   : > { %2615 = sst [smem:[#allocation50_spill]] %s1833_s17 }
  0x70   : > { %s1837_s22 = sld [smem:[#allocation4 + %s269_s20]] }
  0x71   : > { %2613 = sst [smem:[#allocation48_spill]] %s1826_s4  ;;  %s1854_s4 = sadd.s32 14, %s1753_s13 }
  0x72   : > { %2617 = sst [smem:[#allocation52_spill]] %s1840_s3  ;;  %s287_s20 = sadd.s32 %s1756_s8, %s1854_s4 }
  0x73   : > { %2614 = sst [smem:[#allocation49_spill]] %s1830_s19 }
  0x74   : > { %2618 = sst [smem:[#allocation53_spill]] %s1843_s12 }
  0x75   : > { %s1849_s21 = sld [smem:[#allocation4 + %s275_s11]]  ;;  %s1868_s11 = sadd.s32 32, %s1756_s8 }
  0x76   : > { %2616 = sst [smem:[#allocation51_spill]] %s1837_s22  ;;  %s1859_s22 = sadd.s32 15, %s1753_s13 }
  0x77   : > { %s1851_s19 = sld [smem:[#allocation4 + %s281_s30]]  ;;  %s293_s28 = sadd.s32 %s1756_s8, %s1859_s22 }
  0x78   : > { %2621 = sst [smem:[#allocation56_spill]] %s1854_s4  ;;  %s301_s30 = sadd.s32 %s1868_s11, %s1753_s13 }
  0x79   : > { %2622 = sst [smem:[#allocation57_spill]] %s1859_s22  ;;  %s321_s1 = sadd.s32 %s1868_s11, %s1784_s6 }
  0x7a   : > { %s1861_s5 = sld [smem:[#allocation4 + %s287_s20]] }
  0x7b   : > { %2619 = sst [smem:[#allocation54_spill]] %s1849_s21 }
  0x7c   : > { %s1865_s0 = sld [smem:[#allocation4 + %s293_s28]]  ;;  %s306_s28 = sadd.s32 %s1868_s11, %s1761_s15 }
  0x7d   : > { %2620 = sst [smem:[#allocation55_spill]] %s1851_s19  ;;  %s316_s19 = sadd.s32 %s1868_s11, %s1775_s7 }
  0x7e   : > { %s1872_s20 = sld [smem:[#allocation4 + %s301_s30]]  ;;  %s326_s30 = sadd.s32 %s1868_s11, %s1791_s2 }
  0x7f   : > { %s1884_s29 = sld [smem:[#allocation4 + %s316_s19]] }
  0x80   : > { %2623 = sst [smem:[#allocation58_spill]] %s1861_s5 }
  0x81   : > { %s1878_s5 = sld [smem:[#allocation4 + %s306_s28]]  ;;  %s331_s28 = sadd.s32 %s1868_s11, %s1798_s27 }
  0x82   : > { %2624 = sst [smem:[#allocation59_spill]] %s1865_s0  ;;  %s311_s0 = sadd.s32 %s1868_s11, %s1770_s26 }
  0x83   : > { %s1882_s21 = sld [smem:[#allocation4 + %s311_s0]]  ;;  %s336_s0 = sadd.s32 %s1868_s11, %s1805_s23 }
  0x84   : > { %s1890_s14 = sld [smem:[#allocation4 + %s321_s1]] }
  0x85   : > { %2627 = sst [smem:[#allocation62_spill]] %s1884_s29  ;;  %s341_s29 = sadd.s32 %s1868_s11, %s1810_s9 }
  0x86   : > { %s1892_s10 = sld [smem:[#allocation4 + %s326_s30]]  ;;  %s351_s30 = sadd.s32 %s1868_s11, %s1824_s24 }
  0x87   : > { %2625 = sst [smem:[#allocation60_spill]] %s1878_s5 }
  0x88   : > { %s1896_s25 = sld [smem:[#allocation4 + %s331_s28]]  ;;  %s356_s28 = sadd.s32 %s1868_s11, %s1833_s17 }
  0x89   : > { %2626 = sst [smem:[#allocation61_spill]] %s1882_s21  ;;  %s346_s21 = sadd.s32 %s1868_s11, %s1819_s18 }
  0x8a   : > { %2628 = sst [smem:[#allocation63_spill]] %s1890_s14  ;;  %s361_s14 = sadd.s32 %s1868_s11, %s1840_s3 }
  0x8b   : > { %s1900_s19 = sld [smem:[#allocation4 + %s336_s0]]  ;;  %s366_s0 = sadd.s32 %s1868_s11, %s1843_s12 }
  0x8c   : > { %2629 = sst [smem:[#allocation64_spill]] %s1892_s10 }
  0x8d   : > { %s1906_s16 = sld [smem:[#allocation4 + %s341_s29]]  ;;  %s371_s29 = sadd.s32 %s1868_s11, %s1854_s4 }
  0x8e   : > { %2630 = sst [smem:[#allocation65_spill]] %s1896_s25 }
  0x8f   : > { %s1908_s1 = sld [smem:[#allocation4 + %s346_s21]]  ;;  %s376_s21 = sadd.s32 %s1868_s11, %s1859_s22 }
  0x90   : > { %s1912_s10 = sld [smem:[#allocation4 + %s351_s30]] }
  0x91   : > { %2631 = sst [smem:[#allocation66_spill]] %s1900_s19 }
  0x92   : > { %s1916_s25 = sld [smem:[#allocation4 + %s356_s28]]  ;;  %s1940_s28 = sadd.s32 96, %s1756_s8 }
  0x93   : > { %2632 = sst [smem:[#allocation67_spill]] %s1906_s16 }
  0x94   : > { %s1922_s19 = sld [smem:[#allocation4 + %s361_s14]] }
  0x95   : > { %2633 = sst [smem:[#allocation68_spill]] %s1908_s1 }
  0x96   : > { %2634 = sst [smem:[#allocation69_spill]] %s1912_s10  ;;  %s1935_s10 = sadd.s32 64, %s1756_s8 }
  0x97   : > { %s1924_s5 = sld [smem:[#allocation4 + %s366_s0]]  ;;  %s383_s14 = sadd.s32 %s1935_s10, %s1753_s13 }
  0x98   : > { %2635 = sst [smem:[#allocation70_spill]] %s1916_s25  ;;  %s388_s0 = sadd.s32 %s1935_s10, %s1761_s15 }
  0x99   : > { %s1930_s1 = sld [smem:[#allocation4 + %s371_s29]]  ;;  %s393_s29 = sadd.s32 %s1935_s10, %s1770_s26 }
  0x9a   : > { %2636 = sst [smem:[#allocation71_spill]] %s1922_s19 }
  0x9b   : > { %s1932_s30 = sld [smem:[#allocation4 + %s376_s21]] }
  0x9c   : > { %s1942_s11 = sld [smem:[#allocation4 + %s383_s14]]  ;;  %s408_s14 = sadd.s32 %s1935_s10, %s1791_s2 }
  0x9d   : > { %2637 = sst [smem:[#allocation72_spill]] %s1924_s5  ;;  %s403_s5 = sadd.s32 %s1935_s10, %s1784_s6 }
  0x9e   : > { %s1948_s21 = sld [smem:[#allocation4 + %s388_s0]]  ;;  %s413_s0 = sadd.s32 %s1935_s10, %s1798_s27 }
  0x9f   : > { %2638 = sst [smem:[#allocation73_spill]] %s1930_s1  ;;  %s398_s1 = sadd.s32 %s1935_s10, %s1775_s7 }
  0xa0   : > { %s1956_s19 = sld [smem:[#allocation4 + %s398_s1]]  ;;  %s423_s1 = sadd.s32 %s1935_s10, %s1810_s9 }
  0xa1   : > { %2639 = sst [smem:[#allocation74_spill]] %s1932_s30 }
  0xa2   : > { %2640 = sst [smem:[#allocation75_spill]] %s1942_s11 }
  0xa3   : > { %s1950_s30 = sld [smem:[#allocation4 + %s393_s29]] }
  0xa4   : > { %2641 = sst [smem:[#allocation76_spill]] %s1948_s21 }
  0xa5   : > { %s1960_s25 = sld [smem:[#allocation4 + %s403_s5]]  ;;  %s428_s5 = sadd.s32 %s1935_s10, %s1819_s18 }
  0xa6   : > { %2643 = sst [smem:[#allocation78_spill]] %s1956_s19 }
  0xa7   : > { %s1962_s16 = sld [smem:[#allocation4 + %s408_s14]] }
  0xa8   : > { %s1966_s29 = sld [smem:[#allocation4 + %s413_s0]] }
  0xa9   : > { %2642 = sst [smem:[#allocation77_spill]] %s1950_s30  ;;  %s418_s30 = sadd.s32 %s1935_s10, %s1805_s23 }
  0xaa   : > { %s1970_s21 = sld [smem:[#allocation4 + %s418_s30]] }
  0xab   : > { %2644 = sst [smem:[#allocation79_spill]] %s1960_s25  ;;  %s495_s25 = sadd.s32 %s1940_s28, %s1798_s27 }
  0xac   : > { %s1974_s19 = sld [smem:[#allocation4 + %s423_s1]] }
  0xad   : > { %2645 = sst [smem:[#allocation80_spill]] %s1962_s16  ;;  %s433_s16 = sadd.s32 %s1935_s10, %s1824_s24 }
  0xae   : > { %2646 = sst [smem:[#allocation81_spill]] %s1966_s29  ;;  %s438_s29 = sadd.s32 %s1935_s10, %s1833_s17 }
  0xaf   : > { %s1978_s14 = sld [smem:[#allocation4 + %s428_s5]] }
  0xb0   : > { %2647 = sst [smem:[#allocation82_spill]] %s1970_s21  ;;  %s443_s21 = sadd.s32 %s1935_s10, %s1840_s3 }
  0xb1   : > { %s1982_s0 = sld [smem:[#allocation4 + %s433_s16]]  ;;  %s458_s16 = sadd.s32 %s1935_s10, %s1859_s22 }
  0xb2   : > { %2648 = sst [smem:[#allocation83_spill]] %s1974_s19  ;;  %s448_s19 = sadd.s32 %s1935_s10, %s1843_s12 }
  0xb3   : > { %s1986_s30 = sld [smem:[#allocation4 + %s438_s29]] }
  0xb4   : > { %s1990_s1 = sld [smem:[#allocation4 + %s443_s21]]  ;;  %s470_s21 = sadd.s32 %s1940_s28, %s1761_s15 }
  0xb5   : > { %2649 = sst [smem:[#allocation84_spill]] %s1978_s14  ;;  %s453_s14 = sadd.s32 %s1935_s10, %s1854_s4 }
  0xb6   : > { %s1994_s5 = sld [smem:[#allocation4 + %s448_s19]]  ;;  %s480_s10 = sadd.s32 %s1940_s28, %s1775_s7 }
  0xb7   : > { %2650 = sst [smem:[#allocation85_spill]] %s1982_s0 }
  0xb8   : > { %s2000_s0 = sld [smem:[#allocation4 + %s453_s14]] }
  0xb9   : > { %2651 = sst [smem:[#allocation86_spill]] %s1986_s30  ;;  %s465_s30 = sadd.s32 %s1940_s28, %s1753_s13 }
  0xba   : > { %2652 = sst [smem:[#allocation87_spill]] %s1990_s1 }
  0xbb   : > { %s2002_s29 = sld [smem:[#allocation4 + %s458_s16]] }
  0xbc   : > { %2653 = sst [smem:[#allocation88_spill]] %s1994_s5  ;;  %s475_s5 = sadd.s32 %s1940_s28, %s1770_s26 }
  0xbd   : > { %s2008_s1 = sld [smem:[#allocation4 + %s465_s30]] }
  0xbe   : > { %2654 = sst [smem:[#allocation89_spill]] %s2000_s0  ;;  %s490_s0 = sadd.s32 %s1940_s28, %s1791_s2 }
  0xbf   : > { %s2010_s19 = sld [smem:[#allocation4 + %s470_s21]] }
  0xc0   : > { %s2016_s14 = sld [smem:[#allocation4 + %s475_s5]] }
  0xc1   : > { %2655 = sst [smem:[#allocation90_spill]] %s2002_s29  ;;  %s485_s29 = sadd.s32 %s1940_s28, %s1784_s6 }
  0xc2   : > { %s2018_s16 = sld [smem:[#allocation4 + %s480_s10]] }
  0xc3   : > { %2656 = sst [smem:[#allocation91_spill]] %s2008_s1 }
  0xc4   : > { %s2024_s30 = sld [smem:[#allocation4 + %s485_s29]] }
  0xc5   : > { %2657 = sst [smem:[#allocation92_spill]] %s2010_s19  ;;  %s500_s19 = sadd.s32 %s1940_s28, %s1805_s23 }
  0xc6   : > { %2658 = sst [smem:[#allocation93_spill]] %s2016_s14  ;;  %s510_s14 = sadd.s32 %s1940_s28, %s1819_s18 }
  0xc7   : > { %s2026_s21 = sld [smem:[#allocation4 + %s490_s0]]  ;;  %s515_s0 = sadd.s32 %s1940_s28, %s1824_s24 }
  0xc8   : > { %2659 = sst [smem:[#allocation94_spill]] %s2018_s16  ;;  %s505_s16 = sadd.s32 %s1940_s28, %s1810_s9 }
  0xc9   : > { %s2032_s5 = sld [smem:[#allocation4 + %s495_s25]]  ;;  %s525_s25 = sadd.s32 %s1940_s28, %s1840_s3 }
  0xca   : > { %2660 = sst [smem:[#allocation95_spill]] %s2024_s30 }
  0xcb   : > { %s2034_s10 = sld [smem:[#allocation4 + %s500_s19]]  ;;  %s530_s19 = sadd.s32 %s1940_s28, %s1843_s12 }
  0xcc   : > { %s2040_s1 = sld [smem:[#allocation4 + %s505_s16]]  ;;  %s535_s16 = sadd.s32 %s1940_s28, %s1854_s4 }
  0xcd   : > { %2661 = sst [smem:[#allocation96_spill]] %s2026_s21  ;;  %s520_s21 = sadd.s32 %s1940_s28, %s1833_s17 }
  0xce   : > { %s2042_s29 = sld [smem:[#allocation4 + %s510_s14]]  ;;  %s540_s14 = sadd.s32 %s1940_s28, %s1859_s22 }
  0xcf   : > { %2662 = sst [smem:[#allocation97_spill]] %s2032_s5 }
  0xd0   : > { %s2048_s30 = sld [smem:[#allocation4 + %s515_s0]]  ;;  %s2069_s0 = sadd.s32 128, %s1756_s8 }
  0xd1   : > { %2663 = sst [smem:[#allocation98_spill]] %s2034_s10 }
  0xd2   : > { %2664 = sst [smem:[#allocation99_spill]] %s2040_s1 }
  0xd3   : > { %s2050_s11 = sld [smem:[#allocation4 + %s520_s21]]  ;;  %s547_s21 = sadd.s32 %s2069_s0, %s1753_s13 }
  0xd4   : > { %2665 = sst [smem:[#allocation100_spill]] %s2042_s29 }
  0xd5   : > { %s2056_s10 = sld [smem:[#allocation4 + %s525_s25]]  ;;  %s2074_s25 = sadd.s32 160, %s1756_s8 }
  0xd6   : > { %2666 = sst [smem:[#allocation101_spill]] %s2048_s30  ;;  %s582_s8 = sadd.s32 %s2069_s0, %s1805_s23 }
  0xd7   : > { %s2058_s5 = sld [smem:[#allocation4 + %s530_s19]]  ;;  %s552_s19 = sadd.s32 %s2069_s0, %s1761_s15 }
  0xd8   : > { %s2064_s29 = sld [smem:[#allocation4 + %s535_s16]]  ;;  %s557_s16 = sadd.s32 %s2069_s0, %s1770_s26 }
  0xd9   : > { %2667 = sst [smem:[#allocation102_spill]] %s2050_s11 }
  0xda   : > { %s2066_s1 = sld [smem:[#allocation4 + %s540_s14]] }
  0xdb   : > { %2668 = sst [smem:[#allocation103_spill]] %s2056_s10 }
  0xdc   : > { %s2076_s28 = sld [smem:[#allocation4 + %s547_s21]]  ;;  %s572_s21 = sadd.s32 %s2069_s0, %s1791_s2 }
  0xdd   : > { %2669 = sst [smem:[#allocation104_spill]] %s2058_s5  ;;  %s567_s5 = sadd.s32 %s2069_s0, %s1784_s6 }
  0xde   : > { %2670 = sst [smem:[#allocation105_spill]] %s2064_s29  ;;  %s562_s29 = sadd.s32 %s2069_s0, %s1775_s7 }
  0xdf   : > { %s2082_s14 = sld [smem:[#allocation4 + %s552_s19]]  ;;  %s577_s19 = sadd.s32 %s2069_s0, %s1798_s27 }
  0xe0   : > { %2671 = sst [smem:[#allocation106_spill]] %s2066_s1 }
  0xe1   : > { %s2084_s1 = sld [smem:[#allocation4 + %s557_s16]] }
  0xe2   : > { %s2090_s10 = sld [smem:[#allocation4 + %s562_s29]]  ;;  %s587_s29 = sadd.s32 %s2069_s0, %s1810_s9 }
  0xe3   : > { %s2094_s11 = sld [smem:[#allocation4 + %s567_s5]]  ;;  %s592_s5 = sadd.s32 %s2069_s0, %s1819_s18 }
  0xe4   : > { %s2096_s30 = sld [smem:[#allocation4 + %s572_s21]] }
  0xe5   : > { %2672 = sst [smem:[#allocation107_spill]] %s2082_s14 }
  0xe6   : > { %s2100_s16 = sld [smem:[#allocation4 + %s577_s19]] }
  0xe7   : > { %2673 = sst [smem:[#allocation108_spill]] %s2084_s1 }
  0xe8   : > { %2674 = sst [smem:[#allocation109_spill]] %s2090_s10 }
  0xe9   : > { %2675 = sst [smem:[#allocation110_spill]] %s2094_s11 }
  0xea   : > { %2676 = sst [smem:[#allocation111_spill]] %s2096_s30  ;;  %s597_s30 = sadd.s32 %s2069_s0, %s1824_s24 }
  0xeb   : > { %s2104_s1 = sld [smem:[#allocation4 + %s582_s8]] }
  0xec   : > { %2677 = sst [smem:[#allocation112_spill]] %s2100_s16  ;;  %s602_s16 = sadd.s32 %s2069_s0, %s1833_s17 }
  0xed   : > { %s2108_s10 = sld [smem:[#allocation4 + %s587_s29]]  ;;  %s612_s29 = sadd.s32 %s2069_s0, %s1843_s12 }
  0xee   : > { %s2112_s21 = sld [smem:[#allocation4 + %s592_s5]]  ;;  %s617_s5 = sadd.s32 %s2069_s0, %s1854_s4 }
  0xef   : > { %s2116_s19 = sld [smem:[#allocation4 + %s597_s30]] }
  0xf0   : > { %s2120_s8 = sld [smem:[#allocation4 + %s602_s16]]  ;;  %s629_s16 = sadd.s32 %s2074_s25, %s1753_s13 }
  0xf1   : > { %2678 = sst [smem:[#allocation113_spill]] %s2104_s1  ;;  %s607_s1 = sadd.s32 %s2069_s0, %s1840_s3 }
  0xf2   : > { %s2124_s11 = sld [smem:[#allocation4 + %s607_s1]]  ;;  %s634_s3 = sadd.s32 %s2074_s25, %s1761_s15 }
  0xf3   : > { %2679 = sst [smem:[#allocation114_spill]] %s2108_s10 }
  0xf4   : > { %2680 = sst [smem:[#allocation115_spill]] %s2112_s21  ;;  %s622_s21 = sadd.s32 %s2069_s0, %s1859_s22 }
  0xf5   : > { %2681 = sst [smem:[#allocation116_spill]] %s2116_s19 }
  0xf6   : > { %2682 = sst [smem:[#allocation117_spill]] %s2120_s8 }
  0xf7   : > { %s2684_s10 = sld [smem:[#allocation60_spill]] }
  0xf8   : > { %2683 = sst [smem:[#allocation118_spill]] %s2124_s11 }
  0xf9   : > { %s2128_s14 = sld [smem:[#allocation4 + %s612_s29]]  ;;  %s639_s29 = sadd.s32 %s2074_s25, %s1770_s26 }
  0xfa   : > { %s2134_s30 = sld [smem:[#allocation4 + %s617_s5]]  ;;  %s303_s5 = scalar_lea.vmem [#allocation5], %s1872_s20 }
  0xfb   : > { %s2136_s19 = sld [smem:[#allocation4 + %s622_s21]]  ;;  %v304_v1 = vld [vmem:[%s303_s5] sm:$0x1] }
  0xfc   : > { %s2688_s8 = sld [smem:[#allocation32_spill]] }
  0xfd   : > { %s2142_s17 = sld [smem:[#allocation4 + %s629_s16]] }
  0xfe   : > { %s2144_s1 = sld [smem:[#allocation4 + %s634_s3]]  ;;  %s649_s3 = sadd.s32 %s2074_s25, %s1784_s6 }
  0xff   : > { %2685 = sst [smem:[#allocation60_spill]] %s2128_s14  ;;  %s644_s14 = sadd.s32 %s2074_s25, %s1775_s7 }
 0x100   : > { %2686 = sst [smem:[#allocation119_spill]] %s2134_s30  ;;  %s654_s30 = sadd.s32 %s2074_s25, %s1791_s2 }
 0x101   : > { %2687 = sst [smem:[#allocation120_spill]] %s2136_s19  ;;  %s308_s19 = scalar_lea.vmem [#allocation5], %s2684_s10 }
 0x102   : > { %s2689_s11 = sld [smem:[#allocation75_spill]]  ;;  %v309_v2 = vld [vmem:[%s308_s19] sm:$0x1]  ;;  %s659_s10 = sadd.s32 %s2074_s25, %s1798_s27 }
 0x103   : > { %s2690_s4 = sld [smem:[#allocation76_spill]]  ;;  %v310_v4 = vadd.f32 %v309_v2, %v304_v1  ;;  %s664_s19 = sadd.s32 %s2074_s25, %s1805_s23 }
 0x104   : > { %s2150_s12 = sld [smem:[#allocation4 + %s639_s29]]  ;;  %s205_s29 = scalar_lea.vmem [#allocation5], %s2688_s8 }
 0x105   : > { %s2152_s0 = sld [smem:[#allocation4 + %s644_s14]]  ;;  %v206_v3 = vld [vmem:[%s205_s29] sm:$0x1]  ;;  %s674_s23 = sadd.s32 %s2074_s25, %s1819_s18 }
 0x106   : > { %s2692_s21 = sld [smem:[#allocation33_spill]] }
 0x107   : > { %s2693_s16 = sld [smem:[#allocation61_spill]] }
 0x108   : > { %s2160_s15 = sld [smem:[#allocation4 + %s649_s3]] }
 0x109   : > { %s2162_s7 = sld [smem:[#allocation4 + %s654_s30]]  ;;  %s390_s20 = scalar_lea.vmem [#allocation5], %s2690_s4 }
 0x10a   : > { %s2695_s26 = sld [smem:[#allocation91_spill]]  ;;  %v391_v6 = vld [vmem:[%s390_s20] sm:$0x1]  ;;  %s669_s20 = sadd.s32 %s2074_s25, %s1810_s9 }
 0x10b   : > { %2691 = sst [smem:[#allocation32_spill]] %s2152_s0  ;;  %s385_s0 = scalar_lea.vmem [#allocation5], %s2689_s11 }
 0x10c   : > { %s2696_s14 = sld [smem:[#allocation92_spill]]  ;;  %v386_v5 = vld [vmem:[%s385_s0] sm:$0x1]  ;;  %s211_s3 = scalar_lea.vmem [#allocation5], %s2692_s21 }
 0x10d   : > { %s2697_s5 = sld [smem:[#allocation77_spill]]  ;;  %v212_v7 = vld [vmem:[%s211_s3] sm:$0x1]  ;;  %s313_s30 = scalar_lea.vmem [#allocation5], %s2693_s16  ;;  %v392_v9 = vadd.f32 %v391_v6, %v386_v5 }
 0x10e   : > { %v314_v8 = vld [vmem:[%s313_s30] sm:$0x1]  ;;  %s2173_s8 = sld [smem:[#allocation4 + %s659_s10]]  ;;  %v213_v12 = vadd.f32 %v212_v7, %v206_v3 }
 0x10f   : > { %2694 = sst [smem:[#allocation75_spill]] %s2162_s7  ;;  %v315_v13 = vadd.f32 %v314_v8, %v310_v4 }
 0x110   : > { %s2698_s7 = sld [smem:[#allocation36_spill]]  ;;  %s467_s11 = scalar_lea.vmem [#allocation5], %s2695_s26 }
 0x111   : > { %s2700_s29 = sld [smem:[#allocation62_spill]]  ;;  %v468_v10 = vld [vmem:[%s467_s11] sm:$0x1] }
 0x112   : > { %s2175_s2 = sld [smem:[#allocation4 + %s664_s19]]  ;;  %s472_s4 = scalar_lea.vmem [#allocation5], %s2696_s14 }
 0x113   : > { %v473_v11 = vld [vmem:[%s472_s4] sm:$0x1]  ;;  %s2702_s0 = sld [smem:[#allocation107_spill]]  ;;  %s395_s16 = scalar_lea.vmem [#allocation5], %s2697_s5 }
 0x114   : > { %2699 = sst [smem:[#allocation76_spill]] %s2173_s8  ;;  %v396_v14 = vld [vmem:[%s395_s16] sm:$0x1]  ;;  %v474_v17 = vadd.f32 %v473_v11, %v468_v10  ;;  %s549_s4 = scalar_lea.vmem [#allocation5], %s2076_s28 }
 0x115   : > { %s2703_s21 = sld [smem:[#allocation50_spill]]  ;;  %v550_v18 = vld [vmem:[%s549_s4] sm:$0x1]  ;;  %s679_s8 = sadd.s32 %s2074_s25, %s1824_s24  ;;  %v397_v20 = vadd.f32 %v396_v14, %v392_v9 }
 0x116   : > { %s2704_s10 = sld [smem:[#allocation93_spill]]  ;;  %s217_s3 = scalar_lea.vmem [#allocation5], %s2698_s7 }
 0x117   : > { %s2184_s19 = sld [smem:[#allocation4 + %s669_s20]]  ;;  %v218_v15 = vld [vmem:[%s217_s3] sm:$0x1]  ;;  %s318_s30 = scalar_lea.vmem [#allocation5], %s2700_s29 }
 0x118   : > { %2701 = sst [smem:[#allocation33_spill]] %s2175_s2  ;;  %v319_v16 = vld [vmem:[%s318_s30] sm:$0x1]  ;;  %v219_v22 = vadd.f32 %v218_v15, %v213_v12  ;;  %s631_s4 = scalar_lea.vmem [#allocation5], %s2142_s17 }
 0x119   : > { %s2705_s26 = sld [smem:[#allocation37_spill]]  ;;  %s554_s18 = scalar_lea.vmem [#allocation5], %s2702_s0  ;;  %v320_v24 = vadd.f32 %v319_v16, %v315_v13  ;;  %v632_v28 = vld [vmem:[%s631_s4] sm:$0x1] }
 0x11a   : > { %s2188_s14 = sld [smem:[#allocation4 + %s674_s23]]  ;;  %v555_v19 = vld [vmem:[%s554_s18] sm:$0x1] }
 0x11b   : > { %s2707_s11 = sld [smem:[#allocation78_spill]]  ;;  %s684_s5 = sadd.s32 %s2074_s25, %s2703_s21  ;;  %v556_v27 = vadd.f32 %v555_v19, %v550_v18 }
 0x11c   : > { %s2708_s2 = sld [smem:[#allocation63_spill]]  ;;  %s477_s20 = scalar_lea.vmem [#allocation5], %s2704_s10 }
 0x11d   : > { %v478_v21 = vld [vmem:[%s477_s20] sm:$0x1]  ;;  %s2709_s7 = sld [smem:[#allocation52_spill]] }
 0x11e   : > { %s2197_s29 = sld [smem:[#allocation4 + %s679_s8]]  ;;  %s636_s8 = scalar_lea.vmem [#allocation5], %s2144_s1  ;;  %v479_v30 = vadd.f32 %v478_v21, %v474_v17 }
 0x11f   : > { %s2711_s23 = sld [smem:[#allocation53_spill]]  ;;  %s223_s16 = scalar_lea.vmem [#allocation5], %s2705_s26  ;;  %v637_v29 = vld [vmem:[%s636_s8] sm:$0x1] }
 0x120   : > { %2706 = sst [smem:[#allocation61_spill]] %s2188_s14  ;;  %v224_v23 = vld [vmem:[%s223_s16] sm:$0x1]  ;;  %v638_v38 = vadd.f32 %v637_v29, %v632_v28 }
 0x121   : > { %s2712_s28 = sld [smem:[#allocation108_spill]]  ;;  %s400_s0 = scalar_lea.vmem [#allocation5], %s2707_s11  ;;  %v225_v34 = vadd.f32 %v224_v23, %v219_v22 }
 0x122   : > { %v401_v25 = vld [vmem:[%s400_s0] sm:$0x1]  ;;  %s2713_s18 = sld [smem:[#allocation94_spill]]  ;;  %s323_s30 = scalar_lea.vmem [#allocation5], %s2708_s2 }
 0x123   : > { %s2201_s3 = sld [smem:[#allocation4 + %s684_s5]]  ;;  %v324_v26 = vld [vmem:[%s323_s30] sm:$0x1]  ;;  %v402_v32 = vadd.f32 %v401_v25, %v397_v20 }
 0x124   : > { %2710 = sst [smem:[#allocation91_spill]] %s2197_s29  ;;  %s689_s29 = sadd.s32 %s2074_s25, %s2709_s7  ;;  %v325_v36 = vadd.f32 %v324_v26, %v320_v24 }
 0x125   : > { %s2715_s10 = sld [smem:[#allocation39_spill]]  ;;  %s694_s14 = sadd.s32 %s2074_s25, %s2711_s23 }
 0x126   : > { %s2716_s20 = sld [smem:[#allocation79_spill]] }
 0x127   : > { %s2717_s26 = sld [smem:[#allocation56_spill]]  ;;  %s559_s11 = scalar_lea.vmem [#allocation5], %s2712_s28 }
 0x128   : > { %s2718_s16 = sld [smem:[#allocation64_spill]]  ;;  %v560_v31 = vld [vmem:[%s559_s11] sm:$0x1]  ;;  %s482_s2 = scalar_lea.vmem [#allocation5], %s2713_s18 }
 0x129   : > { %2714 = sst [smem:[#allocation92_spill]] %s2201_s3  ;;  %v483_v33 = vld [vmem:[%s482_s2] sm:$0x1]  ;;  %s704_s11 = sadd.s32 %s2074_s25, %s1859_s22  ;;  %v561_v40 = vadd.f32 %v560_v31, %v556_v27 }
 0x12a   : > { %s2211_s5 = sld [smem:[#allocation4 + %s689_s29]]  ;;  %s641_s2 = scalar_lea.vmem [#allocation5], %s2150_s12  ;;  %v484_v42 = vadd.f32 %v483_v33, %v479_v30 }
 0x12b   : > { %s2214_s17 = sld [smem:[#allocation4 + %s694_s14]]  ;;  %s229_s0 = scalar_lea.vmem [#allocation5], %s2715_s10  ;;  %v642_v41 = vld [vmem:[%s641_s2] sm:$0x1] }
 0x12c   : > { %s2721_s1 = sld [smem:[#allocation109_spill]]  ;;  %v230_v35 = vld [vmem:[%s229_s0] sm:$0x1]  ;;  %s405_s4 = scalar_lea.vmem [#allocation5], %s2716_s20  ;;  %v643_v50 = vadd.f32 %v642_v41, %v638_v38 }
 0x12d   : > { %s2722_s30 = sld [smem:[#allocation95_spill]]  ;;  %v406_v37 = vld [vmem:[%s405_s4] sm:$0x1]  ;;  %s699_s8 = sadd.s32 %s2074_s25, %s2717_s26  ;;  %v231_v46 = vadd.f32 %v230_v35, %v225_v34 }
 0x12e   : > { %s2723_s28 = sld [smem:[#allocation30_spill]]  ;;  %v407_v44 = vadd.f32 %v406_v37, %v402_v32 }
 0x12f   : > { %s2724_s29 = sld [smem:[#allocation41_spill]] }
 0x130   : > { %2719 = sst [smem:[#allocation77_spill]] %s2211_s5  ;;  %s328_s5 = scalar_lea.vmem [#allocation5], %s2718_s16 }
 0x131   : > { %2720 = sst [smem:[#allocation36_spill]] %s2214_s17  ;;  %v329_v39 = vld [vmem:[%s328_s5] sm:$0x1] }
 0x132   : > { %s2725_s18 = sld [smem:[#allocation80_spill]]  ;;  %s564_s10 = scalar_lea.vmem [#allocation5], %s2721_s1  ;;  %v330_v48 = vadd.f32 %v329_v39, %v325_v36 }
 0x133   : > { %s2224_s14 = sld [smem:[#allocation4 + %s699_s8]]  ;;  %v565_v43 = vld [vmem:[%s564_s10] sm:$0x1]  ;;  %s487_s20 = scalar_lea.vmem [#allocation5], %s2722_s30 }
 0x134   : > { %s2727_s0 = sld [smem:[#allocation65_spill]]  ;;  %v488_v45 = vld [vmem:[%s487_s20] sm:$0x1]  ;;  %s2231_s16 = sadd.s32 192, %s2723_s28  ;;  %v566_v52 = vadd.f32 %v565_v43, %v561_v40 }
 0x135   : > { %s2728_s4 = sld [smem:[#allocation32_spill]]  ;;  %s235_s5 = scalar_lea.vmem [#allocation5], %s2724_s29  ;;  %v489_v54 = vadd.f32 %v488_v45, %v484_v42 }
 0x136   : > { %s2228_s25 = sld [smem:[#allocation4 + %s704_s11]]  ;;  %v236_v47 = vld [vmem:[%s235_s5] sm:$0x1]  ;;  %s711_s30 = sadd.s32 %s2231_s16, %s1753_s13 }
 0x137   : > { %s2730_s12 = sld [smem:[#allocation110_spill]]  ;;  %s2238_s20 = sadd.s32 224, %s2723_s28  ;;  %v237_v58 = vadd.f32 %v236_v47, %v231_v46 }
 0x138   : > { %s2731_s8 = sld [smem:[#allocation31_spill]]  ;;  %s410_s1 = scalar_lea.vmem [#allocation5], %s2725_s18 }
 0x139   : > { %2726 = sst [smem:[#allocation62_spill]] %s2224_s14  ;;  %v411_v49 = vld [vmem:[%s410_s1] sm:$0x1] }
 0x13a   : > { %s2732_s2 = sld [smem:[#allocation34_spill]]  ;;  %s333_s11 = scalar_lea.vmem [#allocation5], %s2727_s0  ;;  %v412_v56 = vadd.f32 %v411_v49, %v407_v44 }
 0x13b   : > { %s2733_s10 = sld [smem:[#allocation96_spill]]  ;;  %v334_v51 = vld [vmem:[%s333_s11] sm:$0x1]  ;;  %s646_s14 = scalar_lea.vmem [#allocation5], %s2728_s4 }
 0x13c   : > { %2729 = sst [smem:[#allocation107_spill]] %s2228_s25  ;;  %v647_v53 = vld [vmem:[%s646_s14] sm:$0x1]  ;;  %v335_v59 = vadd.f32 %v334_v51, %v330_v48 }
 0x13d   : > { %2734 = sst [smem:[#allocation50_spill]] %s2238_s20  ;;  %s569_s17 = scalar_lea.vmem [#allocation5], %s2730_s12  ;;  %v648_v61 = vadd.f32 %v647_v53, %v643_v50 }
 0x13e   : > { %s2735_s25 = sld [smem:[#allocation81_spill]]  ;;  %v570_v55 = vld [vmem:[%s569_s17] sm:$0x1]  ;;  %s716_s18 = sadd.s32 %s2231_s16, %s2731_s8 }
 0x13f   : > { %s2242_s29 = sld [smem:[#allocation4 + %s711_s30]]  ;;  %v571_v0 = vadd.f32 %v570_v55, %v566_v52  ;;  %s731_s20 = sadd.s32 %s2231_s16, %s1784_s6 }
 0x140   : > { %s2736_s5 = sld [smem:[#allocation43_spill]]  ;;  %s721_s1 = sadd.s32 %s2231_s16, %s2732_s2 }
 0x141   : > { %s2737_s3 = sld [smem:[#allocation66_spill]]  ;;  %s492_s13 = scalar_lea.vmem [#allocation5], %s2733_s10 }
 0x142   : > { %s2738_s28 = sld [smem:[#allocation35_spill]]  ;;  %v493_v57 = vld [vmem:[%s492_s13] sm:$0x1]  ;;  %s651_s13 = scalar_lea.vmem [#allocation5], %s2160_s15 }
 0x143   : > { %s2250_s0 = sld [smem:[#allocation4 + %s716_s18]]  ;;  %v652_v1 = vld [vmem:[%s651_s13] sm:$0x1]  ;;  %v494_v2 = vadd.f32 %v493_v57, %v489_v54 }
 0x144   : > { %s2739_s14 = sld [smem:[#allocation111_spill]]  ;;  %s415_s4 = scalar_lea.vmem [#allocation5], %s2735_s25  ;;  %v653_v10 = vadd.f32 %v652_v1, %v648_v61 }
 0x145   : > { %v416_v60 = vld [vmem:[%s415_s4] sm:$0x1]  ;;  %s2740_s12 = sld [smem:[#allocation40_spill]] }
 0x146   : > { %s2741_s17 = sld [smem:[#allocation45_spill]]  ;;  %s241_s11 = scalar_lea.vmem [#allocation5], %s2736_s5  ;;  %v417_v5 = vadd.f32 %v416_v60, %v412_v56 }
 0x147   : > { %s2253_s30 = sld [smem:[#allocation4 + %s721_s1]]  ;;  %v242_v62 = vld [vmem:[%s241_s11] sm:$0x1]  ;;  %s338_s2 = scalar_lea.vmem [#allocation5], %s2737_s3 }
 0x148   : > { %s2742_s10 = sld [smem:[#allocation97_spill]]  ;;  %v339_v63 = vld [vmem:[%s338_s2] sm:$0x1]  ;;  %s726_s8 = sadd.s32 %s2231_s16, %s2738_s28  ;;  %v243_v7 = vadd.f32 %v242_v62, %v237_v58 }
 0x149   : > { %s2743_s18 = sld [smem:[#allocation82_spill]]  ;;  %v340_v8 = vadd.f32 %v339_v63, %v335_v59 }
 0x14a   : > { %s574_s25 = scalar_lea.vmem [#allocation5], %s2739_s14  ;;  %s2263_s4 = sld [smem:[#allocation4 + %s726_s8]] }
 0x14b   : > { %v575_v3 = vld [vmem:[%s574_s25] sm:$0x1]  ;;  %s736_s1 = sadd.s32 %s2231_s16, %s2740_s12  ;;  %s2744_s5 = sld [smem:[#allocation67_spill]] }
 0x14c   : > { %s247_s11 = scalar_lea.vmem [#allocation5], %s2741_s17  ;;  %s2745_s3 = sld [smem:[#allocation75_spill]]  ;;  %v576_v13 = vadd.f32 %v575_v3, %v571_v0 }
 0x14d   : > { %v248_v4 = vld [vmem:[%s247_s11] sm:$0x1]  ;;  %s2269_s15 = sld [smem:[#allocation4 + %s731_s20]]  ;;  %s713_s14 = scalar_lea.vmem [#allocation5], %s2242_s29 }
 0x14e   : > { %s497_s2 = scalar_lea.vmem [#allocation5], %s2742_s10  ;;  %s2746_s13 = sld [smem:[#allocation112_spill]]  ;;  %v714_v11 = vld [vmem:[%s713_s14] sm:$0x1]  ;;  %v249_v23 = vadd.f32 %v248_v4, %v243_v7 }
 0x14f   : > { %v498_v6 = vld [vmem:[%s497_s2] sm:$0x1]  ;;  %s420_s6 = scalar_lea.vmem [#allocation5], %s2743_s18  ;;  %s2747_s8 = sld [smem:[#allocation44_spill]] }
 0x150   : > { %v421_v9 = vld [vmem:[%s420_s6] sm:$0x1]  ;;  %s2748_s25 = sld [smem:[#allocation46_spill]]  ;;  %s741_s11 = sadd.s32 %s2231_s16, %s1798_s27  ;;  %v499_v15 = vadd.f32 %v498_v6, %v494_v2 }
 0x151   : > { %s2273_s17 = sld [smem:[#allocation4 + %s736_s1]]  ;;  %s343_s10 = scalar_lea.vmem [#allocation5], %s2744_s5  ;;  %v422_v19 = vadd.f32 %v421_v9, %v417_v5 }
 0x152   : > { %s2749_s12 = sld [smem:[#allocation98_spill]]  ;;  %v344_v12 = vld [vmem:[%s343_s10] sm:$0x1]  ;;  %s656_s20 = scalar_lea.vmem [#allocation5], %s2745_s3 }
 0x153   : > { %v657_v14 = vld [vmem:[%s656_s20] sm:$0x1]  ;;  %s2279_s2 = sld [smem:[#allocation4 + %s741_s11]]  ;;  %s718_s18 = scalar_lea.vmem [#allocation5], %s2250_s0  ;;  %v345_v24 = vadd.f32 %v344_v12, %v340_v8 }
 0x154   : > { %s579_s6 = scalar_lea.vmem [#allocation5], %s2746_s13  ;;  %s2750_s29 = sld [smem:[#allocation68_spill]]  ;;  %v719_v17 = vld [vmem:[%s718_s18] sm:$0x1]  ;;  %v658_v27 = vadd.f32 %v657_v14, %v653_v10 }
 0x155   : > { %v580_v16 = vld [vmem:[%s579_s6] sm:$0x1]  ;;  %s2751_s1 = sld [smem:[#allocation83_spill]]  ;;  %s746_s14 = sadd.s32 %s2231_s16, %s2747_s8  ;;  %v720_v21 = vadd.f32 %v719_v17, %v714_v11 }
 0x156   : > { %s253_s27 = scalar_lea.vmem [#allocation5], %s2748_s25  ;;  %s2752_s10 = sld [smem:[#allocation76_spill]]  ;;  %v581_v28 = vadd.f32 %v580_v16, %v576_v13 }
 0x157   : > { %v254_v18 = vld [vmem:[%s253_s27] sm:$0x1]  ;;  %s723_s3 = scalar_lea.vmem [#allocation5], %s2253_s30  ;;  %s2288_s11 = sld [smem:[#allocation4 + %s746_s14]] }
 0x158   : > { %s502_s5 = scalar_lea.vmem [#allocation5], %s2749_s12  ;;  %v724_v22 = vld [vmem:[%s723_s3] sm:$0x1]  ;;  %s2753_s20 = sld [smem:[#allocation47_spill]]  ;;  %v255_v39 = vadd.f32 %v254_v18, %v249_v23 }
 0x159   : > { %v503_v20 = vld [vmem:[%s502_s5] sm:$0x1]  ;;  %s751_s13 = sadd.s32 %s2231_s16, %s1810_s9  ;;  %s2754_s0 = sld [smem:[#allocation113_spill]]  ;;  %v725_v30 = vadd.f32 %v724_v22, %v720_v21 }
 0x15a   : > { %s348_s6 = scalar_lea.vmem [#allocation5], %s2750_s29  ;;  %s2755_s12 = sld [smem:[#allocation48_spill]]  ;;  %v504_v32 = vadd.f32 %v503_v20, %v499_v15 }
 0x15b   : > { %v349_v25 = vld [vmem:[%s348_s6] sm:$0x1]  ;;  %s425_s27 = scalar_lea.vmem [#allocation5], %s2751_s1  ;;  %s2294_s25 = sld [smem:[#allocation4 + %s751_s13]] }
 0x15c   : > { %v426_v26 = vld [vmem:[%s425_s27] sm:$0x1]  ;;  %s2756_s30 = sld [smem:[#allocation99_spill]]  ;;  %s661_s18 = scalar_lea.vmem [#allocation5], %s2752_s10  ;;  %v350_v40 = vadd.f32 %v349_v25, %v345_v24 }
 0x15d   : > { %v662_v29 = vld [vmem:[%s661_s18] sm:$0x1]  ;;  %s728_s14 = scalar_lea.vmem [#allocation5], %s2263_s4  ;;  %s2757_s3 = sld [smem:[#allocation84_spill]]  ;;  %v427_v36 = vadd.f32 %v426_v26, %v422_v19 }
 0x15e   : > { %v729_v31 = vld [vmem:[%s728_s14] sm:$0x1]  ;;  %s756_s5 = sadd.s32 %s2231_s16, %s2753_s20  ;;  %s733_s1 = scalar_lea.vmem [#allocation5], %s2269_s15  ;;  %v663_v42 = vadd.f32 %v662_v29, %v658_v27 }
 0x15f   : > { %s584_s29 = scalar_lea.vmem [#allocation5], %s2754_s0  ;;  %v734_v34 = vld [vmem:[%s733_s1] sm:$0x1]  ;;  %s2302_s6 = sld [smem:[#allocation4 + %s756_s5]]  ;;  %v730_v38 = vadd.f32 %v729_v31, %v725_v30 }
 0x160   : > { %v585_v33 = vld [vmem:[%s584_s29] sm:$0x1]  ;;  %s259_s13 = scalar_lea.vmem [#allocation5], %s2755_s12  ;;  %s2758_s10 = sld [smem:[#allocation69_spill]] }
 0x161   : > { %v260_v35 = vld [vmem:[%s259_s13] sm:$0x1]  ;;  %s2759_s18 = sld [smem:[#allocation33_spill]]  ;;  %s761_s4 = sadd.s32 %s2231_s16, %s1824_s24  ;;  %v586_v45 = vadd.f32 %v585_v33, %v581_v28  ;;  %v735_v47 = vadd.f32 %v734_v34, %v730_v38 }
 0x162   : > { %s507_s27 = scalar_lea.vmem [#allocation5], %s2756_s30  ;;  %s2760_s0 = sld [smem:[#allocation114_spill]]  ;;  %v261_v54 = vadd.f32 %v260_v35, %v255_v39 }
 0x163   : > { %v508_v37 = vld [vmem:[%s507_s27] sm:$0x1]  ;;  %s430_s14 = scalar_lea.vmem [#allocation5], %s2757_s3  ;;  %s738_s15 = scalar_lea.vmem [#allocation5], %s2273_s17 }
 0x164   : > { %v431_v41 = vld [vmem:[%s430_s14] sm:$0x1]  ;;  %s2310_s12 = sld [smem:[#allocation4 + %s761_s4]]  ;;  %s766_s29 = sadd.s32 %s2231_s16, %s2703_s21  ;;  %v509_v48 = vadd.f32 %v508_v37, %v504_v32 }
 0x165   : > { %v739_v43 = vld [vmem:[%s738_s15] sm:$0x1]  ;;  %s2761_s5 = sld [smem:[#allocation100_spill]]  ;;  %s743_s27 = scalar_lea.vmem [#allocation5], %s2279_s2  ;;  %v432_v51 = vadd.f32 %v431_v41, %v427_v36 }
 0x166   : > { %s353_s30 = scalar_lea.vmem [#allocation5], %s2758_s10  ;;  %s2762_s3 = sld [smem:[#allocation85_spill]]  ;;  %v744_v50 = vld [vmem:[%s743_s27] sm:$0x1]  ;;  %v740_v53 = vadd.f32 %v739_v43, %v735_v47 }
 0x167   : > { %v354_v44 = vld [vmem:[%s353_s30] sm:$0x1]  ;;  %s666_s1 = scalar_lea.vmem [#allocation5], %s2759_s18  ;;  %s2316_s13 = sld [smem:[#allocation4 + %s766_s29]] }
 0x168   : > { %v667_v46 = vld [vmem:[%s666_s1] sm:$0x1]  ;;  %s589_s17 = scalar_lea.vmem [#allocation5], %s2760_s0  ;;  %s2763_s4 = sld [smem:[#allocation49_spill]]  ;;  %v355_v55 = vadd.f32 %v354_v44, %v350_v40  ;;  %v745_v63 = vadd.f32 %v744_v50, %v740_v53 }
 0x169   : > { %v590_v49 = vld [vmem:[%s589_s17] sm:$0x1]  ;;  %s771_s14 = sadd.s32 %s2231_s16, %s2709_s7  ;;  %s2764_s10 = sld [smem:[#allocation70_spill]]  ;;  %v668_v57 = vadd.f32 %v667_v46, %v663_v42 }
 0x16a   : > { %s2323_s18 = sld [smem:[#allocation4 + %s771_s14]]  ;;  %s776_s30 = sadd.s32 %s2231_s16, %s2711_s23  ;;  %v591_v61 = vadd.f32 %v590_v49, %v586_v45 }
 0x16b   : > { %s512_s15 = scalar_lea.vmem [#allocation5], %s2761_s5  ;;  %s2765_s2 = sld [smem:[#allocation115_spill]] }
 0x16c   : > { %v513_v52 = vld [vmem:[%s512_s15] sm:$0x1]  ;;  %s435_s0 = scalar_lea.vmem [#allocation5], %s2762_s3  ;;  %s748_s29 = scalar_lea.vmem [#allocation5], %s2288_s11 }
 0x16d   : > { %v436_v56 = vld [vmem:[%s435_s0] sm:$0x1]  ;;  %s2329_s1 = sld [smem:[#allocation4 + %s776_s30]]  ;;  %s671_s15 = scalar_lea.vmem [#allocation5], %s2184_s19  ;;  %v514_v0 = vadd.f32 %v513_v52, %v509_v48 }
 0x16e   : > { %v749_v58 = vld [vmem:[%s748_s29] sm:$0x1]  ;;  %s2766_s5 = sld [smem:[#allocation101_spill]]  ;;  %s265_s17 = scalar_lea.vmem [#allocation5], %s2763_s4  ;;  %v437_v2 = vadd.f32 %v436_v56, %v432_v51 }
 0x16f   : > { %v266_v59 = vld [vmem:[%s265_s17] sm:$0x1]  ;;  %s358_s27 = scalar_lea.vmem [#allocation5], %s2764_s10  ;;  %s2767_s14 = sld [smem:[#allocation51_spill]]  ;;  %v750_v4 = vadd.f32 %v749_v58, %v745_v63 }
 0x170   : > { %v359_v60 = vld [vmem:[%s358_s27] sm:$0x1]  ;;  %s2768_s23 = sld [smem:[#allocation86_spill]]  ;;  %s781_s7 = sadd.s32 %s2231_s16, %s2717_s26  ;;  %v267_v5 = vadd.f32 %v266_v59, %v261_v54 }
 0x171   : > { %v672_v62 = vld [vmem:[%s671_s15] sm:$0x1]  ;;  %s786_s3 = sadd.s32 %s2231_s16, %s1859_s22  ;;  %s594_s0 = scalar_lea.vmem [#allocation5], %s2765_s2  ;;  %v360_v7 = vadd.f32 %v359_v60, %v355_v55 }
 0x172   : > { %v595_v1 = vld [vmem:[%s594_s0] sm:$0x1]  ;;  %s2769_s11 = sld [smem:[#allocation29_spill]]  ;;  %v673_v9 = vadd.f32 %v672_v62, %v668_v57 }
 0x173   : > { %s2770_s30 = sld [smem:[#allocation50_spill]]  ;;  %v596_v12 = vadd.f32 %v595_v1, %v591_v61 }
 0x174   : > { %s2339_s29 = sld [smem:[#allocation4 + %s781_s7]]  ;;  %s517_s17 = scalar_lea.vmem [#allocation5], %s2766_s5 }
 0x175   : > { %s2772_s4 = sld [smem:[#allocation31_spill]]  ;;  %v518_v3 = vld [vmem:[%s517_s17] sm:$0x1]  ;;  %s271_s16 = scalar_lea.vmem [#allocation5], %s2767_s14 }
 0x176   : > { %s2773_s10 = sld [smem:[#allocation71_spill]]  ;;  %v272_v6 = vld [vmem:[%s271_s16] sm:$0x1]  ;;  %s440_s2 = scalar_lea.vmem [#allocation5], %s2768_s23  ;;  %v519_v14 = vadd.f32 %v518_v3, %v514_v0 }
 0x177   : > { %s2774_s19 = sld [smem:[#allocation61_spill]]  ;;  %v441_v8 = vld [vmem:[%s440_s2] sm:$0x1]  ;;  %s753_s7 = scalar_lea.vmem [#allocation5], %s2294_s25  ;;  %v273_v20 = vadd.f32 %v272_v6, %v267_v5 }
 0x178   : > { %s2342_s27 = sld [smem:[#allocation4 + %s786_s3]]  ;;  %v754_v10 = vld [vmem:[%s753_s7] sm:$0x1]  ;;  %v442_v17 = vadd.f32 %v441_v8, %v437_v2 }
 0x179   : > { %s2776_s15 = sld [smem:[#allocation116_spill]]  ;;  %s793_s22 = sadd.s32 %s2770_s30, %s2769_s11  ;;  %v755_v19 = vadd.f32 %v754_v10, %v750_v4 }
 0x17a   : > { %2771 = sst [smem:[#allocation93_spill]] %s2339_s29 }
 0x17b   : > { %s2777_s0 = sld [smem:[#allocation54_spill]]  ;;  %s798_s26 = sadd.s32 %s2770_s30, %s2772_s4 }
 0x17c   : > { %s2778_s29 = sld [smem:[#allocation102_spill]]  ;;  %s363_s5 = scalar_lea.vmem [#allocation5], %s2773_s10 }
 0x17d   : > { %s2779_s17 = sld [smem:[#allocation34_spill]]  ;;  %v364_v11 = vld [vmem:[%s363_s5] sm:$0x1]  ;;  %s676_s14 = scalar_lea.vmem [#allocation5], %s2774_s19 }
 0x17e   : > { %2775 = sst [smem:[#allocation37_spill]] %s2342_s27  ;;  %v677_v13 = vld [vmem:[%s676_s14] sm:$0x1]  ;;  %s808_s19 = sadd.s32 %s2770_s30, %s2738_s28  ;;  %v365_v21 = vadd.f32 %v364_v11, %v360_v7 }
 0x17f   : > { %s2780_s3 = sld [smem:[#allocation87_spill]]  ;;  %s599_s23 = scalar_lea.vmem [#allocation5], %s2776_s15  ;;  %v678_v23 = vadd.f32 %v677_v13, %v673_v9 }
 0x180   : > { %s2353_s16 = sld [smem:[#allocation4 + %s793_s22]]  ;;  %v600_v15 = vld [vmem:[%s599_s23] sm:$0x1] }
 0x181   : > { %s2356_s25 = sld [smem:[#allocation4 + %s798_s26]]  ;;  %s277_s11 = scalar_lea.vmem [#allocation5], %s2777_s0  ;;  %v601_v26 = vadd.f32 %v600_v15, %v596_v12 }
 0x182   : > { %s2781_s4 = sld [smem:[#allocation72_spill]]  ;;  %v278_v16 = vld [vmem:[%s277_s11] sm:$0x1]  ;;  %s522_s10 = scalar_lea.vmem [#allocation5], %s2778_s29 }
 0x183   : > { %s2782_s2 = sld [smem:[#allocation91_spill]]  ;;  %v523_v18 = vld [vmem:[%s522_s10] sm:$0x1]  ;;  %s803_s7 = sadd.s32 %s2770_s30, %s2779_s17  ;;  %v279_v35 = vadd.f32 %v278_v16, %v273_v20 }
 0x184   : > { %s2783_s5 = sld [smem:[#allocation117_spill]]  ;;  %s758_s0 = scalar_lea.vmem [#allocation5], %s2302_s6  ;;  %v524_v28 = vadd.f32 %v523_v18, %v519_v14 }
 0x185   : > { %s2784_s22 = sld [smem:[#allocation38_spill]]  ;;  %s445_s15 = scalar_lea.vmem [#allocation5], %s2780_s3  ;;  %v759_v24 = vld [vmem:[%s758_s0] sm:$0x1] }
 0x186   : > { %s2785_s14 = sld [smem:[#allocation40_spill]]  ;;  %v446_v22 = vld [vmem:[%s445_s15] sm:$0x1]  ;;  %v760_v34 = vadd.f32 %v759_v24, %v755_v19 }
 0x187   : > { %s2786_s26 = sld [smem:[#allocation55_spill]]  ;;  %v447_v31 = vadd.f32 %v446_v22, %v442_v17 }
 0x188   : > { %s2787_s23 = sld [smem:[#allocation88_spill]]  ;;  %s368_s11 = scalar_lea.vmem [#allocation5], %s2781_s4 }
 0x189   : > { %s2366_s29 = sld [smem:[#allocation4 + %s803_s7]]  ;;  %v369_v25 = vld [vmem:[%s368_s11] sm:$0x1]  ;;  %s681_s28 = scalar_lea.vmem [#allocation5], %s2782_s2 }
 0x18a   : > { %s2788_s10 = sld [smem:[#allocation103_spill]]  ;;  %v682_v27 = vld [vmem:[%s681_s28] sm:$0x1]  ;;  %s604_s3 = scalar_lea.vmem [#allocation5], %s2783_s5  ;;  %v370_v36 = vadd.f32 %v369_v25, %v365_v21 }
 0x18b   : > { %s2370_s17 = sld [smem:[#allocation4 + %s808_s19]]  ;;  %v605_v29 = vld [vmem:[%s604_s3] sm:$0x1]  ;;  %s813_s15 = sadd.s32 %s2770_s30, %s2784_s22  ;;  %v683_v37 = vadd.f32 %v682_v27, %v678_v23 }
 0x18c   : > { %s818_s27 = sadd.s32 %s2770_s30, %s2785_s14  ;;  %s2789_s0 = sld [smem:[#allocation73_spill]]  ;;  %v606_v41 = vadd.f32 %v605_v29, %v601_v26 }
 0x18d   : > { %s283_s6 = scalar_lea.vmem [#allocation5], %s2786_s26  ;;  %s2790_s4 = sld [smem:[#allocation92_spill]] }
 0x18e   : > { %v284_v30 = vld [vmem:[%s283_s6] sm:$0x1]  ;;  %s450_s7 = scalar_lea.vmem [#allocation5], %s2787_s23  ;;  %s2380_s2 = sld [smem:[#allocation4 + %s813_s15]] }
 0x18f   : > { %v451_v32 = vld [vmem:[%s450_s7] sm:$0x1]  ;;  %s2791_s19 = sld [smem:[#allocation42_spill]]  ;;  %s763_s22 = scalar_lea.vmem [#allocation5], %s2310_s12  ;;  %v285_v52 = vadd.f32 %v284_v30, %v279_v35 }
 0x190   : > { %s527_s11 = scalar_lea.vmem [#allocation5], %s2788_s10  ;;  %s2792_s5 = sld [smem:[#allocation118_spill]]  ;;  %v764_v38 = vld [vmem:[%s763_s22] sm:$0x1]  ;;  %v452_v48 = vadd.f32 %v451_v32, %v447_v31 }
 0x191   : > { %v528_v33 = vld [vmem:[%s527_s11] sm:$0x1]  ;;  %s795_s14 = scalar_lea.vmem [#allocation5], %s2353_s16  ;;  %s2793_s26 = sld [smem:[#allocation58_spill]]  ;;  %v765_v50 = vadd.f32 %v764_v38, %v760_v34 }
 0x192   : > { %v796_v39 = vld [vmem:[%s795_s14] sm:$0x1]  ;;  %s2384_s23 = sld [smem:[#allocation4 + %s818_s27]]  ;;  %s373_s10 = scalar_lea.vmem [#allocation5], %s2789_s0  ;;  %v529_v44 = vadd.f32 %v528_v33, %v524_v28 }
 0x193   : > { %v374_v40 = vld [vmem:[%s373_s10] sm:$0x1]  ;;  %s2794_s28 = sld [smem:[#allocation104_spill]]  ;;  %s686_s3 = scalar_lea.vmem [#allocation5], %s2790_s4 }
 0x194   : > { %v687_v42 = vld [vmem:[%s686_s3] sm:$0x1]  ;;  %s800_s15 = scalar_lea.vmem [#allocation5], %s2356_s25  ;;  %s828_s7 = sadd.s32 %s2770_s30, %s2747_s8  ;;  %v375_v53 = vadd.f32 %v374_v40, %v370_v36 }
 0x195   : > { %v801_v43 = vld [vmem:[%s800_s15] sm:$0x1]  ;;  %s823_s6 = sadd.s32 %s2770_s30, %s2791_s19  ;;  %s2795_s11 = sld [smem:[#allocation89_spill]]  ;;  %v688_v55 = vadd.f32 %v687_v42, %v683_v37 }
 0x196   : > { %s609_s12 = scalar_lea.vmem [#allocation5], %s2792_s5  ;;  %v802_v46 = vadd.f32 %v801_v43, %v796_v39  ;;  %s2394_s16 = sld [smem:[#allocation4 + %s823_s6]] }
 0x197   : > { %v610_v45 = vld [vmem:[%s609_s12] sm:$0x1]  ;;  %s289_s27 = scalar_lea.vmem [#allocation5], %s2793_s26  ;;  %s2796_s8 = sld [smem:[#allocation74_spill]] }
 0x198   : > { %v290_v47 = vld [vmem:[%s289_s27] sm:$0x1]  ;;  %s805_s25 = scalar_lea.vmem [#allocation5], %s2366_s29  ;;  %s2399_s4 = sld [smem:[#allocation4 + %s828_s7]]  ;;  %v611_v60 = vadd.f32 %v610_v45, %v606_v41 }
 0x199   : > { %s532_s0 = scalar_lea.vmem [#allocation5], %s2794_s28  ;;  %v806_v51 = vld [vmem:[%s805_s25] sm:$0x1]  ;;  %s2797_s19 = sld [smem:[#allocation77_spill]]  ;;  %v291_v7 = vadd.f32 %v290_v47, %v285_v52 }
 0x19a   : > { %v533_v49 = vld [vmem:[%s532_s0] sm:$0x1]  ;;  %s2798_s22 = sld [smem:[#allocation60_spill]]  ;;  %s768_s14 = scalar_lea.vmem [#allocation5], %s2316_s13  ;;  %v807_v57 = vadd.f32 %v806_v51, %v802_v46 }
 0x19b   : > { %s455_s5 = scalar_lea.vmem [#allocation5], %s2795_s11  ;;  %v769_v56 = vld [vmem:[%s768_s14] sm:$0x1]  ;;  %s810_s26 = scalar_lea.vmem [#allocation5], %s2370_s17  ;;  %v534_v62 = vadd.f32 %v533_v49, %v529_v44 }
 0x19c   : > { %v456_v54 = vld [vmem:[%s455_s5] sm:$0x1]  ;;  %s2799_s10 = sld [smem:[#allocation59_spill]]  ;;  %s833_s28 = sadd.s32 %s2770_s30, %s1810_s9  ;;  %v770_v5 = vadd.f32 %v769_v56, %v765_v50 }
 0x19d   : > { %v811_v58 = vld [vmem:[%s810_s26] sm:$0x1]  ;;  %s838_s3 = sadd.s32 %s2770_s30, %s2753_s20  ;;  %s378_s29 = scalar_lea.vmem [#allocation5], %s2796_s8  ;;  %v457_v3 = vadd.f32 %v456_v54, %v452_v48 }
 0x19e   : > { %s2800_s15 = sld [smem:[#allocation105_spill]]  ;;  %v379_v59 = vld [vmem:[%s378_s29] sm:$0x1]  ;;  %v812_v0 = vadd.f32 %v811_v58, %v807_v57  ;;  %s815_s9 = scalar_lea.vmem [#allocation5], %s2380_s2 }
 0x19f   : > { %s691_s6 = scalar_lea.vmem [#allocation5], %s2797_s19  ;;  %s2410_s7 = sld [smem:[#allocation4 + %s833_s28]]  ;;  %v816_v1 = vld [vmem:[%s815_s9] sm:$0x1]  ;;  %v380_v8 = vadd.f32 %v379_v59, %v375_v53 }
 0x1a0   : > { %v692_v61 = vld [vmem:[%s691_s6] sm:$0x1]  ;;  %s614_s13 = scalar_lea.vmem [#allocation5], %s2798_s22  ;;  %s2801_s17 = sld [smem:[#allocation90_spill]]  ;;  %v817_v12 = vadd.f32 %v816_v1, %v812_v0 }
 0x1a1   : > { %v615_v63 = vld [vmem:[%s614_s13] sm:$0x1]  ;;  %s2414_s20 = sld [smem:[#allocation4 + %s838_s3]]  ;;  %s820_s0 = scalar_lea.vmem [#allocation5], %s2384_s23  ;;  %v693_v10 = vadd.f32 %v692_v61, %v688_v55  ;;  %v875_v27 = vrot.slane %v380_v8, 7 }
 0x1a2   : > { %s295_s11 = scalar_lea.vmem [#allocation5], %s2799_s10  ;;  %s2802_s27 = sld [smem:[#allocation36_spill]]  ;;  %v821_v6 = vld [vmem:[%s820_s0] sm:$0x1]  ;;  %v616_v13 = vadd.f32 %v615_v63, %v611_v60 }
 0x1a3   : > { %v296_v2 = vld [vmem:[%s295_s11] sm:$0x1]  ;;  %s843_s8 = sadd.s32 %s2770_s30, %s1824_s24  ;;  %s848_s25 = sadd.s32 %s2770_s30, %s2703_s21  ;;  %v822_v18 = vadd.f32 %v821_v6, %v817_v12 }
 0x1a4   : > { %s537_s12 = scalar_lea.vmem [#allocation5], %s2800_s15  ;;  %s2803_s19 = sld [smem:[#allocation119_spill]]  ;;  %v297_v23 = vadd.f32 %v296_v2, %v291_v7 }
 0x1a5   : > { %v538_v4 = vld [vmem:[%s537_s12] sm:$0x1]  ;;  %s2804_s5 = sld [smem:[#allocation52_spill]]  ;;  %s773_s14 = scalar_lea.vmem [#allocation5], %s2323_s18 }
 0x1a6   : > { %s460_s2 = scalar_lea.vmem [#allocation5], %s2801_s17  ;;  %s2805_s22 = sld [smem:[#allocation53_spill]]  ;;  %v774_v11 = vld [vmem:[%s773_s14] sm:$0x1]  ;;  %v539_v16 = vadd.f32 %v538_v4, %v534_v62  ;;  %v896_v40 = vsel %vm895_vm0, %v297_v23, %v875_v27 }
 0x1a7   : > { %v461_v9 = vld [vmem:[%s460_s2] sm:$0x1]  ;;  %s2806_s26 = sld [smem:[#allocation106_spill]]  ;;  %s825_s21 = scalar_lea.vmem [#allocation5], %s2394_s16  ;;  %v775_v21 = vadd.f32 %v774_v11, %v770_v5 }
 0x1a8   : > { %s2425_s10 = sld [smem:[#allocation4 + %s843_s8]]  ;;  %s696_s24 = scalar_lea.vmem [#allocation5], %s2802_s27  ;;  %v826_v15 = vld [vmem:[%s825_s21] sm:$0x1]  ;;  %v462_v19 = vadd.f32 %v461_v9, %v457_v3 }
 0x1a9   : > { %v697_v14 = vld [vmem:[%s696_s24] sm:$0x1]  ;;  %s2429_s23 = sld [smem:[#allocation4 + %s848_s25]]  ;;  %s830_s13 = scalar_lea.vmem [#allocation5], %s2399_s4  ;;  %v827_v26 = vadd.f32 %v826_v15, %v822_v18 }
 0x1aa   : > { %s619_s28 = scalar_lea.vmem [#allocation5], %s2803_s19  ;;  %s2807_s29 = sld [smem:[#allocation62_spill]]  ;;  %v831_v22 = vld [vmem:[%s830_s13] sm:$0x1]  ;;  %v698_v24 = vadd.f32 %v697_v14, %v693_v10  ;;  %v878_v36 = vrot.slane %v462_v19, 6 }
 0x1ab   : > { %v620_v17 = vld [vmem:[%s619_s28] sm:$0x1]  ;;  %s853_s3 = sadd.s32 %s2770_s30, %s2804_s5  ;;  %s2808_s6 = sld [smem:[#allocation56_spill]]  ;;  %v832_v33 = vadd.f32 %v831_v22, %v827_v26 }
 0x1ac   : > { %s858_s18 = sadd.s32 %s2770_s30, %s2805_s22  ;;  %s2809_s16 = sld [smem:[#allocation57_spill]]  ;;  %v621_v28 = vadd.f32 %v620_v17, %v616_v13  ;;  %v898_v48 = vsel %vm897_vm1, %v896_v40, %v878_v36  ;;  %v873_v5 = vld [vmem:[#allocation2] sm:$0xff] }
 0x1ad   : > { %s542_s15 = scalar_lea.vmem [#allocation5], %s2806_s26  ;;  %s2438_s17 = sld [smem:[#allocation4 + %s853_s3]] }
 0x1ae   : > { %v543_v20 = vld [vmem:[%s542_s15] sm:$0x1]  ;;  %s2810_s9 = sld [smem:[#allocation120_spill]]  ;;  %s778_s11 = scalar_lea.vmem [#allocation5], %s2329_s1 }
 0x1af   : > { %v779_v25 = vld [vmem:[%s778_s11] sm:$0x1]  ;;  %s2441_s12 = sld [smem:[#allocation4 + %s858_s18]]  ;;  %s835_s4 = scalar_lea.vmem [#allocation5], %s2410_s7  ;;  %v544_v31 = vadd.f32 %v543_v20, %v539_v16 }
 0x1b0   : > { %s701_s27 = scalar_lea.vmem [#allocation5], %s2807_s29  ;;  %s2811_s0 = sld [smem:[#allocation93_spill]]  ;;  %v836_v30 = vld [vmem:[%s835_s4] sm:$0x1]  ;;  %v780_v34 = vadd.f32 %v779_v25, %v775_v21 }
 0x1b1   : > { %v702_v29 = vld [vmem:[%s701_s27] sm:$0x1]  ;;  %s863_s8 = sadd.s32 %s2770_s30, %s2808_s6  ;;  %s2812_s2 = sld [smem:[#allocation107_spill]]  ;;  %v837_v39 = vadd.f32 %v836_v30, %v832_v33  ;;  %v881_v45 = vrot.slane %v544_v31, 5 }
 0x1b2   : > { %s868_s25 = sadd.s32 %s2770_s30, %s2809_s16  ;;  %s2450_s1 = sld [smem:[#allocation4 + %s863_s8]]  ;;  %v703_v37 = vadd.f32 %v702_v29, %v698_v24 }
 0x1b3   : > { %s840_s5 = scalar_lea.vmem [#allocation5], %s2414_s20  ;;  %s2454_s7 = sld [smem:[#allocation4 + %s868_s25]]  ;;  %v900_v55 = vsel %vm899_vm2, %v898_v48, %v881_v45 }
 0x1b4   : > { %s624_s19 = scalar_lea.vmem [#allocation5], %s2810_s9  ;;  %v841_v35 = vld [vmem:[%s840_s5] sm:$0x1]  ;;  %s2813_s30 = sld [smem:[#allocation37_spill]] }
 0x1b5   : > { %v625_v32 = vld [vmem:[%s624_s19] sm:$0x1]  ;;  %s845_s26 = scalar_lea.vmem [#allocation5], %s2425_s10  ;;  %v842_v44 = vadd.f32 %v841_v35, %v837_v39  ;;  %s850_s20 = scalar_lea.vmem [#allocation5], %s2429_s23 }
 0x1b6   : > { %s783_s22 = scalar_lea.vmem [#allocation5], %s2811_s0  ;;  %v626_v41 = vadd.f32 %v625_v32, %v621_v28  ;;  %v846_v43 = vld [vmem:[%s845_s26] sm:$0x1]  ;;  %s855_s21 = scalar_lea.vmem [#allocation5], %s2438_s17 }
 0x1b7   : > { %v784_v38 = vld [vmem:[%s783_s22] sm:$0x1]  ;;  %s706_s14 = scalar_lea.vmem [#allocation5], %s2812_s2  ;;  %v847_v51 = vadd.f32 %v846_v43, %v842_v44  ;;  %s860_s10 = scalar_lea.vmem [#allocation5], %s2441_s12 }
 0x1b8   : > { %v707_v42 = vld [vmem:[%s706_s14] sm:$0x1]  ;;  %v785_v46 = vadd.f32 %v784_v38, %v780_v34  ;;  %v884_v53 = vrot.slane %v626_v41, 4  ;;  %s865_s23 = scalar_lea.vmem [#allocation5], %s2450_s1  ;;  %s2814_s3 = sld [smem:[#allocation18_spill]] }
 0x1b9   : > { %v851_v47 = vld [vmem:[%s850_s20] sm:$0x1]  ;;  %v708_v49 = vadd.f32 %v707_v42, %v703_v37  ;;  %s870_s28 = scalar_lea.vmem [#allocation5], %s2454_s7 }
 0x1ba   : > { %s788_s24 = scalar_lea.vmem [#allocation5], %s2813_s30  ;;  %v856_v52 = vld [vmem:[%s855_s21] sm:$0x1]  ;;  %v852_v54 = vadd.f32 %v851_v47, %v847_v51  ;;  %v902_v61 = vsel %vm901_vm3, %v900_v55, %v884_v53 }
 0x1bb   : > { %v789_v50 = vld [vmem:[%s788_s24] sm:$0x1]  ;;  %v887_v59 = vrot.slane %v708_v49, 3 }
 0x1bc   : > { %v790_v56 = vadd.f32 %v789_v50, %v785_v46  ;;  %v861_v57 = vld [vmem:[%s860_s10] sm:$0x1]  ;;  %v857_v58 = vadd.f32 %v856_v52, %v852_v54 }
 0x1bd   : > { %v866_v60 = vld [vmem:[%s865_s23] sm:$0x1]  ;;  %v904_v2 = vsel %vm903_vm4, %v902_v61, %v887_v59 }
 0x1be   : > { %v862_v62 = vadd.f32 %v861_v57, %v857_v58  ;;  %v871_v63 = vld [vmem:[%s870_s28] sm:$0x1]  ;;  %v890_v0 = vrot.slane %v790_v56, 2  ;;  %p1254_p13 = scmp.ne.s32.totalorder %s2814_s3, 1 }
 0x1bf   : > { %s2815_s18 = sld [smem:[#allocation28_spill]] (!%p1254_p13) }
 0x1c0   : > { %v867_v1 = vadd.f32 %v866_v60, %v862_v62  ;;  %v906_v4 = vsel %vm905_vm5, %v904_v2, %v890_v0  ;;  %s2816_s6 = sld [smem:[#allocation123_spill]] (!%p1254_p13) }
 0x1c2   : > { %v872_v3 = vadd.f32 %v871_v63, %v867_v1 }
 0x1c4   : > { %v893_v6 = vrot.slane %v872_v3, 1 }
 0x1c5   : > { %914 = sbr.rel (%p1254_p13) target bundleno = 689 (0x2b1), region = 48  ;;  %s2817_s13 = scalar_lea.vmem (!%p1254_p13), [#allocation10], %s2815_s18 }
 0x1c6   : > { %v908_v7 = vsel %vm907_vm6, %v906_v4, %v893_v6 }
 0x1c7   : > { %v909_v8 = vadd.f32 %v908_v7, %v873_v5 }
 0x1c9   : > { %910 = vst [vmem:[#allocation2] sm:$0xff] %v909_v8 }
 0x1ca   : > { %v931_v9 = vld [vmem:[#allocation8 + $0x78] sm:$0xff]  ;;  %v1601_v10 = vmov 0.0   ;;  %v930_v11 = vld [vmem:[#allocation8 + $0x70] sm:$0xff]  ;;  %vm1602_vm7 = vmmov 0   ;;  %v929_v12 = vld [vmem:[#allocation8 + $0x68] sm:$0xff] }
 0x1cb   : > { %1298 = vmatprep.subr.mxu0 %v1601_v10  ;;  %1330 = vmatprep.mubr.msk.f32.mxu0 %vm1602_vm7, %v1601_v10  ;;  %v928_v13 = vld [vmem:[#allocation8 + $0x60] sm:$0xff]  ;;  %v927_v14 = vld [vmem:[#allocation8 + $0x58] sm:$0xff]  ;;  %v926_v15 = vld [vmem:[#allocation8 + $0x50] sm:$0xff] }
 0x1cc   : > { %1299 = vmatpush3.msra.mxu0 %v931_v9  ;;  %v925_v16 = vld [vmem:[#allocation8 + $0x48] sm:$0xff]  ;;  %v924_v17 = vld [vmem:[#allocation8 + $0x40] sm:$0xff]  ;;  %v923_v18 = vld [vmem:[#allocation8 + $0x38] sm:$0xff] }
 0x1cd   : > { %1300 = vmatprep.subr.mxu0 %v1601_v10  ;;  %v922_v19 = vld [vmem:[#allocation8 + $0x30] sm:$0xff]  ;;  %v921_v20 = vld [vmem:[#allocation8 + $0x28] sm:$0xff]  ;;  %v920_v21 = vld [vmem:[#allocation8 + $0x20] sm:$0xff] }
 0x1ce   : > { %1301 = vmatpush3.msra.mxu0 %v930_v11  ;;  %v919_v22 = vld [vmem:[#allocation8 + $0x18] sm:$0xff]  ;;  %v918_v23 = vld [vmem:[#allocation8 + $0x10] sm:$0xff]  ;;  %v917_v24 = vld [vmem:[#allocation8 + $0x8] sm:$0xff] }
 0x1cf   : > { %1302 = vmatprep.subr.mxu0 %v1601_v10  ;;  %v916_v25 = vld [vmem:[#allocation8] sm:$0xff]  ;;  %v1255_v28 = vld [vmem:[%s2816_s6] ss:$0 sm:$0xff] }
 0x1d0   : > { %1303 = vmatpush3.msra.mxu0 %v929_v12  ;;  %v915_v26 = vld [vmem:[#allocation2] sm:$0xff] }
 0x1d1   : > { %1304 = vmatprep.subr.mxu0 %v1601_v10 }
 0x1d2   : > { %1305 = vmatpush3.msra.mxu0 %v928_v13 }
 0x1d3   : > { %1306 = vmatprep.subr.mxu0 %v1601_v10 }
 0x1d4   : > { %1307 = vmatpush3.msra.mxu0 %v927_v14 }
 0x1d5   : > { %1308 = vmatprep.subr.mxu0 %v1601_v10 }
 0x1d6   : > { %1309 = vmatpush3.msra.mxu0 %v926_v15 }
 0x1d7   : > { %1310 = vmatprep.subr.mxu0 %v1601_v10 }
 0x1d8   : > { %1311 = vmatpush3.msra.mxu0 %v925_v16 }
 0x1d9   : > { %1312 = vmatprep.subr.mxu0 %v1601_v10 }
 0x1da   : > { %1313 = vmatpush3.msra.mxu0 %v924_v17 }
 0x1db   : > { %1314 = vmatprep.subr.mxu0 %v1601_v10 }
 0x1dc   : > { %1315 = vmatpush3.msra.mxu0 %v923_v18 }
 0x1dd   : > { %1316 = vmatprep.subr.mxu0 %v1601_v10 }
 0x1de   : > { %1317 = vmatpush3.msra.mxu0 %v922_v19 }
 0x1df   : > { %1318 = vmatprep.subr.mxu0 %v1601_v10 }
 0x1e0   : > { %1319 = vmatpush3.msra.mxu0 %v921_v20 }
 0x1e1   : > { %1320 = vmatprep.subr.mxu0 %v1601_v10 }
 0x1e2   : > { %1321 = vmatpush3.msra.mxu0 %v920_v21 }
 0x1e3   : > { %1322 = vmatprep.subr.mxu0 %v1601_v10 }
 0x1e4   : > { %1323 = vmatpush3.msra.mxu0 %v919_v22 }
 0x1e5   : > { %1324 = vmatprep.subr.mxu0 %v1601_v10 }
 0x1e6   : > { %1325 = vmatpush3.msra.mxu0 %v918_v23 }
 0x1e7   : > { %1326 = vmatprep.subr.mxu0 %v1601_v10 }
 0x1e8   : > { %1327 = vmatpush3.msra.mxu0 %v917_v24 }
 0x1e9   : > { %1328 = vmatprep.subr.mxu0 %v1601_v10 }
 0x1ea   : > { %1329 = vmatpush3.msra.mxu0 %v916_v25 }
 0x1eb   : > { %1331 = vmatmul.mubr.f32.vlgmr.msra.gmra.mxu0 %v915_v26 }
 0x2ab   : > { %v998_v27 = vpop.f32.mrf.mxu0 }
 0x2ac   : > { %v1002_v29 = vmul.f32 0.03125, %v998_v27 }
 0x2ad   : > { %v1332_v30 = vpop.f32.mrf.mxu0 }
 0x2ae   : > { %v1010_v31 = vadd.f32 %v1255_v28, %v1002_v29 }
 0x2b0   : > { %1011 = vst [vmem:[%s2817_s13] sm:$0xff] %v1010_v31 }
 0x2b1 PF: > { %s2818_s16 = sld [smem:[#allocation19_spill]]  ;;  %s1603_s22 = smov [#allocation10]  }
 0x2b2   : > { %s2819_s17 = sld [smem:[#allocation28_spill]]  ;;  %s1495_s7 = sshll.u32 %s1603_s22, 4  ;;  %s1496_s7 = int_to_ptr.vmem [resolvable:$false] %s1495_s7 }
 0x2b3   : > { %s2820_s9 = sld [smem:[#allocation16_spill]]  ;;  %s1497_s30 = scalar_lea.vmem %s1496_s7, 256 }
 0x2b4   : > { %s2822_s4 = sld [smem:[#allocation124_spill]] }
 0x2b7   : > { %s1257_s12 = sshll.u32 %s2818_s16, 7 }
 0x2b8   : > { %s2823_s25 = scalar_lea.vmem [#allocation10], %s2819_s17 }
 0x2b9   : > { %s1026_s19 = sshll.u32 %s2823_s25, 4  ;;  %s2824_s2 = sand.u32 1, %s2820_s9   ;;  %s1027_s19 = int_to_ptr.vmem [resolvable:$true] %s1026_s19 }
 0x2ba   : > { %s1024_s8 = scalar_lea.hbm %s2822_s4, %s1257_s12  ;;  %s1013_s1 = scalar_lea.sflag [#allocation7], %s2824_s2 }
 0x2bb   : > { %s1491_s5 = scalar_lea.vmem %s1027_s19, 128  ;;  %p1498_p12 = scmp.lt.s32.totalorder %s1027_s19, %s1496_s7 }
 0x2bc   : > { %p1492_p0 = scmp.ne.s32.totalorder %s1027_s19, %s1491_s5  ;;  %p1499_p2 = scmp.lt.s32.totalorder %s1497_s30, %s1491_s5 }
 0x2be   : > { %p1493_p1 = pnand %p1492_p0, %p1682_p3  ;;  %p1500_p4 = por %p1499_p2, %p1498_p12 }
 0x2c0   : > { %p1494_p11 = pneg %p1493_p1 }
 0x2c2   : > { %p1501_p5 = pnand %p1500_p4, %p1494_p11 }
 0x2c4   : > { %1504 = shalt.err (!%p1501_p5)
}
 0x2c5   : > { %s1505_s14 = scalar_lea.hbm %s1024_s8, 128  ;;  %s1509_s24 = scalar_lea.hbm %s2822_s4, 256 }
 0x2c6   : > { %p1506_p6 = scmp.ne.s32.totalorder %s1024_s8, %s1505_s14  ;;  %p1510_p10 = scmp.lt.s32.totalorder %s1024_s8, %s2822_s4 }
 0x2c7   : > { %p1511_p13 = scmp.lt.s32.totalorder %s1509_s24, %s1505_s14 }
 0x2c8   : > { %p1507_p7 = pnand %p1506_p6, %p1682_p3 }
 0x2c9   : > { %p1512_p0 = por %p1511_p13, %p1510_p10 }
 0x2ca   : > { %p1508_p8 = pneg %p1507_p7 }
 0x2cc   : > { %p1513_p1 = pnand %p1512_p0, %p1508_p8 }
 0x2ce   : > { %1516 = shalt.err (!%p1513_p1)
}
 0x2cf   : > { %1341 = dma.vmem_to_hbm [thread:$0]  (%p1682_p3), %s1027_s19, 128, %s1024_s8, %s1013_s1  }
 0x2d0 PF: > { %s2825_s23 = sld [smem:[#allocation22_spill]] }
 0x2d1   : > { %s2826_s28 = sld [smem:[#allocation15_spill]] }
 0x2d6   : > { %p1358_p11 = scmp.ge.s32.totalorder %s2825_s23, 2 }
 0x2d7   : > { %s1038_s18 = sand.u32 1, %s2826_s28  }
 0x2d8   : > { %p1351_p12 = pnand %p1358_p11, %p1692_p9  ;;  %s1039_s29 = scalar_lea.sflag [#allocation7], %s1038_s18 }
 0x2da   : > { %p1352_p2 = pneg %p1351_p12 }
 0x2dc   : > { %1560 = dma.done.wait (%p1352_p2), %s1039_s29, 128  }
 0x2dd   : > { %1562 = vsyncadd (%p1352_p2), %s1039_s29, 4294967168  ;;  %s23_s24 = sadd.s32 1, %s2825_s23   ;;  %s2828_s18 = sld [smem:[#allocation16_spill]] }
 0x2de   : > { %p20_p4 = scmp.ge.s32.totalorder %s23_s24, 6   ;;  %s2829_s19 = sld [smem:[#allocation17_spill]] }
 0x2df   : > { %s2830_s20 = sld [smem:[#allocation27_spill]] }
 0x2e0   : > { %s2831_s21 = sld [smem:[#allocation20_spill]]  ;;  %22 = sbr.rel (!%p20_p4) target bundleno = 16 (0x10), region = 209 }
 0x2e1   : > { %s2832_s22 = sld [smem:[#allocation21_spill]] }
 0x2e2   : > { %s2833_s23 = sld [smem:[#allocation23_spill]] }
 0x2e3   : > { %s2834_s0 = sld [smem:[#allocation25_spill]] }
 0x2e5   :  { %1044 = vsyncpa [#allocation6], 1 }
 0x2e6   :  { %1046 = vsyncpa [#allocation6 + $0x1], 1 }
 0x2e7   :  { %1047 = vsyncpa [#allocation9], 1 }
 0x2e8   :  { %1048 = vsyncpa [#allocation7], 1 }
 0x2e9   :  { %1050 = vsyncpa [#allocation7 + $0x1], 1 }

</bundles_post_ra>
